<compile_context>
chip_gen: v5e
topology: v5e:2x2
jax: 0.10.0
libtpu: 0.0.40
codegen_flags: <defaults>
</compile_context>

<pallas_src>
import functools

import jax
import jax.numpy as jnp
from jax.experimental import pallas as pl
from jax.experimental.pallas import tpu as pltpu

LANES = 128


def _round_up(n, m):
    return ((n + m - 1) // m) * m


# ----------------------------------------------------------------------------
# Fused kernel: spatial GEMM (+bias) -> temporal Conv1d (+bias), per group-tile
#   a_ref : (D,  tg, C*k*k)     bf16   im2col patches, rows d-major
#   ws_ref: (C*k*k, mid_pad)    bf16   spatial weights (resident)
#   bs_ref: (1, mid_pad)        f32
#   wt_ref: (k, mid_pad, out_pad) f32  temporal weights (resident)
#   bt_ref: (1, out_pad)        f32
#   o_ref : (Do, tg, out_pad)   f32
# tg is a multiple of 16, so every reshape / row-slice below is a free view.
# ----------------------------------------------------------------------------
def _fused_conv_kernel(a_ref, ws_ref, bs_ref, wt_ref, bt_ref, o_ref):
    D, tg, Ks = a_ref.shape
    Do, _, Np = o_ref.shape
    k = D - Do + 1

    # ---- spatial Conv2d as one MXU GEMM, f32 accumulation --------------------
    a = a_ref[...].reshape(D * tg, Ks)                 # free view (tg % 16 == 0)
    y = jnp.dot(a, ws_ref[...], preferred_element_type=jnp.float32)
    y = y + bs_ref[...]                                # (D*tg, mid_pad), VMEM only

    # ---- temporal Conv1d: k shifted, 8-aligned row-slices of y ---------------
    acc = jnp.dot(y[0:Do * tg, :], wt_ref[0],
                  preferred_element_type=jnp.float32)
    for kd in range(1, k):                             # static unroll (k = 3)
        acc = acc + jnp.dot(y[kd * tg:(kd + Do) * tg, :], wt_ref[kd],
                            preferred_element_type=jnp.float32)
    o_ref[...] = (acc + bt_ref[...]).reshape(Do, tg, Np).astype(o_ref.dtype)


# ----------------------------------------------------------------------------
# Conv3d forward (kernel_size=3, padding=0, stride=1) — matches the PyTorch module
# ----------------------------------------------------------------------------
@functools.partial(jax.jit, static_argnames=("k", "num_blocks"))
def conv3d_forward(x, w_s, b_s, w_t, b_t, k=3, num_blocks=2):
    # x: (B, C, D, H, W)
    B, C, D, H, W = x.shape
    mid = w_s.shape[0]
    out_c = w_t.shape[0]
    Ho, Wo = H - k + 1, W - k + 1
    Do = D - k + 1
    Gs = B * Ho * Wo
    Kspat = C * k * k
    mid_pad = _round_up(mid, LANES)
    out_pad = _round_up(out_c, LANES)

    # ---- spatial im2col (plain-JAX glue), rows ordered (d; b,ho,wo),
    #      K ordered (c, kh, kw) to match Conv2d weight layout.
    # TODO(synk): build this patch tile in VMEM inside the kernel instead.
    cols = [x[:, :, :, kh:kh + Ho, kw:kw + Wo]
            for kh in range(k) for kw in range(k)]          # each (B,C,D,Ho,Wo)
    p = jnp.stack(cols, axis=-1)                            # (B,C,D,Ho,Wo,k*k)
    p = jnp.transpose(p, (2, 0, 3, 4, 1, 5))                # (D,B,Ho,Wo,C,k*k)
    a1 = p.reshape(D, Gs, Kspat).astype(jnp.bfloat16)

    # ---- weights / biases (mid/out channels zero-padded to lane-dense 128) ---
    ws = jnp.transpose(w_s.reshape(mid, Kspat), (1, 0))      # (C*k*k, mid)
    ws = jnp.pad(ws, ((0, 0), (0, mid_pad - mid))).astype(jnp.bfloat16)
    bs = jnp.pad(b_s, (0, mid_pad - mid)).reshape(1, mid_pad).astype(jnp.float32)

    wt = jnp.transpose(w_t, (2, 1, 0))                       # (k, mid, out)
    wt = jnp.pad(wt, ((0, 0), (0, mid_pad - mid), (0, out_pad - out_c)))
    wt = wt.astype(jnp.float32)                              # tiny, stays resident
    bt = jnp.pad(b_t, (0, out_pad - out_c)).reshape(1, out_pad).astype(jnp.float32)

    # ---- grid: num_blocks tiles over the (b,ho,wo) groups; tile_g % 16 == 0
    # (bf16 sublane packing + keeps all in-kernel slices/reshapes free views).
    tile_g = _round_up(pl.cdiv(Gs, num_blocks), 16)
    tile_g = min(tile_g, _round_up(Gs, 16))
    grid = (pl.cdiv(Gs, tile_g),)

    z = pl.pallas_call(
        _fused_conv_kernel,
        out_shape=jax.ShapeDtypeStruct((Do, Gs, out_pad), jnp.float32),
        grid=grid,
        in_specs=[
            pl.BlockSpec((D, tile_g, Kspat), lambda i: (0, i, 0)),
            pl.BlockSpec((Kspat, mid_pad), lambda i: (0, 0)),       # resident
            pl.BlockSpec((1, mid_pad), lambda i: (0, 0)),
            pl.BlockSpec((k, mid_pad, out_pad), lambda i: (0, 0, 0)),
            pl.BlockSpec((1, out_pad), lambda i: (0, 0)),
        ],
        out_specs=pl.BlockSpec((Do, tile_g, out_pad), lambda i: (0, i, 0)),
        compiler_params=pltpu.CompilerParams(
            dimension_semantics=("parallel",)),
    )(a1, ws, bs, wt, bt)                                    # (Do, Gs, out_pad)

    # ---- '(do; b h w) c -> b c do h w' (minor JAX glue on ~90 KB useful data)
    z = z[..., :out_c].reshape(Do, B, Ho, Wo, out_c)
    return jnp.transpose(z, (1, 4, 0, 2, 3))                 # (B, out, Do, Ho, Wo)


# ----------------------------------------------------------------------------
# Pure-JAX reference (lax conv) for a correctness check
# ----------------------------------------------------------------------------
def conv3d_reference(x, w_s, b_s, w_t, b_t):
    B, C, D, H, W = x.shape
    x2 = jnp.transpose(x, (0, 2, 1, 3, 4)).reshape(B * D, C, H, W)
    y = jax.lax.conv_general_dilated(
        x2, w_s, (1, 1), "VALID",
        dimension_numbers=("NCHW", "OIHW", "NCHW")) + b_s[None, :, None, None]
    mid, Ho, Wo = y.shape[1], y.shape[2], y.shape[3]
    y = y.reshape(B, D, mid, Ho, Wo)
    y = jnp.transpose(y, (0, 3, 4, 2, 1)).reshape(B * Ho * Wo, mid, D)
    z = jax.lax.conv_general_dilated(
        y, w_t, (1,), "VALID",
        dimension_numbers=("NCH", "OIH", "NCH")) + b_t[None, :, None]
    out_c, Do = z.shape[1], z.shape[2]
    z = z.reshape(B, Ho, Wo, out_c, Do)
    return jnp.transpose(z, (0, 3, 4, 1, 2))


if __name__ == "__main__":
    # Module config: Conv3d(in_channels=4, out_channels=8) -> mid_channels=8
    in_ch, mid_ch, out_ch, K = 4, 8, 8, 3
    B, D, H, W = 2, 8, 16, 16

    key = jax.random.PRNGKey(0)
    kx, kw1, kb1, kw2, kb2 = jax.random.split(key, 5)

    x = jax.random.normal(kx, (B, in_ch, D, H, W), dtype=jnp.float32)
    # spatial_conv: Conv2d(in_ch, mid_ch, k=3)  -> weight (mid, in, 3, 3), bias (mid,)
    w_spatial = jax.random.normal(kw1, (mid_ch, in_ch, K, K), dtype=jnp.float32) * 0.1
    b_spatial = jax.random.normal(kb1, (mid_ch,), dtype=jnp.float32) * 0.1
    # temporal_conv: Conv1d(mid_ch, out_ch, k=3) -> weight (out, mid, 3), bias (out,)
    w_temporal = jax.random.normal(kw2, (out_ch, mid_ch, K), dtype=jnp.float32) * 0.1
    b_temporal = jax.random.normal(kb2, (out_ch,), dtype=jnp.float32) * 0.1

    out = conv3d_forward(x, w_spatial, b_spatial, w_temporal, b_temporal, k=K)
    out = jax.block_until_ready(out)

    ref = conv3d_reference(x, w_spatial, b_spatial, w_temporal, b_temporal)
    assert out.shape == (B, out_ch, D - 2, H - 2, W - 2), out.shape
    # bf16 GEMM operands with f32 accumulation -> loosened tolerance.
    assert jnp.allclose(out, ref, atol=3e-2, rtol=3e-2), "mismatch vs reference"

    print("KERNEL_OK")
</pallas_src>

<mosaic_0001>
module attributes {stable_mosaic.version = 11 : i64} {
  func.func @_fused_conv_kernel(%arg0: i32, %arg1: memref<8x208x36xbf16, #tpu.memory_space<vmem>>, %arg2: memref<36x128xbf16, #tpu.memory_space<vmem>>, %arg3: memref<1x128xf32, #tpu.memory_space<vmem>>, %arg4: memref<3x128x128xf32, #tpu.memory_space<vmem>>, %arg5: memref<1x128xf32, #tpu.memory_space<vmem>>, %arg6: memref<6x208x128xf32, #tpu.memory_space<vmem>>) attributes {dimension_semantics = [#tpu.dimension_semantics<parallel>], iteration_bounds = array<i64: 2>, scalar_prefetch = 0 : i64, scratch_operands = 0 : i64, tpu.core_type = #tpu.core_type<tc>, window_params = [{transform_indices = @transform_0, window_bounds = array<i64: 8, 208, 36>}, {pipeline_mode = #tpu.pipeline_mode<synchronous>, transform_indices = @transform_1, window_bounds = array<i64: 36, 128>}, {pipeline_mode = #tpu.pipeline_mode<synchronous>, transform_indices = @transform_2, window_bounds = array<i64: 1, 128>}, {pipeline_mode = #tpu.pipeline_mode<synchronous>, transform_indices = @transform_3, window_bounds = array<i64: 3, 128, 128>}, {pipeline_mode = #tpu.pipeline_mode<synchronous>, transform_indices = @transform_4, window_bounds = array<i64: 1, 128>}, {transform_indices = @transform_5, window_bounds = array<i64: 6, 208, 128>}]} {
    %c0 = arith.constant 0 : index
    %c0_0 = arith.constant 0 : index
    %c0_1 = arith.constant 0 : index
    %0 = vector.load %arg1[%c0, %c0_0, %c0_1] : memref<8x208x36xbf16, #tpu.memory_space<vmem>>, vector<8x208x36xbf16>
    %1 = vector.shape_cast %0 : vector<8x208x36xbf16> to vector<1664x36xbf16>
    %c0_2 = arith.constant 0 : index
    %c0_3 = arith.constant 0 : index
    %2 = vector.load %arg2[%c0_2, %c0_3] : memref<36x128xbf16, #tpu.memory_space<vmem>>, vector<36x128xbf16>
    %cst = arith.constant dense<0.000000e+00> : vector<1664x128xf32>
    %3 = tpu.matmul %1, %2, %cst {dimension_numbers = #tpu.dot_dimension_numbers<[1], [0], [0], [1], [0, 0, 1, 1], [], []>} : vector<1664x36xbf16>, vector<36x128xbf16>, vector<1664x128xf32> -> vector<1664x128xf32>
    %c0_4 = arith.constant 0 : index
    %c0_5 = arith.constant 0 : index
    %4 = vector.load %arg3[%c0_4, %c0_5] : memref<1x128xf32, #tpu.memory_space<vmem>>, vector<1x128xf32>
    %5 = vector.broadcast %4 : vector<1x128xf32> to vector<1664x128xf32>
    %6 = arith.addf %3, %5 : vector<1664x128xf32>
    %7 = vector.extract_strided_slice %6 {offsets = [0, 0], sizes = [1248, 128], strides = [1, 1]} : vector<1664x128xf32> to vector<1248x128xf32>
    %c0_6 = arith.constant 0 : index
    %c0_7 = arith.constant 0 : index
    %c0_8 = arith.constant 0 : index
    %8 = vector.load %arg4[%c0_6, %c0_7, %c0_8] : memref<3x128x128xf32, #tpu.memory_space<vmem>>, vector<1x128x128xf32>
    %9 = vector.shape_cast %8 : vector<1x128x128xf32> to vector<128x128xf32>
    %cst_9 = arith.constant dense<0.000000e+00> : vector<1248x128xf32>
    %10 = tpu.matmul %7, %9, %cst_9 {dimension_numbers = #tpu.dot_dimension_numbers<[1], [0], [0], [1], [0, 0, 1, 1], [], []>} : vector<1248x128xf32>, vector<128x128xf32>, vector<1248x128xf32> -> vector<1248x128xf32>
    %11 = vector.extract_strided_slice %6 {offsets = [208, 0], sizes = [1248, 128], strides = [1, 1]} : vector<1664x128xf32> to vector<1248x128xf32>
    %c1 = arith.constant 1 : index
    %c0_10 = arith.constant 0 : index
    %c0_11 = arith.constant 0 : index
    %12 = vector.load %arg4[%c1, %c0_10, %c0_11] : memref<3x128x128xf32, #tpu.memory_space<vmem>>, vector<1x128x128xf32>
    %13 = vector.shape_cast %12 : vector<1x128x128xf32> to vector<128x128xf32>
    %cst_12 = arith.constant dense<0.000000e+00> : vector<1248x128xf32>
    %14 = tpu.matmul %11, %13, %cst_12 {dimension_numbers = #tpu.dot_dimension_numbers<[1], [0], [0], [1], [0, 0, 1, 1], [], []>} : vector<1248x128xf32>, vector<128x128xf32>, vector<1248x128xf32> -> vector<1248x128xf32>
    %15 = arith.addf %10, %14 : vector<1248x128xf32>
    %16 = vector.extract_strided_slice %6 {offsets = [416, 0], sizes = [1248, 128], strides = [1, 1]} : vector<1664x128xf32> to vector<1248x128xf32>
    %c2 = arith.constant 2 : index
    %c0_13 = arith.constant 0 : index
    %c0_14 = arith.constant 0 : index
    %17 = vector.load %arg4[%c2, %c0_13, %c0_14] : memref<3x128x128xf32, #tpu.memory_space<vmem>>, vector<1x128x128xf32>
    %18 = vector.shape_cast %17 : vector<1x128x128xf32> to vector<128x128xf32>
    %cst_15 = arith.constant dense<0.000000e+00> : vector<1248x128xf32>
    %19 = tpu.matmul %16, %18, %cst_15 {dimension_numbers = #tpu.dot_dimension_numbers<[1], [0], [0], [1], [0, 0, 1, 1], [], []>} : vector<1248x128xf32>, vector<128x128xf32>, vector<1248x128xf32> -> vector<1248x128xf32>
    %20 = arith.addf %15, %19 : vector<1248x128xf32>
    %c0_16 = arith.constant 0 : index
    %c0_17 = arith.constant 0 : index
    %21 = vector.load %arg5[%c0_16, %c0_17] : memref<1x128xf32, #tpu.memory_space<vmem>>, vector<1x128xf32>
    %22 = vector.broadcast %21 : vector<1x128xf32> to vector<1248x128xf32>
    %23 = arith.addf %20, %22 : vector<1248x128xf32>
    %24 = vector.shape_cast %23 : vector<1248x128xf32> to vector<6x208x128xf32>
    %c0_18 = arith.constant 0 : index
    %c0_19 = arith.constant 0 : index
    %c0_20 = arith.constant 0 : index
    %25 = vector.load %arg6[%c0_18, %c0_19, %c0_20] : memref<6x208x128xf32, #tpu.memory_space<vmem>>, vector<6x208x128xf32>
    tpu.vector_store %arg6[%c0_18, %c0_19, %c0_20], %24 {strides = array<i32>} : memref<6x208x128xf32, #tpu.memory_space<vmem>>, vector<6x208x128xf32>,
    return
  }
  func.func @transform_0(%arg0: i32) -> (i32, i32, i32) {
    %c0_i32 = arith.constant 0 : i32
    %c0_i32_0 = arith.constant 0 : i32
    %c0_i32_1 = arith.constant 0 : i32
    return %c0_i32, %arg0, %c0_i32_0 : i32, i32, i32
  }
  func.func @transform_1(%arg0: i32) -> (i32, i32) {
    %c0_i32 = arith.constant 0 : i32
    %c0_i32_0 = arith.constant 0 : i32
    %c0_i32_1 = arith.constant 0 : i32
    return %c0_i32, %c0_i32_0 : i32, i32
  }
  func.func @transform_2(%arg0: i32) -> (i32, i32) {
    %c0_i32 = arith.constant 0 : i32
    %c0_i32_0 = arith.constant 0 : i32
    %c0_i32_1 = arith.constant 0 : i32
    return %c0_i32, %c0_i32_0 : i32, i32
  }
  func.func @transform_3(%arg0: i32) -> (i32, i32, i32) {
    %c0_i32 = arith.constant 0 : i32
    %c0_i32_0 = arith.constant 0 : i32
    %c0_i32_1 = arith.constant 0 : i32
    %c0_i32_2 = arith.constant 0 : i32
    return %c0_i32, %c0_i32_0, %c0_i32_1 : i32, i32, i32
  }
  func.func @transform_4(%arg0: i32) -> (i32, i32) {
    %c0_i32 = arith.constant 0 : i32
    %c0_i32_0 = arith.constant 0 : i32
    %c0_i32_1 = arith.constant 0 : i32
    return %c0_i32, %c0_i32_0 : i32, i32
  }
  func.func @transform_5(%arg0: i32) -> (i32, i32, i32) {
    %c0_i32 = arith.constant 0 : i32
    %c0_i32_0 = arith.constant 0 : i32
    %c0_i32_1 = arith.constant 0 : i32
    return %c0_i32, %arg0, %c0_i32_0 : i32, i32, i32
  }
}

</mosaic_0001>

<bundles_post_ra>
// kernel: conv3d_forward.1
= control target key start
LH: loop header
LB: loop body
LE: loop exit
PB: predicated region body
PF: predicated region fallthrough
CT: control target
= control target key end

     0   :  { %s5611_s18 = smov 0   ;;  %s5613_s19 = smov 0   ;;  %s7814_s0 = inlined_call_operand.vmem [shape: bf16[8,392,36], index: 0, kind: input, shape index: {}]   ;;  %s7815_s1 = inlined_call_operand.vmem [shape: bf16[36,128], index: 1, kind: input, shape index: {}]   ;;  %s7816_s2 = inlined_call_operand.vmem [shape: f32[1,128], index: 2, kind: input, shape index: {}]   ;;  %s7817_s3 = inlined_call_operand.vmem [shape: f32[3,128,128], index: 3, kind: input, shape index: {}]   ;;  %s7818_s4 = inlined_call_operand.vmem [shape: f32[1,128], index: 4, kind: input, shape index: {}]   ;;  %s7819_s5 = inlined_call_operand.vmem [shape: f32[6,392,128], index: 5, kind: output, shape index: {}]  }
   0x1   :  { %s5615_s20 = smov 0  }
   0x2 LB: > { %s5627_s21 = sadd.s32 4294967295, %s5515_s20   ;;  %s5630_s22 = sadd.s32 1, %s5515_s20   ;;  %s5515_s20 = sphi %s5615_s20, %s8028_s20   ;;  %s5511_s19 = sphi %s5613_s19, %s8027_s19   ;;  %s5507_s18 = sphi %s5611_s18, %s8026_s18  }
   0x3   : > { %s19_s23 = ssub.s32 %s5515_s20, %s5630_s22  ;;  %s22_s24 = sadd.s32 1, %s5511_s19 }
   0x4   : > { %p20_p0 = scmp.eq.s32.totalorder %s19_s23, 0  ;;  %p29_p1 = scmp.ne.s32.totalorder %s5511_s19, %s5507_s18 }
   0x5   : > { %p30_p2 = scmp.eq.s32.totalorder %s5515_s20, 0  ;;  %p143_p3 = scmp.eq.s32.totalorder %s5627_s21, 1 }
   0x6   : > { %s5640_s25 = scalar_select %p20_p0, %s5511_s19, %s22_s24  }
   0x7   : > { %p31_p4 = por %p30_p2, %p29_p1  ;;  %p5642_p5 = por %p143_p3, %p29_p1 }
   0x8   : > { %p4553_p6 = scmp.ge.s32.totalorder %s5515_s20, 2 }
   0xa   : > { %177 = sbr.rel (%p4553_p6) target bundleno = 89 (0x59), region = 32 }
   0xf   : > { %180 = sbr.rel (!%p31_p4) target bundleno = 89 (0x59), region = 36  ;;  %s182_s27 = sand.u32 (%p31_p4), 1, %s5511_s19  }
  0x10   : > { %s185_s28 = smul.u32 (%p31_p4), 26, %s5515_s20 }
  0x11   : > { %s5258_s29 = smul.u32 (%p31_p4), 832, %s182_s27 }
  0x12   : > { %s186_s30 = ssub.s32 (%p31_p4), 49, %s185_s28  ;;  %s5139_s6 = smul.u32 (%p31_p4), 104, %s5515_s20 }
  0x13   : > { %p187_p7 = scmp.lt.s32.totalorder (%p31_p4), %s186_s30, 26  ;;  %s5658_s11 = scalar_lea.vmem (%p31_p4), [#allocation2], %s5258_s29  }
  0x14   : > { %s5653_s9 = scalar_lea.vmem %s7814_s0, %s5139_s6  }
  0x15   : > { %s8030_s30 = smov (!%p187_p7, %s186_s30), 26 }
  0x16   : > { %s4554_s10 = sshll.u32 %s8030_s30, 5 }
  0x17   : > { %p4557_p8 = scmp.eq.s32.totalorder %s4554_s10, 0 }
  0x18   : > { %s5661_s12 = sshrl.u32 (!%p4557_p8), %s8030_s30, 2 }
  0x19   : > { %195 = sbr.rel (%p4557_p8) target bundleno = 89 (0x59), region = 40  ;;  %p4558_p9 = scmp.le.s32.totalorder (!%p4557_p8), %s5661_s12, 0 }
  0x1e   : > { %4479 = sbr.rel (%p4558_p9) target bundleno = 68 (0x44), region = 207  ;;  %s7821_s13 = smov (!%p4558_p9), %s5658_s11 }
  0x1f   : > { %s7822_s14 = smov (!%p4558_p9), %s5653_s9  ;;  %s5670_s15 = smov (!%p4558_p9), 0  }
  0x20   : > { %s5672_s16 = smov (!%p4558_p9), 0  }
  0x23 LB: >> { %v212_v0 = vld [vmem:[%s5523_s14] sm:$0xf]  ;;  %v214_v1 = vld [vmem:[%s5523_s14 + $0x4] sm:$0xf]  ;;  %v216_v2 = vld [vmem:[%s5523_s14 + $0x8] sm:$0xf]  ;;  %s5531_s16 = sphi %s5672_s16, %s206_s16   ;;  %s5527_s15 = sphi %s5670_s15, %s7825_s15   ;;  %s5523_s14 = sphi %s7822_s14, %s7824_s14   ;;  %s5519_s13 = sphi %s7821_s13, %s7823_s13  }
  0x24   : >> { %213 = vst [vmem:[%s5519_s13] sm:$0xf] %v212_v0  ;;  %v218_v3 = vld [vmem:[%s5523_s14 + $0xc] sm:$0xf]  ;;  %v220_v4 = vld [vmem:[%s5523_s14 + $0xc4] sm:$0xf]  ;;  %s276_s17 = sadd.s32 1, %s5527_s15 }
  0x25   : >> { %215 = vst [vmem:[%s5519_s13 + $0x4] sm:$0xf] %v214_v1  ;;  %v222_v5 = vld [vmem:[%s5523_s14 + $0xc8] sm:$0xf]  ;;  %v224_v6 = vld [vmem:[%s5523_s14 + $0xcc] sm:$0xf]  ;;  %p277_p10 = scmp.ge.s32.totalorder %s276_s17, %s5661_s12 }
  0x26   : >> { %217 = vst [vmem:[%s5519_s13 + $0x8] sm:$0xf] %v216_v2  ;;  %v226_v7 = vld [vmem:[%s5523_s14 + $0xd0] sm:$0xf]  ;;  %v228_v8 = vld [vmem:[%s5523_s14 + $0x188] sm:$0xf] }
  0x27   : >> { %219 = vst [vmem:[%s5519_s13 + $0xc] sm:$0xf] %v218_v3  ;;  %v230_v9 = vld [vmem:[%s5523_s14 + $0x18c] sm:$0xf]  ;;  %v232_v10 = vld [vmem:[%s5523_s14 + $0x190] sm:$0xf] }
  0x28   : >> { %221 = vst [vmem:[%s5519_s13 + $0x68] sm:$0xf] %v220_v4  ;;  %v234_v11 = vld [vmem:[%s5523_s14 + $0x194] sm:$0xf]  ;;  %v236_v12 = vld [vmem:[%s5523_s14 + $0x24c] sm:$0xf] }
  0x29   : >> { %223 = vst [vmem:[%s5519_s13 + $0x6c] sm:$0xf] %v222_v5  ;;  %v238_v13 = vld [vmem:[%s5523_s14 + $0x250] sm:$0xf]  ;;  %v240_v14 = vld [vmem:[%s5523_s14 + $0x254] sm:$0xf] }
  0x2a   : >> { %225 = vst [vmem:[%s5519_s13 + $0x70] sm:$0xf] %v224_v6  ;;  %v242_v15 = vld [vmem:[%s5523_s14 + $0x258] sm:$0xf]  ;;  %v244_v16 = vld [vmem:[%s5523_s14 + $0x310] sm:$0xf] }
  0x2b   : >> { %227 = vst [vmem:[%s5519_s13 + $0x74] sm:$0xf] %v226_v7  ;;  %v246_v17 = vld [vmem:[%s5523_s14 + $0x314] sm:$0xf]  ;;  %s8032_s17 = smov (%p277_p10, %s276_s17), 0  ;;  %s206_s16 = sadd.s32 1, %s5531_s16  }
  0x2c   : >> { %229 = vst [vmem:[%s5519_s13 + $0xd0] sm:$0xf] %v228_v8  ;;  %v248_v18 = vld [vmem:[%s5523_s14 + $0x318] sm:$0xf]  ;;  %v250_v19 = vld [vmem:[%s5523_s14 + $0x31c] sm:$0xf]  ;;  %p205_p11 = scmp.ge.s32.totalorder %s206_s16, %s5661_s12  ;;  %s7825_s15 = smov %s8032_s17 }
  0x2d   : >> { %231 = vst [vmem:[%s5519_s13 + $0xd4] sm:$0xf] %v230_v9  ;;  %s4559_s23 = sshll.u32 %s8032_s17, 4  ;;  %v252_v20 = vld [vmem:[%s5523_s14 + $0x3d4] sm:$0xf] }
  0x2e   : >> { %233 = vst [vmem:[%s5519_s13 + $0xd8] sm:$0xf] %v232_v10  ;;  %s5731_s24 = scalar_lea.vmem %s5653_s9, %s4559_s23   ;;  %s282_s27 = scalar_lea.vmem %s5658_s11, %s4559_s23 [#allocation2]   ;;  %v254_v21 = vld [vmem:[%s5523_s14 + $0x3d8] sm:$0xf]  ;;  %v256_v22 = vld [vmem:[%s5523_s14 + $0x3dc] sm:$0xf] }
  0x2f   : >> { %235 = vst [vmem:[%s5519_s13 + $0xdc] sm:$0xf] %v234_v11  ;;  %v258_v23 = vld [vmem:[%s5523_s14 + $0x3e0] sm:$0xf]  ;;  %v260_v24 = vld [vmem:[%s5523_s14 + $0x498] sm:$0xf] }
  0x30   : >> { %237 = vst [vmem:[%s5519_s13 + $0x138] sm:$0xf] %v236_v12  ;;  %v262_v25 = vld [vmem:[%s5523_s14 + $0x49c] sm:$0xf]  ;;  %v264_v26 = vld [vmem:[%s5523_s14 + $0x4a0] sm:$0xf] }
  0x31   : >> { %239 = vst [vmem:[%s5519_s13 + $0x13c] sm:$0xf] %v238_v13  ;;  %v266_v27 = vld [vmem:[%s5523_s14 + $0x4a4] sm:$0xf]  ;;  %v268_v28 = vld [vmem:[%s5523_s14 + $0x55c] sm:$0xf] }
  0x32   : >> { %241 = vst [vmem:[%s5519_s13 + $0x140] sm:$0xf] %v240_v14  ;;  %v270_v29 = vld [vmem:[%s5523_s14 + $0x560] sm:$0xf]  ;;  %v272_v30 = vld [vmem:[%s5523_s14 + $0x564] sm:$0xf] }
  0x33   : >> { %243 = vst [vmem:[%s5519_s13 + $0x144] sm:$0xf] %v242_v15  ;;  %v274_v31 = vld [vmem:[%s5523_s14 + $0x568] sm:$0xf]  ;;  %s7824_s14 = smov %s5731_s24 }
  0x34   : >> { %245 = vst [vmem:[%s5519_s13 + $0x1a0] sm:$0xf] %v244_v16 }
  0x35   : >> { %247 = vst [vmem:[%s5519_s13 + $0x1a4] sm:$0xf] %v246_v17 }
  0x36   : >> { %249 = vst [vmem:[%s5519_s13 + $0x1a8] sm:$0xf] %v248_v18 }
  0x37   : >> { %251 = vst [vmem:[%s5519_s13 + $0x1ac] sm:$0xf] %v250_v19 }
  0x38   : >> { %253 = vst [vmem:[%s5519_s13 + $0x208] sm:$0xf] %v252_v20 }
  0x39   : >> { %255 = vst [vmem:[%s5519_s13 + $0x20c] sm:$0xf] %v254_v21 }
  0x3a   : >> { %257 = vst [vmem:[%s5519_s13 + $0x210] sm:$0xf] %v256_v22 }
  0x3b   : >> { %259 = vst [vmem:[%s5519_s13 + $0x214] sm:$0xf] %v258_v23 }
  0x3c   : >> { %261 = vst [vmem:[%s5519_s13 + $0x270] sm:$0xf] %v260_v24 }
  0x3d   : >> { %263 = vst [vmem:[%s5519_s13 + $0x274] sm:$0xf] %v262_v25 }
  0x3e   : >> { %265 = vst [vmem:[%s5519_s13 + $0x278] sm:$0xf] %v264_v26 }
  0x3f   : >> { %267 = vst [vmem:[%s5519_s13 + $0x27c] sm:$0xf] %v266_v27  ;;  %208 = sbr.rel (!%p205_p11) target bundleno = 35 (0x23), region = 213 }
  0x40   : >> { %269 = vst [vmem:[%s5519_s13 + $0x2d8] sm:$0xf] %v268_v28 }
  0x41   : >> { %271 = vst [vmem:[%s5519_s13 + $0x2dc] sm:$0xf] %v270_v29 }
  0x42   : >> { %273 = vst [vmem:[%s5519_s13 + $0x2e0] sm:$0xf] %v272_v30 }
  0x43   : >> { %275 = vst [vmem:[%s5519_s13 + $0x2e4] sm:$0xf] %v274_v31  ;;  %s7823_s13 = smov %s282_s27 }
  0x44 PF: > { %s5772_s28 = sand.u32 3, %s8030_s30   ;;  %s5140_s29 = sshll.u32 %s5661_s12, 4 }
  0x45   : > { %s5776_s6 = scalar_lea.vmem %s5653_s9, %s5140_s29   ;;  %s5779_s7 = scalar_lea.vmem %s5658_s11, %s5140_s29 [#allocation2]  }
  0x46   : > { %p4564_p12 = scmp.le.s32.totalorder %s5772_s28, 0 }
  0x47   : > { %s7826_s8 = smov (!%p4564_p12), %s5779_s7  ;;  %s7827_s10 = smov (!%p4564_p12), %s5776_s6 }
  0x48   : > { %4493 = sbr.rel (%p4564_p12) target bundleno = 89 (0x59), region = 218  ;;  %s5788_s13 = smov (!%p4564_p12), 0  }
  0x49   : > { %s5790_s14 = smov (!%p4564_p12), 0  }
  0x4d LB: >> { %v299_v32 = vld [vmem:[%s5539_s10] sm:$0xf]  ;;  %v301_v33 = vld [vmem:[%s5539_s10 + $0xc4] sm:$0xf]  ;;  %v303_v34 = vld [vmem:[%s5539_s10 + $0x188] sm:$0xf]  ;;  %s5547_s14 = sphi %s5790_s14, %s293_s14   ;;  %s5543_s13 = sphi %s5788_s13, %s7829_s13   ;;  %s5539_s10 = sphi %s7827_s10, %s320_s10   ;;  %s5535_s8 = sphi %s7826_s8, %s7828_s8  }
  0x4e   : >> { %300 = vst [vmem:[%s5535_s8] sm:$0xf] %v299_v32  ;;  %v305_v35 = vld [vmem:[%s5539_s10 + $0x24c] sm:$0xf]  ;;  %s315_s30 = sadd.s32 1, %s5543_s13  ;;  %v307_v36 = vld [vmem:[%s5539_s10 + $0x310] sm:$0xf] }
  0x4f   : >> { %302 = vst [vmem:[%s5535_s8 + $0x68] sm:$0xf] %v301_v33  ;;  %p316_p13 = scmp.ge.s32.totalorder %s315_s30, %s5772_s28  ;;  %v309_v37 = vld [vmem:[%s5539_s10 + $0x3d4] sm:$0xf]  ;;  %v311_v38 = vld [vmem:[%s5539_s10 + $0x498] sm:$0xf] }
  0x50   : >> { %304 = vst [vmem:[%s5535_s8 + $0xd0] sm:$0xf] %v303_v34  ;;  %v313_v39 = vld [vmem:[%s5539_s10 + $0x55c] sm:$0xf]  ;;  %s293_s14 = sadd.s32 1, %s5547_s14  }
  0x51   : >> { %306 = vst [vmem:[%s5535_s8 + $0x138] sm:$0xf] %v305_v35  ;;  %s8034_s30 = smov (%p316_p13, %s315_s30), 0  ;;  %p292_p0 = scmp.ge.s32.totalorder %s293_s14, %s5772_s28 }
  0x52   : >> { %308 = vst [vmem:[%s5535_s8 + $0x1a0] sm:$0xf] %v307_v36  ;;  %s4565_s9 = sshll.u32 %s8034_s30, 2  ;;  %s7829_s13 = smov %s8034_s30 }
  0x53   : >> { %310 = vst [vmem:[%s5535_s8 + $0x208] sm:$0xf] %v309_v37  ;;  %s320_s10 = scalar_lea.vmem %s5776_s6, %s4565_s9   ;;  %s321_s11 = scalar_lea.vmem %s5779_s7, %s4565_s9 [#allocation2]  }
  0x54   : >> { %312 = vst [vmem:[%s5535_s8 + $0x270] sm:$0xf] %v311_v38  ;;  %295 = sbr.rel (!%p292_p0) target bundleno = 77 (0x4d), region = 224 }
  0x55   : >> { %314 = vst [vmem:[%s5535_s8 + $0x2d8] sm:$0xf] %v313_v39  ;;  %s7828_s8 = smov %s321_s11 }
  0x59 PF: > { %p4567_p1 = scmp.ge.s32.totalorder %s5515_s20, 1  ;;  %p488_p2 = scmp.lt.s32.totalorder %s5515_s20, 3 }
  0x5b   : > { %p489_p3 = pnand %p4567_p1, %p488_p2 }
  0x5d   : > { %492 = sbr.rel (%p489_p3) target bundleno = 2121 (0x849), region = 98 }
  0x62   : > { %v744_v40 = vld [vmem:[%s7815_s1 + $0x10] sm:$0x3]  ;;  %vm1597_vm0 = vcmask 1041408   ;;  %s495_s16 = sand.u32 1, %s5507_s18   ;;  %v5247_v44 = vld [vmem:[%s7815_s1 + $0x8] sm:$0xff]  ;;  %v5246_v45 = vld [vmem:[%s7815_s1] sm:$0xff] }
  0x63   : > { %v1278_v41 = vunpack.c.l.b16 %v744_v40  ;;  %s5259_s20 = smul.u32 832, %s495_s16  ;;  %vm1284_vm1 = vcmask 293888   ;;  %v2145_v56 = vld [vmem:[%s7817_s3 + $0x78] sm:$0xff]  ;;  %v2144_v57 = vld [vmem:[%s7817_s3 + $0x70] sm:$0xff]  ;;  %v2143_v58 = vld [vmem:[%s7817_s3 + $0x68] sm:$0xff] }
  0x64   : > { %v2142_v59 = vld [vmem:[%s7817_s3 + $0x60] sm:$0xff]  ;;  %v2141_v60 = vld [vmem:[%s7817_s3 + $0x58] sm:$0xff]  ;;  %v2140_v61 = vld [vmem:[%s7817_s3 + $0x50] sm:$0xff]  ;;  %s5260_s24 = smul.u32 1248, %s495_s16 }
  0x65   : > { %v1281_v42 = vpack.c.b16 %v1278_v41, %v1278_v41  ;;  %s5822_s28 = scalar_lea.vmem [#allocation2], %s5259_s20  ;;  %v2139_v62 = vld [vmem:[%s7817_s3 + $0x48] sm:$0xff]  ;;  %v2138_v1 = vld [vmem:[%s7817_s3 + $0x40] sm:$0xff]  ;;  %v2137_v2 = vld [vmem:[%s7817_s3 + $0x38] sm:$0xff]  ;;  %s4114_s15 = smul.u32 (%p5642_p5), 26, %s5627_s21 }
  0x66   : > { %v5142_v46 = vld [vmem:[%s5822_s28] sm:$0xff]  ;;  %v5235_v47 = vld [vmem:[%s5822_s28 + $0x2e8] sm:$0xff]  ;;  %v5236_v49 = vld [vmem:[%s5822_s28 + $0x2f0] sm:$0xff]  ;;  %s6414_s18 = scalar_lea.vmem [#allocation3], %s5260_s24   ;;  %s5248_s17 = smul.u32 (%p5642_p5), 208, %s5627_s21 }
  0x67   : > { %v1599_v43 = vsel %vm1597_vm0, %v1281_v42, 0  ;;  %v5143_v48 = vld [vmem:[%s5822_s28 + $0x8] sm:$0xff]  ;;  %v5144_v50 = vld [vmem:[%s5822_s28 + $0x10] sm:$0xff]  ;;  %v5237_v51 = vld [vmem:[%s5822_s28 + $0x2f8] sm:$0xff]  ;;  %s4115_s23 = ssub.s32 (%p5642_p5), 49, %s4114_s15 }
  0x68   : > { %1606 = vmatpush.bf16.msra.mxu0 %v1599_v43  ;;  %5250 = vmatpush.bf16.msra.mxu2 %v1599_v43  ;;  %v5145_v52 = vld [vmem:[%s5822_s28 + $0x18] sm:$0xff]  ;;  %v5238_v53 = vld [vmem:[%s5822_s28 + $0x300] sm:$0xff]  ;;  %v5239_v55 = vld [vmem:[%s5822_s28 + $0x308] sm:$0xff]  ;;  %p4116_p4 = scmp.lt.s32.totalorder (%p5642_p5), %s4115_s23, 26  ;;  %s7643_s27 = scalar_lea.vmem (%p5642_p5), %s7819_s5, %s5248_s17  }
  0x69   : > { %5249 = vmatpush.bf16.msra.mxu1 %v1599_v43  ;;  %5251 = vmatpush.bf16.msra.mxu3 %v1599_v43  ;;  %v5146_v54 = vld [vmem:[%s5822_s28 + $0x20] sm:$0xff]  ;;  %v5147_v63 = vld [vmem:[%s5822_s28 + $0x28] sm:$0xff]  ;;  %v5240_v0 = vld [vmem:[%s5822_s28 + $0x310] sm:$0xff] }
  0x6a   : > { %v2136_v3 = vld [vmem:[%s7817_s3 + $0x30] sm:$0xff]  ;;  %v2135_v4 = vld [vmem:[%s7817_s3 + $0x28] sm:$0xff]  ;;  %v2134_v5 = vld [vmem:[%s7817_s3 + $0x20] sm:$0xff] }
  0x6b   : > { %v2133_v6 = vld [vmem:[%s7817_s3 + $0x18] sm:$0xff]  ;;  %v2132_v7 = vld [vmem:[%s7817_s3 + $0x10] sm:$0xff]  ;;  %v2131_v10 = vld [vmem:[%s7817_s3 + $0x8] sm:$0xff] }
  0x6c   : > { %1607 = vmatpush.bf16.msra.mxu0 %v5247_v44  ;;  %5253 = vmatpush.bf16.msra.mxu2 %v5247_v44  ;;  %v5148_v8 = vld [vmem:[%s5822_s28 + $0x30] sm:$0xff]  ;;  %v5241_v9 = vld [vmem:[%s5822_s28 + $0x318] sm:$0xff]  ;;  %v2130_v11 = vld [vmem:[%s7817_s3] sm:$0xff] }
  0x6d   : > { %5252 = vmatpush.bf16.msra.mxu1 %v5247_v44  ;;  %5254 = vmatpush.bf16.msra.mxu3 %v5247_v44  ;;  %v5149_v12 = vld [vmem:[%s5822_s28 + $0x38] sm:$0xff]  ;;  %v5905_v13 = vld [vmem:[%s7816_s2] ss:$0 sm:$0xff]  ;;  %v5151_v21 = vld [vmem:[%s5822_s28 + $0x48] sm:$0xff] }
  0x6e   : > { %v5150_v14 = vld [vmem:[%s5822_s28 + $0x40] sm:$0xff]  ;;  %v5152_v28 = vld [vmem:[%s5822_s28 + $0x50] sm:$0xff]  ;;  %v5153_v35 = vld [vmem:[%s5822_s28 + $0x58] sm:$0xff] }
  0x6f   : > { %v5154_v41 = vld [vmem:[%s5822_s28 + $0x60] sm:$0xff] }
  0x70   : > { %1608 = vmatpush.bf16.msra.mxu0 %v5246_v45  ;;  %5256 = vmatpush.bf16.msra.mxu2 %v5246_v45 }
  0x71   : > { %5255 = vmatpush.bf16.msra.mxu1 %v5246_v45  ;;  %5257 = vmatpush.bf16.msra.mxu3 %v5246_v45  ;;  %v5228_v45 = vld [vmem:[%s5822_s28 + $0x2b0] sm:$0xff] }
  0x73   : > { %4992 = vmatmul.msk.bf16.vlgmr.msra.gmra.mxu0 %vm1284_vm1, %v5142_v46  ;;  %5085 = vmatmul.msk.bf16.vlgmr.msra.gmra.mxu2 %vm1284_vm1, %v5235_v47 }
  0x74   : > { %2648 = vmatpush.msrb.mxu2 %v2145_v56  ;;  %5078 = vmatmul.msk.bf16.vlgmr.msra.gmra.mxu1 %vm1284_vm1, %v5228_v45  ;;  %v5103_v45 = vld [vmem:[%s7817_s3 + $0xb8] sm:$0xff] }
  0x76   : > { %2649 = vmatpush.msrb.mxu2 %v2144_v57  ;;  %v5156_v57 = vld [vmem:[%s5822_s28 + $0x70] sm:$0xff] }
  0x78   : > { %2650 = vmatpush.msrb.mxu2 %v2143_v58 }
  0x7a   : > { %2651 = vmatpush.msrb.mxu2 %v2142_v59 }
  0x7c   : > { %2652 = vmatpush.msrb.mxu2 %v2141_v60  ;;  %v5230_v60 = vld [vmem:[%s5822_s28 + $0x2c0] sm:$0xff] }
  0x7e   : > { %2653 = vmatpush.msrb.mxu2 %v2140_v61 }
  0x80   : > { %2654 = vmatpush.msrb.mxu2 %v2139_v62 }
  0x82   : > { %2655 = vmatpush.msrb.mxu2 %v2138_v1 }
  0x83   : > { %4993 = vmatmul.msk.bf16.gmra.mxu0 %vm1284_vm1, %v5143_v48  ;;  %5086 = vmatmul.msk.bf16.gmra.mxu2 %vm1284_vm1, %v5236_v49  ;;  %v5155_v49 = vld [vmem:[%s5822_s28 + $0x68] sm:$0xff] }
  0x84   : > { %2656 = vmatpush.msrb.mxu2 %v2137_v2 }
  0x86   : > { %2657 = vmatpush.msrb.mxu2 %v2136_v3  ;;  %v5231_v3 = vld [vmem:[%s5822_s28 + $0x2c8] sm:$0xff] }
  0x88   : > { %2658 = vmatpush.msrb.mxu2 %v2135_v4 }
  0x8a   : > { %2659 = vmatpush.msrb.mxu2 %v2134_v5 }
  0x8c   : > { %2660 = vmatpush.msrb.mxu2 %v2133_v6 }
  0x8e   : > { %2661 = vmatpush.msrb.mxu2 %v2132_v7 }
  0x90   : > { %2662 = vmatpush.msrb.mxu2 %v2131_v10 }
  0x92   : > { %2663 = vmatpush.msrb.mxu2 %v2130_v11  ;;  %v5232_v11 = vld [vmem:[%s5822_s28 + $0x2d0] sm:$0xff] }
  0x93   : > { %4994 = vmatmul.msk.bf16.gmra.mxu0 %vm1284_vm1, %v5144_v50  ;;  %5087 = vmatmul.msk.bf16.gmra.mxu2 %vm1284_vm1, %v5237_v51 }
  0xa3   : > { %4995 = vmatmul.msk.bf16.gmra.mxu0 %vm1284_vm1, %v5145_v52  ;;  %5088 = vmatmul.msk.bf16.gmra.mxu2 %vm1284_vm1, %v5238_v53  ;;  %v5229_v52 = vld [vmem:[%s5822_s28 + $0x2b8] sm:$0xff] }
  0xa4   : > { %5079 = vmatmul.msk.bf16.gmra.mxu1 %vm1284_vm1, %v5229_v52  ;;  %v5100_v52 = vld [vmem:[%s7817_s3 + $0xa0] sm:$0xff] }
  0xb3   : > { %4996 = vmatmul.msk.bf16.gmra.mxu0 %vm1284_vm1, %v5146_v54  ;;  %5089 = vmatmul.msk.bf16.gmra.mxu2 %vm1284_vm1, %v5239_v55 }
  0xb4   : > { %5080 = vmatmul.msk.bf16.gmra.mxu1 %vm1284_vm1, %v5230_v60 }
  0xc3   : > { %4997 = vmatmul.msk.bf16.gmra.mxu0 %vm1284_vm1, %v5147_v63  ;;  %5090 = vmatmul.msk.bf16.gmra.mxu2 %vm1284_vm1, %v5240_v0  ;;  %v5157_v0 = vld [vmem:[%s5822_s28 + $0x78] sm:$0xff] }
  0xc4   : > { %5081 = vmatmul.msk.bf16.gmra.mxu1 %vm1284_vm1, %v5231_v3 }
  0xd3   : > { %4998 = vmatmul.msk.bf16.gmra.mxu0 %vm1284_vm1, %v5148_v8  ;;  %5091 = vmatmul.msk.bf16.gmra.mxu2 %vm1284_vm1, %v5241_v9  ;;  %v5158_v8 = vld [vmem:[%s5822_s28 + $0x80] sm:$0xff] }
  0xd4   : > { %5082 = vmatmul.msk.bf16.gmra.mxu1 %vm1284_vm1, %v5232_v11 }
  0xe3   : > { %4999 = vmatmul.msk.bf16.gmra.mxu0 %vm1284_vm1, %v5149_v12 }
  0xf0   : > { %v1610_v15 = vpop.f32.mrf.mxu0 }
  0xf1   : > { %v1611_v16 = vadd.f32 %v5905_v13, %v1610_v15 }
  0xf3   : > { %5000 = vmatmul.msk.bf16.gmra.mxu0 %vm1284_vm1, %v5150_v14  ;;  %2664 = vmatmul.f32.vlgmr.msrb.gmra.mxu2 %v1611_v16 }
  0xf6   : > { %v5910_v17 = vpop.f32.mrf.mxu2 }
  0xf7   : > { %7830 = vst [vmem:[#allocation4_spill] sm:$0xff] %v5910_v17  ;;  %v5175_v17 = vld [vmem:[%s5822_s28 + $0x108] sm:$0xff] }
  0xf8   : > { %v1612_v18 = vpop.f32.mrf.mxu0 }
  0xf9   : > { %v1613_v19 = vadd.f32 %v5905_v13, %v1612_v18  ;;  %v5159_v18 = vld [vmem:[%s5822_s28 + $0x88] sm:$0xff] }
  0xfb   : > { %2667 = vmatmul.f32.gmra.mxu2 %v1613_v19 }
  0xfe   : > { %v5913_v20 = vpop.f32.mrf.mxu2 }
  0xff   : > { %7831 = vst [vmem:[#allocation5_spill] sm:$0xff] %v5913_v20 }
 0x100   : > { %v1615_v22 = vpop.f32.mrf.mxu0 }
 0x101   : > { %v1616_v23 = vadd.f32 %v5905_v13, %v1615_v22  ;;  %v5233_v22 = vld [vmem:[%s5822_s28 + $0x2d8] sm:$0xff] }
 0x102   : > { %5083 = vmatmul.msk.bf16.gmra.mxu1 %vm1284_vm1, %v5233_v22 }
 0x103   : > { %5001 = vmatmul.msk.bf16.gmra.mxu0 %vm1284_vm1, %v5151_v21  ;;  %2670 = vmatmul.f32.gmra.mxu2 %v1616_v23  ;;  %v5111_v23 = vld [vmem:[%s7817_s3 + $0xf8] sm:$0xff] }
 0x104   : > { %2163 = vmatpush.msrb.mxu1 %v5111_v23 }
 0x106   : > { %v5918_v24 = vpop.f32.mrf.mxu2 }
 0x107   : > { %7832 = vst [vmem:[#allocation6_spill] sm:$0xff] %v5918_v24 }
 0x108   : > { %v1617_v25 = vpop.f32.mrf.mxu0 }
 0x109   : > { %v1618_v26 = vadd.f32 %v5905_v13, %v1617_v25  ;;  %v5110_v25 = vld [vmem:[%s7817_s3 + $0xf0] sm:$0xff] }
 0x10a   : > { %2164 = vmatpush.msrb.mxu1 %v5110_v25 }
 0x10b   : > { %2673 = vmatmul.f32.gmra.mxu2 %v1618_v26 }
 0x10e   : > { %v5921_v27 = vpop.f32.mrf.mxu2 }
 0x10f   : > { %7833 = vst [vmem:[#allocation7_spill] sm:$0xff] %v5921_v27 }
 0x110   : > { %v1620_v29 = vpop.f32.mrf.mxu0 }
 0x111   : > { %v1621_v30 = vadd.f32 %v5905_v13, %v1620_v29 }
 0x113   : > { %5002 = vmatmul.msk.bf16.gmra.mxu0 %vm1284_vm1, %v5152_v28  ;;  %2676 = vmatmul.f32.gmra.mxu2 %v1621_v30  ;;  %v5109_v28 = vld [vmem:[%s7817_s3 + $0xe8] sm:$0xff] }
 0x114   : > { %2165 = vmatpush.msrb.mxu1 %v5109_v28 }
 0x116   : > { %v5926_v31 = vpop.f32.mrf.mxu2 }
 0x117   : > { %7834 = vst [vmem:[#allocation8_spill] sm:$0xff] %v5926_v31 }
 0x118   : > { %v1622_v32 = vpop.f32.mrf.mxu0 }
 0x119   : > { %v1623_v33 = vadd.f32 %v5905_v13, %v1622_v32  ;;  %v5108_v32 = vld [vmem:[%s7817_s3 + $0xe0] sm:$0xff] }
 0x11a   : > { %2166 = vmatpush.msrb.mxu1 %v5108_v32  ;;  %v5164_v32 = vld [vmem:[%s5822_s28 + $0xb0] sm:$0xff] }
 0x11b   : > { %2679 = vmatmul.f32.gmra.mxu2 %v1623_v33  ;;  %v5107_v33 = vld [vmem:[%s7817_s3 + $0xd8] sm:$0xff] }
 0x11c   : > { %2167 = vmatpush.msrb.mxu1 %v5107_v33 }
 0x11e   : > { %v5929_v34 = vpop.f32.mrf.mxu2 }
 0x11f   : > { %7835 = vst [vmem:[#allocation9_spill] sm:$0xff] %v5929_v34  ;;  %v5112_v34 = vld [vmem:[%s7817_s3 + $0x100] sm:$0xff] }
 0x120   : > { %v1625_v36 = vpop.f32.mrf.mxu0 }
 0x121   : > { %v1626_v37 = vadd.f32 %v5905_v13, %v1625_v36 }
 0x123   : > { %5003 = vmatmul.msk.bf16.gmra.mxu0 %vm1284_vm1, %v5153_v35  ;;  %2682 = vmatmul.f32.gmra.mxu2 %v1626_v37  ;;  %v5106_v35 = vld [vmem:[%s7817_s3 + $0xd0] sm:$0xff] }
 0x124   : > { %v5160_v37 = vld [vmem:[%s5822_s28 + $0x90] sm:$0xff]  ;;  %2168 = vmatpush.msrb.mxu1 %v5106_v35 }
 0x126   : > { %v5934_v38 = vpop.f32.mrf.mxu2 }
 0x127   : > { %7836 = vst [vmem:[#allocation10_spill] sm:$0xff] %v5934_v38 }
 0x128   : > { %v1627_v39 = vpop.f32.mrf.mxu0 }
 0x129   : > { %v1628_v40 = vadd.f32 %v5905_v13, %v1627_v39  ;;  %v5105_v39 = vld [vmem:[%s7817_s3 + $0xc8] sm:$0xff] }
 0x12a   : > { %2169 = vmatpush.msrb.mxu1 %v5105_v39 }
 0x12b   : > { %2685 = vmatmul.f32.gmra.mxu2 %v1628_v40 }
 0x12e   : > { %v5938_v43 = vpop.f32.mrf.mxu2 }
 0x12f   : > { %7837 = vst [vmem:[#allocation11_spill] sm:$0xff] %v5938_v43 }
 0x130   : > { %v1630_v42 = vpop.f32.mrf.mxu0 }
 0x131   : > { %v1631_v44 = vadd.f32 %v5905_v13, %v1630_v42  ;;  %v5104_v42 = vld [vmem:[%s7817_s3 + $0xc0] sm:$0xff] }
 0x132   : > { %2170 = vmatpush.msrb.mxu1 %v5104_v42 }
 0x133   : > { %5004 = vmatmul.msk.bf16.gmra.mxu0 %vm1284_vm1, %v5154_v41  ;;  %2688 = vmatmul.f32.gmra.mxu2 %v1631_v44  ;;  %v5234_v44 = vld [vmem:[%s5822_s28 + $0x2e0] sm:$0xff] }
 0x134   : > { %5084 = vmatmul.msk.bf16.gmra.mxu1 %vm1284_vm1, %v5234_v44 }
 0x135   : > { %2171 = vmatpush.msrb.mxu1 %v5103_v45  ;;  %v5165_v45 = vld [vmem:[%s5822_s28 + $0xb8] sm:$0xff] }
 0x136   : > { %v5945_v48 = vpop.f32.mrf.mxu2 }
 0x137   : > { %7838 = vst [vmem:[#allocation12_spill] sm:$0xff] %v5945_v48  ;;  %v5116_v48 = vld [vmem:[%s7817_s3 + $0x120] sm:$0xff] }
 0x138   : > { %v1632_v46 = vpop.f32.mrf.mxu0 }
 0x139   : > { %v1633_v47 = vadd.f32 %v5905_v13, %v1632_v46  ;;  %v5102_v46 = vld [vmem:[%s7817_s3 + $0xb0] sm:$0xff] }
 0x13a   : > { %2172 = vmatpush.msrb.mxu1 %v5102_v46 }
 0x13b   : > { %2691 = vmatmul.f32.gmra.mxu2 %v1633_v47 }
 0x13e   : > { %v5951_v53 = vpop.f32.mrf.mxu2 }
 0x13f   : > { %7839 = vst [vmem:[#allocation13_spill] sm:$0xff] %v5951_v53  ;;  %v5173_v53 = vld [vmem:[%s5822_s28 + $0xf8] sm:$0xff] }
 0x140   : > { %v1635_v50 = vpop.f32.mrf.mxu0 }
 0x141   : > { %v1636_v51 = vadd.f32 %v5905_v13, %v1635_v50 }
 0x143   : > { %5005 = vmatmul.msk.bf16.gmra.mxu0 %vm1284_vm1, %v5155_v49  ;;  %2694 = vmatmul.f32.gmra.mxu2 %v1636_v51  ;;  %v5101_v49 = vld [vmem:[%s7817_s3 + $0xa8] sm:$0xff] }
 0x144   : > { %2173 = vmatpush.msrb.mxu1 %v5101_v49 }
 0x146   : > { %v5955_v56 = vpop.f32.mrf.mxu2  ;;  %2174 = vmatpush.msrb.mxu1 %v5100_v52 }
 0x147   : > { %7840 = vst [vmem:[#allocation14_spill] sm:$0xff] %v5955_v56 }
 0x148   : > { %v1637_v54 = vpop.f32.mrf.mxu0 }
 0x149   : > { %v1638_v55 = vadd.f32 %v5905_v13, %v1637_v54  ;;  %v5099_v54 = vld [vmem:[%s7817_s3 + $0x98] sm:$0xff] }
 0x14a   : > { %2175 = vmatpush.msrb.mxu1 %v5099_v54 }
 0x14b   : > { %2697 = vmatmul.f32.gmra.mxu2 %v1638_v55  ;;  %v5098_v55 = vld [vmem:[%s7817_s3 + $0x90] sm:$0xff] }
 0x14c   : > { %2176 = vmatpush.msrb.mxu1 %v5098_v55 }
 0x14e   : > { %v5962_v62 = vpop.f32.mrf.mxu2 }
 0x14f   : > { %7841 = vst [vmem:[#allocation15_spill] sm:$0xff] %v5962_v62  ;;  %v5118_v62 = vld [vmem:[%s7817_s3 + $0x130] sm:$0xff] }
 0x150   : > { %v1640_v58 = vpop.f32.mrf.mxu0 }
 0x151   : > { %v1641_v59 = vadd.f32 %v5905_v13, %v1640_v58  ;;  %v5161_v58 = vld [vmem:[%s5822_s28 + $0x98] sm:$0xff] }
 0x153   : > { %5006 = vmatmul.msk.bf16.gmra.mxu0 %vm1284_vm1, %v5156_v57  ;;  %2700 = vmatmul.f32.gmra.mxu2 %v1641_v59  ;;  %v5097_v59 = vld [vmem:[%s7817_s3 + $0x88] sm:$0xff] }
 0x154   : > { %2177 = vmatpush.msrb.mxu1 %v5097_v59 }
 0x156   : > { %v5968_v4 = vpop.f32.mrf.mxu2 }
 0x157   : > { %7842 = vst [vmem:[#allocation16_spill] sm:$0xff] %v5968_v4  ;;  %v5120_v4 = vld [vmem:[%s7817_s3 + $0x140] sm:$0xff] }
 0x158   : > { %v1642_v61 = vpop.f32.mrf.mxu0 }
 0x159   : > { %v1643_v63 = vadd.f32 %v5905_v13, %v1642_v61 }
 0x15b   : > { %2703 = vmatmul.f32.gmra.mxu2 %v1643_v63  ;;  %v5096_v63 = vld [vmem:[%s7817_s3 + $0x80] sm:$0xff] }
 0x15c   : > { %2178 = vmatpush.msrb.mxu1 %v5096_v63 }
 0x15e   : > { %v5973_v7 = vpop.f32.mrf.mxu2 }
 0x15f   : > { %7843 = vst [vmem:[#allocation17_spill] sm:$0xff] %v5973_v7  ;;  %v5172_v7 = vld [vmem:[%s5822_s28 + $0xf0] sm:$0xff] }
 0x160   : > { %v1645_v1 = vpop.f32.mrf.mxu0 }
 0x161   : > { %v1646_v2 = vadd.f32 %v5905_v13, %v1645_v1 }
 0x163   : > { %5007 = vmatmul.msk.bf16.gmra.mxu0 %vm1284_vm1, %v5157_v0  ;;  %2706 = vmatmul.f32.gmra.mxu2 %v1646_v2 }
 0x168   : > { %v1647_v5 = vpop.f32.mrf.mxu0 }
 0x169   : > { %v1648_v6 = vadd.f32 %v5905_v13, %v1647_v5  ;;  %v5162_v5 = vld [vmem:[%s5822_s28 + $0xa0] sm:$0xff] }
 0x16b   : > { %2709 = vmatmul.f32.gmra.mxu2 %v1648_v6 }
 0x170   : > { %v1650_v9 = vpop.f32.mrf.mxu0 }
 0x171   : > { %v1651_v10 = vadd.f32 %v5905_v13, %v1650_v9  ;;  %v6064_v9 = vpop.f32.mrf.mxu1 }
 0x172   : > { %7844 = vst [vmem:[#allocation18_spill] sm:$0xff] %v6064_v9 }
 0x173   : > { %5008 = vmatmul.msk.bf16.gmra.mxu0 %vm1284_vm1, %v5158_v8  ;;  %2712 = vmatmul.f32.gmra.mxu2 %v1651_v10 }
 0x176   : > { %v5980_v12 = vpop.f32.mrf.mxu2 }
 0x178   : > { %v1652_v14 = vpop.f32.mrf.mxu0 }
 0x179   : > { %v1653_v15 = vadd.f32 %v5905_v13, %v1652_v14 }
 0x17b   : > { %2715 = vmatmul.f32.gmra.mxu2 %v1653_v15 }
 0x17e   : > { %v5983_v16 = vpop.f32.mrf.mxu2 }
 0x180   : > { %v1655_v19 = vpop.f32.mrf.mxu0 }
 0x181   : > { %v1656_v21 = vadd.f32 %v5905_v13, %v1655_v19  ;;  %v5163_v19 = vld [vmem:[%s5822_s28 + $0xa8] sm:$0xff] }
 0x183   : > { %5009 = vmatmul.msk.bf16.gmra.mxu0 %vm1284_vm1, %v5159_v18  ;;  %2718 = vmatmul.f32.gmra.mxu2 %v1656_v21  ;;  %v6071_v18 = vpop.f32.mrf.mxu1 }
 0x184   : > { %7845 = vst [vmem:[#allocation19_spill] sm:$0xff] %v6071_v18 }
 0x186   : > { %v5996_v26 = vpop.f32.mrf.mxu2 }
 0x188   : > { %v1657_v29 = vpop.f32.mrf.mxu0 }
 0x189   : > { %v1658_v30 = vadd.f32 %v5905_v13, %v1657_v29 }
 0x18b   : > { %2721 = vmatmul.f32.gmra.mxu2 %v1658_v30  ;;  %v6078_v28 = vpop.f32.mrf.mxu1 }
 0x18c   : > { %7846 = vst [vmem:[#allocation20_spill] sm:$0xff] %v6078_v28 }
 0x18e   : > { %v6011_v36 = vpop.f32.mrf.mxu2 }
 0x190   : > { %v1660_v40 = vpop.f32.mrf.mxu0 }
 0x191   : > { %v1661_v41 = vadd.f32 %v5905_v13, %v1660_v40 }
 0x193   : > { %5010 = vmatmul.msk.bf16.gmra.mxu0 %vm1284_vm1, %v5160_v37  ;;  %2724 = vmatmul.f32.gmra.mxu2 %v1661_v41  ;;  %v6085_v37 = vpop.f32.mrf.mxu1 }
 0x194   : > { %7847 = vst [vmem:[#allocation21_spill] sm:$0xff] %v6085_v37  ;;  %v5178_v37 = vld [vmem:[%s5822_s28 + $0x120] sm:$0xff] }
 0x196   : > { %v6030_v47 = vpop.f32.mrf.mxu2 }
 0x198   : > { %v1662_v50 = vpop.f32.mrf.mxu0 }
 0x199   : > { %v1663_v51 = vadd.f32 %v5905_v13, %v1662_v50 }
 0x19b   : > { %2727 = vmatmul.f32.gmra.mxu2 %v1663_v51  ;;  %v6091_v42 = vpop.f32.mrf.mxu1 }
 0x19c   : > { %7848 = vst [vmem:[#allocation22_spill] sm:$0xff] %v6091_v42 }
 0x19e   : > { %v6045_v57 = vpop.f32.mrf.mxu2 }
 0x1a0   : > { %v1665_v60 = vpop.f32.mrf.mxu0 }
 0x1a1   : > { %v1666_v61 = vadd.f32 %v5905_v13, %v1665_v60 }
 0x1a3   : > { %5011 = vmatmul.msk.bf16.gmra.mxu0 %vm1284_vm1, %v5161_v58  ;;  %2730 = vmatmul.f32.gmra.mxu2 %v1666_v61  ;;  %v6100_v51 = vpop.f32.mrf.mxu1  ;;  %v5166_v58 = vld [vmem:[%s5822_s28 + $0xc0] sm:$0xff] }
 0x1a4   : > { %7849 = vst [vmem:[#allocation23_spill] sm:$0xff] %v6100_v51 }
 0x1a6   : > { %v6056_v0 = vpop.f32.mrf.mxu2 }
 0x1a8   : > { %v1667_v1 = vpop.f32.mrf.mxu0 }
 0x1a9   : > { %v1668_v2 = vadd.f32 %v5905_v13, %v1667_v1 }
 0x1ab   : > { %2733 = vmatmul.f32.gmra.mxu2 %v1668_v2  ;;  %v6106_v60 = vpop.f32.mrf.mxu1 }
 0x1ac   : > { %7850 = vst [vmem:[#allocation24_spill] sm:$0xff] %v6106_v60 }
 0x1ae   : > { %v6059_v3 = vpop.f32.mrf.mxu2 }
 0x1b0   : > { %v1670_v6 = vpop.f32.mrf.mxu0 }
 0x1b1   : > { %v1671_v8 = vadd.f32 %v5905_v13, %v1670_v6 }
 0x1b3   : > { %5012 = vmatmul.msk.bf16.gmra.mxu0 %vm1284_vm1, %v5162_v5  ;;  %2736 = vmatmul.f32.gmra.mxu2 %v1671_v8  ;;  %v6113_v5 = vpop.f32.mrf.mxu1  ;;  %v5167_v8 = vld [vmem:[%s5822_s28 + $0xc8] sm:$0xff] }
 0x1b4   : > { %7851 = vst [vmem:[#allocation25_spill] sm:$0xff] %v6113_v5  ;;  %v5177_v5 = vld [vmem:[%s5822_s28 + $0x118] sm:$0xff] }
 0x1b6   : > { %v6066_v10 = vpop.f32.mrf.mxu2 }
 0x1b8   : > { %v1672_v11 = vpop.f32.mrf.mxu0 }
 0x1b9   : > { %v1673_v14 = vadd.f32 %v5905_v13, %v1672_v11 }
 0x1bb   : > { %2739 = vmatmul.f32.gmra.mxu2 %v1673_v14 }
 0x1be   : > { %v6069_v15 = vpop.f32.mrf.mxu2 }
 0x1c0   : > { %v1675_v21 = vpop.f32.mrf.mxu0 }
 0x1c1   : > { %v1676_v22 = vadd.f32 %v5905_v13, %v1675_v21 }
 0x1c3   : > { %5013 = vmatmul.msk.bf16.gmra.mxu0 %vm1284_vm1, %v5163_v19  ;;  %2179 = vmatmul.f32.vlgmr.msrb.gmra.mxu1 %v1676_v22  ;;  %v6120_v19 = vpop.f32.mrf.mxu1 }
 0x1c4   : > { %2742 = vmatmul.f32.gmra.mxu2 %v1676_v22  ;;  %7852 = vst [vmem:[#allocation26_spill] sm:$0xff] %v6120_v19 }
 0x1c6   : > { %v6076_v23 = vpop.f32.mrf.mxu2 }
 0x1c8   : > { %v1677_v25 = vpop.f32.mrf.mxu0 }
 0x1c9   : > { %v1678_v29 = vadd.f32 %v5905_v13, %v1677_v25 }
 0x1cb   : > { %2182 = vmatmul.f32.gmra.mxu1 %v1678_v29 }
 0x1cc   : > { %2745 = vmatmul.f32.gmra.mxu2 %v1678_v29 }
 0x1ce   : > { %v6081_v30 = vpop.f32.mrf.mxu2 }
 0x1d0   : > { %v1680_v33 = vpop.f32.mrf.mxu0 }
 0x1d1   : > { %v1681_v35 = vadd.f32 %v5905_v13, %v1680_v33  ;;  %v5168_v33 = vld [vmem:[%s5822_s28 + $0xd0] sm:$0xff] }
 0x1d3   : > { %5014 = vmatmul.msk.bf16.gmra.mxu0 %vm1284_vm1, %v5164_v32  ;;  %2185 = vmatmul.f32.gmra.mxu1 %v1681_v35  ;;  %v6127_v32 = vpop.f32.mrf.mxu1 }
 0x1d4   : > { %2748 = vmatmul.f32.gmra.mxu2 %v1681_v35  ;;  %7853 = vst [vmem:[#allocation27_spill] sm:$0xff] %v6127_v32 }
 0x1d6   : > { %v6088_v39 = vpop.f32.mrf.mxu2 }
 0x1d8   : > { %v1682_v40 = vpop.f32.mrf.mxu0 }
 0x1d9   : > { %v1683_v41 = vadd.f32 %v5905_v13, %v1682_v40 }
 0x1db   : > { %2188 = vmatmul.f32.gmra.mxu1 %v1683_v41 }
 0x1dc   : > { %2751 = vmatmul.f32.gmra.mxu2 %v1683_v41 }
 0x1de   : > { %v6093_v44 = vpop.f32.mrf.mxu2 }
 0x1e0   : > { %v1685_v46 = vpop.f32.mrf.mxu0 }
 0x1e1   : > { %v1686_v49 = vadd.f32 %v5905_v13, %v1685_v46  ;;  %v6134_v46 = vpop.f32.mrf.mxu1 }
 0x1e2   : > { %7854 = vst [vmem:[#allocation28_spill] sm:$0xff] %v6134_v46 }
 0x1e3   : > { %5015 = vmatmul.msk.bf16.gmra.mxu0 %vm1284_vm1, %v5165_v45  ;;  %2191 = vmatmul.f32.gmra.mxu1 %v1686_v49 }
 0x1e4   : > { %2754 = vmatmul.f32.gmra.mxu2 %v1686_v49 }
 0x1e6   : > { %v6098_v50 = vpop.f32.mrf.mxu2 }
 0x1e8   : > { %v1687_v52 = vpop.f32.mrf.mxu0 }
 0x1e9   : > { %v1688_v54 = vadd.f32 %v5905_v13, %v1687_v52 }
 0x1eb   : > { %2194 = vmatmul.f32.gmra.mxu1 %v1688_v54 }
 0x1ec   : > { %2757 = vmatmul.f32.gmra.mxu2 %v1688_v54  ;;  %v5169_v54 = vld [vmem:[%s5822_s28 + $0xd8] sm:$0xff] }
 0x1ee   : > { %v6103_v55 = vpop.f32.mrf.mxu2 }
 0x1f0   : > { %v1690_v59 = vpop.f32.mrf.mxu0 }
 0x1f1   : > { %v1691_v61 = vadd.f32 %v5905_v13, %v1690_v59 }
 0x1f3   : > { %5016 = vmatmul.msk.bf16.gmra.mxu0 %vm1284_vm1, %v5166_v58  ;;  %2197 = vmatmul.f32.gmra.mxu1 %v1691_v61 }
 0x1f4   : > { %2760 = vmatmul.f32.gmra.mxu2 %v1691_v61  ;;  %v6141_v61 = vpop.f32.mrf.mxu1 }
 0x1f5   : > { %7855 = vst [vmem:[#allocation29_spill] sm:$0xff] %v6141_v61  ;;  %v5176_v61 = vld [vmem:[%s5822_s28 + $0x110] sm:$0xff] }
 0x1f6   : > { %v6110_v63 = vpop.f32.mrf.mxu2 }
 0x1f8   : > { %v1692_v1 = vpop.f32.mrf.mxu0 }
 0x1f9   : > { %v1693_v2 = vadd.f32 %v5905_v13, %v1692_v1 }
 0x1fb   : > { %2200 = vmatmul.f32.gmra.mxu1 %v1693_v2 }
 0x1fc   : > { %2763 = vmatmul.f32.gmra.mxu2 %v1693_v2 }
 0x1fe   : > { %v6115_v6 = vpop.f32.mrf.mxu2 }
 0x200   : > { %v1695_v11 = vpop.f32.mrf.mxu0 }
 0x201   : > { %v1696_v14 = vadd.f32 %v5905_v13, %v1695_v11  ;;  %v5242_v11 = vld [vmem:[%s5822_s28 + $0x320] sm:$0xff] }
 0x202   : > { %5092 = vmatmul.msk.bf16.vlgmr.msra.gmra.mxu3 %vm1284_vm1, %v5242_v11 }
 0x203   : > { %5017 = vmatmul.msk.bf16.gmra.mxu0 %vm1284_vm1, %v5167_v8  ;;  %2203 = vmatmul.f32.gmra.mxu1 %v1696_v14 }
 0x204   : > { %2766 = vmatmul.f32.gmra.mxu2 %v1696_v14  ;;  %v6149_v14 = vpop.f32.mrf.mxu1 }
 0x205   : > { %7856 = vst [vmem:[#allocation30_spill] sm:$0xff] %v6149_v14 }
 0x206   : > { %v6122_v21 = vpop.f32.mrf.mxu2 }
 0x208   : > { %v1697_v22 = vpop.f32.mrf.mxu0 }
 0x209   : > { %v1698_v25 = vadd.f32 %v5905_v13, %v1697_v22 }
 0x20b   : > { %2206 = vmatmul.f32.gmra.mxu1 %v1698_v25 }
 0x20c   : > { %2769 = vmatmul.f32.gmra.mxu2 %v1698_v25  ;;  %v5170_v25 = vld [vmem:[%s5822_s28 + $0xe0] sm:$0xff] }
 0x20e   : > { %v6125_v29 = vpop.f32.mrf.mxu2 }
 0x210   : > { %v1700_v35 = vpop.f32.mrf.mxu0 }
 0x211   : > { %v1701_v40 = vadd.f32 %v5905_v13, %v1700_v35 }
 0x213   : > { %5018 = vmatmul.msk.bf16.gmra.mxu0 %vm1284_vm1, %v5168_v33  ;;  %2209 = vmatmul.f32.gmra.mxu1 %v1701_v40 }
 0x214   : > { %2772 = vmatmul.f32.gmra.mxu2 %v1701_v40  ;;  %v5127_v40 = vld [vmem:[%s7817_s3 + $0x178] sm:$0xff] }
 0x215   : > { %3150 = vmatpush.msrb.mxu3 %v5127_v40 }
 0x216   : > { %v6132_v41 = vpop.f32.mrf.mxu2 }
 0x218   : > { %v1702_v45 = vpop.f32.mrf.mxu0 }
 0x219   : > { %v1703_v49 = vadd.f32 %v5905_v13, %v1702_v45 }
 0x21b   : > { %2212 = vmatmul.f32.gmra.mxu1 %v1703_v49 }
 0x21c   : > { %2775 = vmatmul.f32.gmra.mxu2 %v1703_v49  ;;  %v6161_v49 = vpop.f32.mrf.mxu1 }
 0x21d   : > { %7857 = vst [vmem:[#allocation31_spill] sm:$0xff] %v6161_v49 }
 0x21e   : > { %v6137_v52 = vpop.f32.mrf.mxu2 }
 0x220   : > { %v1705_v58 = vpop.f32.mrf.mxu0 }
 0x221   : > { %v1706_v59 = vadd.f32 %v5905_v13, %v1705_v58 }
 0x223   : > { %5019 = vmatmul.msk.bf16.gmra.mxu0 %vm1284_vm1, %v5169_v54  ;;  %2215 = vmatmul.f32.gmra.mxu1 %v1706_v59  ;;  %v5126_v54 = vld [vmem:[%s7817_s3 + $0x170] sm:$0xff] }
 0x224   : > { %2778 = vmatmul.f32.gmra.mxu2 %v1706_v59  ;;  %3151 = vmatpush.msrb.mxu3 %v5126_v54 }
 0x226   : > { %v6144_v1 = vpop.f32.mrf.mxu2 }
 0x228   : > { %v1707_v2 = vpop.f32.mrf.mxu0 }
 0x229   : > { %v1708_v8 = vadd.f32 %v5905_v13, %v1707_v2  ;;  %v5243_v2 = vld [vmem:[%s5822_s28 + $0x328] sm:$0xff] }
 0x22a   : > { %5093 = vmatmul.msk.bf16.gmra.mxu3 %vm1284_vm1, %v5243_v2  ;;  %v5122_v2 = vld [vmem:[%s7817_s3 + $0x150] sm:$0xff] }
 0x22b   : > { %2218 = vmatmul.f32.gmra.mxu1 %v1708_v8 }
 0x22c   : > { %2781 = vmatmul.f32.gmra.mxu2 %v1708_v8  ;;  %v5125_v8 = vld [vmem:[%s7817_s3 + $0x168] sm:$0xff] }
 0x22d   : > { %3152 = vmatpush.msrb.mxu3 %v5125_v8 }
 0x22e   : > { %v6151_v22 = vpop.f32.mrf.mxu2 }
 0x230   : > { %v1710_v33 = vpop.f32.mrf.mxu0 }
 0x231   : > { %v1711_v35 = vadd.f32 %v5905_v13, %v1710_v33  ;;  %v5124_v33 = vld [vmem:[%s7817_s3 + $0x160] sm:$0xff] }
 0x232   : > { %3153 = vmatpush.msrb.mxu3 %v5124_v33 }
 0x233   : > { %5020 = vmatmul.msk.bf16.gmra.mxu0 %vm1284_vm1, %v5170_v25  ;;  %2221 = vmatmul.f32.gmra.mxu1 %v1711_v35  ;;  %v5171_v25 = vld [vmem:[%s5822_s28 + $0xe8] sm:$0xff] }
 0x234   : > { %2784 = vmatmul.f32.gmra.mxu2 %v1711_v35 }
 0x236   : > { %v6159_v45 = vpop.f32.mrf.mxu2 }
 0x238   : > { %v1712_v58 = vpop.f32.mrf.mxu0 }
 0x239   : > { %v1713_v59 = vadd.f32 %v5905_v13, %v1712_v58  ;;  %v5123_v58 = vld [vmem:[%s7817_s3 + $0x158] sm:$0xff] }
 0x23a   : > { %3154 = vmatpush.msrb.mxu3 %v5123_v58 }
 0x23b   : > { %2224 = vmatmul.f32.gmra.mxu1 %v1713_v59 }
 0x23c   : > { %2787 = vmatmul.f32.gmra.mxu2 %v1713_v59  ;;  %3155 = vmatpush.msrb.mxu3 %v5122_v2 }
 0x23e   : > { %v6172_v11 = vpop.f32.mrf.mxu2 }
 0x240   : > { %v1715_v35 = vpop.f32.mrf.mxu0  ;;  %v6178_v40 = vpop.f32.mrf.mxu1 }
 0x241   : > { %v1716_v54 = vadd.f32 %v5905_v13, %v1715_v35  ;;  %v5244_v35 = vld [vmem:[%s5822_s28 + $0x330] sm:$0xff] }
 0x242   : > { %5094 = vmatmul.msk.bf16.gmra.mxu3 %vm1284_vm1, %v5244_v35 }
 0x243   : > { %5021 = vmatmul.msk.bf16.gmra.mxu0 %vm1284_vm1, %v5171_v25  ;;  %2227 = vmatmul.f32.gmra.mxu1 %v1716_v54 }
 0x244   : > { %2790 = vmatmul.f32.gmra.mxu2 %v1716_v54  ;;  %v5121_v54 = vld [vmem:[%s7817_s3 + $0x148] sm:$0xff] }
 0x245   : > { %3156 = vmatpush.msrb.mxu3 %v5121_v54 }
 0x247   : > { %v6185_v59 = vpop.f32.mrf.mxu2  ;;  %3157 = vmatpush.msrb.mxu3 %v5120_v4 }
 0x248   : > { %7858 = vst [vmem:[#allocation32_spill] sm:$0xff] %v6185_v59  ;;  %v1717_v8 = vpop.f32.mrf.mxu0  ;;  %v6190_v33 = vpop.f32.mrf.mxu1 }
 0x249   : > { %v1718_v25 = vadd.f32 %v5905_v13, %v1717_v8 }
 0x24b   : > { %2230 = vmatmul.f32.gmra.mxu1 %v1718_v25 }
 0x24c   : > { %2793 = vmatmul.f32.gmra.mxu2 %v1718_v25  ;;  %v5119_v25 = vld [vmem:[%s7817_s3 + $0x138] sm:$0xff] }
 0x24d   : > { %3158 = vmatpush.msrb.mxu3 %v5119_v25 }
 0x24f   : > { %v6198_v58 = vpop.f32.mrf.mxu2  ;;  %3159 = vmatpush.msrb.mxu3 %v5118_v62 }
 0x250   : > { %7859 = vst [vmem:[#allocation33_spill] sm:$0xff] %v6198_v58  ;;  %v1720_v2 = vpop.f32.mrf.mxu0  ;;  %v6204_v8 = vpop.f32.mrf.mxu1 }
 0x251   : > { %v1721_v35 = vadd.f32 %v5905_v13, %v1720_v2  ;;  %v5245_v2 = vld [vmem:[%s5822_s28 + $0x338] sm:$0xff] }
 0x252   : > { %5095 = vmatmul.msk.bf16.gmra.mxu3 %vm1284_vm1, %v5245_v2 }
 0x253   : > { %5022 = vmatmul.msk.bf16.gmra.mxu0 %vm1284_vm1, %v5172_v7  ;;  %2233 = vmatmul.f32.gmra.mxu1 %v1721_v35 }
 0x254   : > { %2796 = vmatmul.f32.gmra.mxu2 %v1721_v35  ;;  %v5117_v35 = vld [vmem:[%s7817_s3 + $0x128] sm:$0xff] }
 0x255   : > { %3160 = vmatpush.msrb.mxu3 %v5117_v35  ;;  %v5114_v35 = vld [vmem:[%s7817_s3 + $0x110] sm:$0xff] }
 0x257   : > { %v6211_v54 = vpop.f32.mrf.mxu2  ;;  %3161 = vmatpush.msrb.mxu3 %v5116_v48 }
 0x258   : > { %7860 = vst [vmem:[#allocation34_spill] sm:$0xff] %v6211_v54  ;;  %v1722_v56 = vpop.f32.mrf.mxu0  ;;  %v6216_v4 = vpop.f32.mrf.mxu1 }
 0x259   : > { %v1723_v7 = vadd.f32 %v5905_v13, %v1722_v56 }
 0x25b   : > { %2236 = vmatmul.f32.gmra.mxu1 %v1723_v7 }
 0x25c   : > { %2799 = vmatmul.f32.gmra.mxu2 %v1723_v7  ;;  %v5115_v7 = vld [vmem:[%s7817_s3 + $0x118] sm:$0xff] }
 0x25d   : > { %3162 = vmatpush.msrb.mxu3 %v5115_v7  ;;  %v5174_v7 = vld [vmem:[%s5822_s28 + $0x100] sm:$0xff] }
 0x25f   : > { %v6224_v25 = vpop.f32.mrf.mxu2  ;;  %3163 = vmatpush.msrb.mxu3 %v5114_v35 }
 0x260   : > { %7861 = vst [vmem:[#allocation35_spill] sm:$0xff] %v6224_v25  ;;  %v1725_v62 = vpop.f32.mrf.mxu0  ;;  %v6230_v43 = vpop.f32.mrf.mxu1 }
 0x261   : > { %v1726_v56 = vadd.f32 %v5905_v13, %v1725_v62  ;;  %v5113_v62 = vld [vmem:[%s7817_s3 + $0x108] sm:$0xff] }
 0x262   : > { %3164 = vmatpush.msrb.mxu3 %v5113_v62 }
 0x263   : > { %5023 = vmatmul.msk.bf16.gmra.mxu0 %vm1284_vm1, %v5173_v53  ;;  %2239 = vmatmul.f32.gmra.mxu1 %v1726_v56 }
 0x264   : > { %2802 = vmatmul.f32.gmra.mxu2 %v1726_v56  ;;  %3165 = vmatpush.msrb.mxu3 %v5112_v34 }
 0x267   : > { %v6237_v2 = vpop.f32.mrf.mxu2 }
 0x268   : > { %7862 = vst [vmem:[#allocation36_spill] sm:$0xff] %v6237_v2  ;;  %v1727_v38 = vpop.f32.mrf.mxu0  ;;  %v6242_v48 = vpop.f32.mrf.mxu1 }
 0x269   : > { %v1728_v53 = vadd.f32 %v5905_v13, %v1727_v38 }
 0x26b   : > { %2242 = vmatmul.f32.gmra.mxu1 %v1728_v53 }
 0x26c   : > { %2805 = vmatmul.f32.gmra.mxu2 %v1728_v53 }
 0x26f   : > { %v6248_v56 = vpop.f32.mrf.mxu2 }
 0x270   : > { %7863 = vst [vmem:[#allocation37_spill] sm:$0xff] %v6248_v56  ;;  %v1730_v31 = vpop.f32.mrf.mxu0  ;;  %v6254_v27 = vpop.f32.mrf.mxu1 }
 0x271   : > { %v1731_v38 = vadd.f32 %v5905_v13, %v1730_v31 }
 0x273   : > { %5024 = vmatmul.msk.bf16.gmra.mxu0 %vm1284_vm1, %v5174_v7  ;;  %2245 = vmatmul.f32.gmra.mxu1 %v1731_v38 }
 0x274   : > { %2808 = vmatmul.f32.gmra.mxu2 %v1731_v38 }
 0x277   : > { %v6258_v35 = vpop.f32.mrf.mxu2 }
 0x278   : > { %7864 = vst [vmem:[#allocation38_spill] sm:$0xff] %v6258_v35  ;;  %v1732_v53 = vpop.f32.mrf.mxu0  ;;  %v6260_v62 = vpop.f32.mrf.mxu1 }
 0x279   : > { %v1733_v24 = vadd.f32 %v5905_v13, %v1732_v53 }
 0x27b   : > { %2248 = vmatmul.f32.gmra.mxu1 %v1733_v24 }
 0x27c   : > { %2811 = vmatmul.f32.gmra.mxu2 %v1733_v24 }
 0x27f   : > { %v6263_v20 = vpop.f32.mrf.mxu2 }
 0x280   : > { %7865 = vst [vmem:[#allocation39_spill] sm:$0xff] %v6263_v20  ;;  %v1735_v34 = vpop.f32.mrf.mxu0  ;;  %v6266_v49 = vpop.f32.mrf.mxu1 }
 0x281   : > { %v1736_v31 = vadd.f32 %v5905_v13, %v1735_v34 }
 0x283   : > { %5025 = vmatmul.msk.bf16.gmra.mxu0 %vm1284_vm1, %v5175_v17  ;;  %2251 = vmatmul.f32.gmra.mxu1 %v1736_v31 }
 0x284   : > { %2814 = vmatmul.f32.gmra.mxu2 %v1736_v31 }
 0x287   : > { %v6270_v7 = vpop.f32.mrf.mxu2 }
 0x288   : > { %7866 = vst [vmem:[#allocation40_spill] sm:$0xff] %v6270_v7  ;;  %v1737_v38 = vpop.f32.mrf.mxu0  ;;  %v6272_v14 = vpop.f32.mrf.mxu1 }
 0x289   : > { %v1738_v24 = vadd.f32 %v5905_v13, %v1737_v38 }
 0x28b   : > { %2254 = vmatmul.f32.gmra.mxu1 %v1738_v24 }
 0x28c   : > { %2817 = vmatmul.f32.gmra.mxu2 %v1738_v24 }
 0x28f   : > { %v6275_v53 = vpop.f32.mrf.mxu2 }
 0x290   : > { %7867 = vst [vmem:[#allocation41_spill] sm:$0xff] %v6275_v53  ;;  %v1740_v46 = vpop.f32.mrf.mxu0  ;;  %v6278_v32 = vpop.f32.mrf.mxu1 }
 0x291   : > { %v1741_v17 = vadd.f32 %v5905_v13, %v1740_v46 }
 0x293   : > { %5026 = vmatmul.msk.bf16.gmra.mxu0 %vm1284_vm1, %v5176_v61  ;;  %2257 = vmatmul.f32.gmra.mxu1 %v1741_v17 }
 0x294   : > { %2820 = vmatmul.f32.gmra.mxu2 %v1741_v17  ;;  %3166 = vmatmul.f32.vlgmr.msrb.gmra.mxu3 %v1741_v17 }
 0x297   : > { %v6282_v34 = vpop.f32.mrf.mxu2 }
 0x298   : > { %7868 = vst [vmem:[#allocation42_spill] sm:$0xff] %v6282_v34  ;;  %v1742_v31 = vpop.f32.mrf.mxu0  ;;  %v6284_v38 = vpop.f32.mrf.mxu1 }
 0x299   : > { %v1743_v24 = vadd.f32 %v5905_v13, %v1742_v31 }
 0x29b   : > { %2260 = vmatmul.f32.gmra.mxu1 %v1743_v24 }
 0x29c   : > { %2823 = vmatmul.f32.gmra.mxu2 %v1743_v24  ;;  %3169 = vmatmul.f32.gmra.mxu3 %v1743_v24 }
 0x29f   : > { %v6287_v19 = vpop.f32.mrf.mxu2 }
 0x2a0   : > { %7869 = vst [vmem:[#allocation43_spill] sm:$0xff] %v6287_v19  ;;  %v1745_v46 = vpop.f32.mrf.mxu0  ;;  %v6290_v60 = vpop.f32.mrf.mxu1 }
 0x2a1   : > { %v1746_v61 = vadd.f32 %v5905_v13, %v1745_v46 }
 0x2a3   : > { %5027 = vmatmul.msk.bf16.gmra.mxu0 %vm1284_vm1, %v5177_v5  ;;  %2263 = vmatmul.f32.gmra.mxu1 %v1746_v61 }
 0x2a4   : > { %2826 = vmatmul.f32.gmra.mxu2 %v1746_v61  ;;  %3172 = vmatmul.f32.gmra.mxu3 %v1746_v61 }
 0x2a7   : > { %v6294_v17 = vpop.f32.mrf.mxu2 }
 0x2a8   : > { %7870 = vst [vmem:[#allocation44_spill] sm:$0xff] %v6294_v17  ;;  %v1747_v31 = vpop.f32.mrf.mxu0  ;;  %v6296_v51 = vpop.f32.mrf.mxu1 }
 0x2a9   : > { %v1748_v24 = vadd.f32 %v5905_v13, %v1747_v31 }
 0x2ab   : > { %2266 = vmatmul.f32.gmra.mxu1 %v1748_v24 }
 0x2ac   : > { %2829 = vmatmul.f32.gmra.mxu2 %v1748_v24  ;;  %3175 = vmatmul.f32.gmra.mxu3 %v1748_v24 }
 0x2af   : > { %v6299_v42 = vpop.f32.mrf.mxu2 }
 0x2b0   : > { %7871 = vst [vmem:[#allocation45_spill] sm:$0xff] %v6299_v42  ;;  %v1750_v46 = vpop.f32.mrf.mxu0  ;;  %v6302_v28 = vpop.f32.mrf.mxu1  ;;  %v5179_v42 = vld [vmem:[%s5822_s28 + $0x128] sm:$0xff] }
 0x2b1   : > { %v1751_v5 = vadd.f32 %v5905_v13, %v1750_v46 }
 0x2b3   : > { %5028 = vmatmul.msk.bf16.gmra.mxu0 %vm1284_vm1, %v5178_v37  ;;  %2269 = vmatmul.f32.gmra.mxu1 %v1751_v5 }
 0x2b4   : > { %2832 = vmatmul.f32.gmra.mxu2 %v1751_v5  ;;  %3178 = vmatmul.f32.gmra.mxu3 %v1751_v5 }
 0x2b7   : > { %v6306_v61 = vpop.f32.mrf.mxu2 }
 0x2b8   : > { %7872 = vst [vmem:[#allocation46_spill] sm:$0xff] %v6306_v61  ;;  %v1752_v31 = vpop.f32.mrf.mxu0  ;;  %v6308_v18 = vpop.f32.mrf.mxu1 }
 0x2b9   : > { %v1753_v24 = vadd.f32 %v5905_v13, %v1752_v31 }
 0x2bb   : > { %2272 = vmatmul.f32.gmra.mxu1 %v1753_v24 }
 0x2bc   : > { %2835 = vmatmul.f32.gmra.mxu2 %v1753_v24  ;;  %3181 = vmatmul.f32.gmra.mxu3 %v1753_v24 }
 0x2bf   : > { %v6311_v9 = vpop.f32.mrf.mxu2 }
 0x2c0   : > { %7873 = vst [vmem:[#allocation47_spill] sm:$0xff] %v6311_v9  ;;  %v1755_v17 = vpop.f32.mrf.mxu0  ;;  %v6314_v46 = vpop.f32.mrf.mxu1 }
 0x2c1   : > { %v1756_v37 = vadd.f32 %v5905_v13, %v1755_v17  ;;  %v6323_v9 = vpop.f32.mrf.mxu3  ;;  %v5180_v17 = vld [vmem:[%s5822_s28 + $0x130] sm:$0xff] }
 0x2c2   : > { %7875 = vst [vmem:[#allocation49_spill] sm:$0xff] %v6323_v9 }
 0x2c3   : > { %5029 = vmatmul.msk.bf16.gmra.mxu0 %vm1284_vm1, %v5179_v42  ;;  %2275 = vmatmul.f32.gmra.mxu1 %v1756_v37 }
 0x2c4   : > { %2838 = vmatmul.f32.gmra.mxu2 %v1756_v37  ;;  %3184 = vmatmul.f32.gmra.mxu3 %v1756_v37 }
 0x2c7   : > { %v6318_v5 = vpop.f32.mrf.mxu2 }
 0x2c8   : > { %7874 = vst [vmem:[#allocation48_spill] sm:$0xff] %v6318_v5  ;;  %v1757_v31 = vpop.f32.mrf.mxu0  ;;  %v6320_v61 = vpop.f32.mrf.mxu1 }
 0x2c9   : > { %v1758_v24 = vadd.f32 %v5905_v13, %v1757_v31  ;;  %v6332_v5 = vpop.f32.mrf.mxu3 }
 0x2ca   : > { %7877 = vst [vmem:[#allocation51_spill] sm:$0xff] %v6332_v5 }
 0x2cb   : > { %2278 = vmatmul.f32.gmra.mxu1 %v1758_v24 }
 0x2cc   : > { %2841 = vmatmul.f32.gmra.mxu2 %v1758_v24  ;;  %3187 = vmatmul.f32.gmra.mxu3 %v1758_v24 }
 0x2cf   : > { %v6325_v19 = vpop.f32.mrf.mxu2 }
 0x2d0   : > { %7876 = vst [vmem:[#allocation50_spill] sm:$0xff] %v6325_v19  ;;  %v1760_v34 = vpop.f32.mrf.mxu0  ;;  %v6328_v42 = vpop.f32.mrf.mxu1 }
 0x2d1   : > { %v1761_v37 = vadd.f32 %v5905_v13, %v1760_v34  ;;  %v6339_v53 = vpop.f32.mrf.mxu3 }
 0x2d2   : > { %7879 = vst [vmem:[#allocation53_spill] sm:$0xff] %v6339_v53 }
 0x2d3   : > { %5030 = vmatmul.msk.bf16.gmra.mxu0 %vm1284_vm1, %v5180_v17  ;;  %2281 = vmatmul.f32.gmra.mxu1 %v1761_v37  ;;  %v5181_v17 = vld [vmem:[%s5822_s28 + $0x138] sm:$0xff] }
 0x2d4   : > { %2844 = vmatmul.f32.gmra.mxu2 %v1761_v37  ;;  %3190 = vmatmul.f32.gmra.mxu3 %v1761_v37 }
 0x2d7   : > { %v6334_v31 = vpop.f32.mrf.mxu2 }
 0x2d8   : > { %7878 = vst [vmem:[#allocation52_spill] sm:$0xff] %v6334_v31  ;;  %v1762_v9 = vpop.f32.mrf.mxu0  ;;  %v6336_v24 = vpop.f32.mrf.mxu1 }
 0x2d9   : > { %v1763_v19 = vadd.f32 %v5905_v13, %v1762_v9  ;;  %v6348_v9 = vpop.f32.mrf.mxu3 }
 0x2da   : > { %7881 = vst [vmem:[#allocation55_spill] sm:$0xff] %v6348_v9 }
 0x2db   : > { %2284 = vmatmul.f32.gmra.mxu1 %v1763_v19 }
 0x2dc   : > { %2847 = vmatmul.f32.gmra.mxu2 %v1763_v19  ;;  %3193 = vmatmul.f32.gmra.mxu3 %v1763_v19 }
 0x2df   : > { %v6341_v34 = vpop.f32.mrf.mxu2 }
 0x2e0   : > { %7880 = vst [vmem:[#allocation54_spill] sm:$0xff] %v6341_v34  ;;  %v1765_v7 = vpop.f32.mrf.mxu0  ;;  %v6344_v5 = vpop.f32.mrf.mxu1 }
 0x2e1   : > { %v1766_v37 = vadd.f32 %v5905_v13, %v1765_v7  ;;  %v5182_v7 = vld [vmem:[%s5822_s28 + $0x140] sm:$0xff] }
 0x2e3   : > { %5031 = vmatmul.msk.bf16.gmra.mxu0 %vm1284_vm1, %v5181_v17  ;;  %2287 = vmatmul.f32.gmra.mxu1 %v1766_v37 }
 0x2e4   : > { %2850 = vmatmul.f32.gmra.mxu2 %v1766_v37  ;;  %3196 = vmatmul.f32.gmra.mxu3 %v1766_v37  ;;  %v6360_v37 = vpop.f32.mrf.mxu3 }
 0x2e5   : > { %7884 = vst [vmem:[#allocation58_spill] sm:$0xff] %v6360_v37 }
 0x2e7   : > { %v6350_v31 = vpop.f32.mrf.mxu2 }
 0x2e8   : > { %7882 = vst [vmem:[#allocation56_spill] sm:$0xff] %v6350_v31  ;;  %v1767_v19 = vpop.f32.mrf.mxu0  ;;  %v6352_v53 = vpop.f32.mrf.mxu1 }
 0x2e9   : > { %v1768_v34 = vadd.f32 %v5905_v13, %v1767_v19 }
 0x2eb   : > { %2290 = vmatmul.f32.gmra.mxu1 %v1768_v34 }
 0x2ec   : > { %2853 = vmatmul.f32.gmra.mxu2 %v1768_v34  ;;  %3199 = vmatmul.f32.gmra.mxu3 %v1768_v34  ;;  %v6369_v56 = vpop.f32.mrf.mxu3 }
 0x2ed   : > { %7886 = vst [vmem:[#allocation60_spill] sm:$0xff] %v6369_v56 }
 0x2ef   : > { %v6355_v20 = vpop.f32.mrf.mxu2 }
 0x2f0   : > { %7883 = vst [vmem:[#allocation57_spill] sm:$0xff] %v6355_v20  ;;  %v1770_v35 = vpop.f32.mrf.mxu0  ;;  %v6358_v17 = vpop.f32.mrf.mxu1 }
 0x2f1   : > { %v1771_v9 = vadd.f32 %v5905_v13, %v1770_v35  ;;  %v5183_v35 = vld [vmem:[%s5822_s28 + $0x148] sm:$0xff] }
 0x2f3   : > { %5032 = vmatmul.msk.bf16.gmra.mxu0 %vm1284_vm1, %v5182_v7  ;;  %2293 = vmatmul.f32.gmra.mxu1 %v1771_v9 }
 0x2f4   : > { %2856 = vmatmul.f32.gmra.mxu2 %v1771_v9  ;;  %3202 = vmatmul.f32.gmra.mxu3 %v1771_v9  ;;  %v6379_v9 = vld [vmem:[%s7816_s2] ss:$0 sm:$0xff] }
 0x2f7   : > { %v6364_v19 = vpop.f32.mrf.mxu2 }
 0x2f8   : > { %7885 = vst [vmem:[#allocation59_spill] sm:$0xff] %v6364_v19  ;;  %v1772_v31 = vpop.f32.mrf.mxu0  ;;  %v6366_v34 = vpop.f32.mrf.mxu1 }
 0x2f9   : > { %v1773_v20 = vadd.f32 %v5905_v13, %v1772_v31  ;;  %v6383_v13 = vpop.f32.mrf.mxu3 }
 0x2fa   : > { %7888 = vst [vmem:[#allocation62_spill] sm:$0xff] %v6383_v13 }
 0x2fb   : > { %2296 = vmatmul.f32.gmra.mxu1 %v1773_v20 }
 0x2fc   : > { %2859 = vmatmul.f32.gmra.mxu2 %v1773_v20  ;;  %3205 = vmatmul.f32.gmra.mxu3 %v1773_v20 }
 0x2ff   : > { %v6371_v37 = vpop.f32.mrf.mxu2 }
 0x300   : > { %7887 = vst [vmem:[#allocation61_spill] sm:$0xff] %v6371_v37  ;;  %v1775_v2 = vpop.f32.mrf.mxu0  ;;  %v6374_v7 = vpop.f32.mrf.mxu1 }
 0x301   : > { %v1776_v19 = vadd.f32 %v6379_v9, %v1775_v2  ;;  %v6390_v25 = vpop.f32.mrf.mxu3 }
 0x302   : > { %7890 = vst [vmem:[#allocation64_spill] sm:$0xff] %v6390_v25 }
 0x303   : > { %5033 = vmatmul.msk.bf16.gmra.mxu0 %vm1284_vm1, %v5183_v35  ;;  %2299 = vmatmul.f32.gmra.mxu1 %v1776_v19  ;;  %v5184_v35 = vld [vmem:[%s5822_s28 + $0x150] sm:$0xff] }
 0x304   : > { %2862 = vmatmul.f32.gmra.mxu2 %v1776_v19  ;;  %3208 = vmatmul.f32.gmra.mxu3 %v1776_v19 }
 0x307   : > { %v6385_v20 = vpop.f32.mrf.mxu2 }
 0x308   : > { %7889 = vst [vmem:[#allocation63_spill] sm:$0xff] %v6385_v20  ;;  %v1777_v31 = vpop.f32.mrf.mxu0  ;;  %v6387_v56 = vpop.f32.mrf.mxu1 }
 0x309   : > { %v1778_v37 = vadd.f32 %v6379_v9, %v1777_v31  ;;  %v6406_v31 = vld [vmem:[%s7818_s4] ss:$0 sm:$0xff] }
 0x30b   : > { %2302 = vmatmul.f32.gmra.mxu1 %v1778_v37 }
 0x30c   : > { %2865 = vmatmul.f32.gmra.mxu2 %v1778_v37  ;;  %3211 = vmatmul.f32.gmra.mxu3 %v1778_v37  ;;  %v2666_v37 = vadd.f32 %v5980_v12, %v6178_v40  ;;  %v2669_v12 = vadd.f32 %v5983_v16, %v6190_v33  ;;  %v2672_v16 = vadd.f32 %v5996_v26, %v6204_v8 }
 0x30f   : > { %v6392_v2 = vpop.f32.mrf.mxu2 }
 0x310   : > { %7891 = vst [vmem:[#allocation65_spill] sm:$0xff] %v6392_v2  ;;  %v1780_v54 = vpop.f32.mrf.mxu0  ;;  %v6395_v19 = vpop.f32.mrf.mxu1 }
 0x311   : > { %v1781_v13 = vadd.f32 %v6379_v9, %v1780_v54 }
 0x313   : > { %5034 = vmatmul.msk.bf16.gmra.mxu0 %vm1284_vm1, %v5184_v35  ;;  %2305 = vmatmul.f32.gmra.mxu1 %v1781_v13 }
 0x314   : > { %2868 = vmatmul.f32.gmra.mxu2 %v1781_v13  ;;  %3214 = vmatmul.f32.gmra.mxu3 %v1781_v13 }
 0x317   : > { %v6408_v25 = vpop.f32.mrf.mxu2  ;;  %v3167_v2 = vpop.f32.mrf.mxu3 }
 0x318   : > { %7892 = vst [vmem:[#allocation66_spill] sm:$0xff] %v6408_v25  ;;  %v3635_v54 = vadd.f32 %v3167_v2, %v2666_v37  ;;  %v1782_v20 = vpop.f32.mrf.mxu0  ;;  %v6410_v35 = vpop.f32.mrf.mxu1  ;;  %v5185_v37 = vld [vmem:[%s5822_s28 + $0x158] sm:$0xff] }
 0x319   : > { %7893 = vst [vmem:[#allocation67_spill] sm:$0xff] %v6410_v35  ;;  %v1783_v13 = vadd.f32 %v6379_v9, %v1782_v20 }
 0x31a   : > { %v3795_v58 = vadd.f32 %v6406_v31, %v3635_v54 }
 0x31b   : > { %2308 = vmatmul.f32.gmra.mxu1 %v1783_v13 }
 0x31c   : > { %3951 = vst [vmem:[%s6414_s18] sm:$0xff] %v3795_v58  ;;  %2871 = vmatmul.f32.gmra.mxu2 %v1783_v13  ;;  %3217 = vmatmul.f32.gmra.mxu3 %v1783_v13 }
 0x31f   : > { %v6419_v40 = vpop.f32.mrf.mxu2  ;;  %v3170_v2 = vpop.f32.mrf.mxu3 }
 0x320   : > { %v3636_v25 = vadd.f32 %v3170_v2, %v2669_v12  ;;  %v1785_v35 = vpop.f32.mrf.mxu0  ;;  %v6422_v20 = vpop.f32.mrf.mxu1 }
 0x321   : > { %v1786_v54 = vadd.f32 %v6379_v9, %v1785_v35 }
 0x322   : > { %v3796_v59 = vadd.f32 %v6406_v31, %v3636_v25 }
 0x323   : > { %5035 = vmatmul.msk.bf16.gmra.mxu0 %vm1284_vm1, %v5185_v37  ;;  %2311 = vmatmul.f32.gmra.mxu1 %v1786_v54  ;;  %v5186_v37 = vld [vmem:[%s5822_s28 + $0x160] sm:$0xff] }
 0x324   : > { %3952 = vst [vmem:[%s6414_s18 + $0x8] sm:$0xff] %v3796_v59  ;;  %2874 = vmatmul.f32.gmra.mxu2 %v1786_v54  ;;  %3220 = vmatmul.f32.gmra.mxu3 %v1786_v54  ;;  %v2675_v59 = vadd.f32 %v6011_v36, %v6216_v4  ;;  %v2678_v36 = vadd.f32 %v6030_v47, %v6230_v43 }
 0x327   : > { %v6430_v33 = vpop.f32.mrf.mxu2  ;;  %v3173_v58 = vpop.f32.mrf.mxu3 }
 0x328   : > { %v3637_v13 = vadd.f32 %v3173_v58, %v2672_v16  ;;  %v1787_v12 = vpop.f32.mrf.mxu0  ;;  %v6432_v2 = vpop.f32.mrf.mxu1 }
 0x329   : > { %v1788_v35 = vadd.f32 %v6379_v9, %v1787_v12 }
 0x32a   : > { %v3797_v25 = vadd.f32 %v6406_v31, %v3637_v13 }
 0x32b   : > { %2314 = vmatmul.f32.gmra.mxu1 %v1788_v35 }
 0x32c   : > { %3953 = vst [vmem:[%s6414_s18 + $0x10] sm:$0xff] %v3797_v25  ;;  %2877 = vmatmul.f32.gmra.mxu2 %v1788_v35  ;;  %3223 = vmatmul.f32.gmra.mxu3 %v1788_v35 }
 0x32f   : > { %v6439_v26 = vpop.f32.mrf.mxu2  ;;  %v3176_v8 = vpop.f32.mrf.mxu3 }
 0x330   : > { %v3638_v54 = vadd.f32 %v3176_v8, %v2675_v59  ;;  %v1790_v16 = vpop.f32.mrf.mxu0  ;;  %v6442_v58 = vpop.f32.mrf.mxu1 }
 0x331   : > { %v1791_v12 = vadd.f32 %v6379_v9, %v1790_v16 }
 0x332   : > { %v3798_v13 = vadd.f32 %v6406_v31, %v3638_v54 }
 0x333   : > { %5036 = vmatmul.msk.bf16.gmra.mxu0 %vm1284_vm1, %v5186_v37  ;;  %2317 = vmatmul.f32.gmra.mxu1 %v1791_v12  ;;  %v2681_v37 = vadd.f32 %v6045_v57, %v6242_v48  ;;  %v2684_v57 = vadd.f32 %v6056_v0, %v6254_v27 }
 0x334   : > { %3954 = vst [vmem:[%s6414_s18 + $0x18] sm:$0xff] %v3798_v13  ;;  %2880 = vmatmul.f32.gmra.mxu2 %v1791_v12  ;;  %3226 = vmatmul.f32.gmra.mxu3 %v1791_v12  ;;  %v5187_v12 = vld [vmem:[%s5822_s28 + $0x168] sm:$0xff] }
 0x337   : > { %v6450_v4 = vpop.f32.mrf.mxu2  ;;  %v3179_v35 = vpop.f32.mrf.mxu3 }
 0x338   : > { %v3639_v25 = vadd.f32 %v3179_v35, %v2678_v36  ;;  %v1792_v59 = vpop.f32.mrf.mxu0  ;;  %v6452_v8 = vpop.f32.mrf.mxu1 }
 0x339   : > { %v1793_v16 = vadd.f32 %v6379_v9, %v1792_v59 }
 0x33a   : > { %v3799_v54 = vadd.f32 %v6406_v31, %v3639_v25 }
 0x33b   : > { %2320 = vmatmul.f32.gmra.mxu1 %v1793_v16 }
 0x33c   : > { %3955 = vst [vmem:[%s6414_s18 + $0x20] sm:$0xff] %v3799_v54  ;;  %2883 = vmatmul.f32.gmra.mxu2 %v1793_v16  ;;  %3229 = vmatmul.f32.gmra.mxu3 %v1793_v16 }
 0x33f   : > { %v6459_v43 = vpop.f32.mrf.mxu2  ;;  %v3182_v47 = vpop.f32.mrf.mxu3 }
 0x340   : > { %v3640_v13 = vadd.f32 %v3182_v47, %v2681_v37  ;;  %v1795_v36 = vpop.f32.mrf.mxu0  ;;  %v6462_v35 = vpop.f32.mrf.mxu1 }
 0x341   : > { %v1796_v59 = vadd.f32 %v6379_v9, %v1795_v36 }
 0x342   : > { %v3800_v25 = vadd.f32 %v6406_v31, %v3640_v13 }
 0x343   : > { %5037 = vmatmul.msk.bf16.gmra.mxu0 %vm1284_vm1, %v5187_v12  ;;  %2323 = vmatmul.f32.gmra.mxu1 %v1796_v59  ;;  %v2687_v12 = vadd.f32 %v6059_v3, %v6260_v62  ;;  %v2690_v3 = vadd.f32 %v6066_v10, %v6266_v49 }
 0x344   : > { %3956 = vst [vmem:[%s6414_s18 + $0x28] sm:$0xff] %v3800_v25  ;;  %2886 = vmatmul.f32.gmra.mxu2 %v1796_v59  ;;  %3232 = vmatmul.f32.gmra.mxu3 %v1796_v59  ;;  %v5188_v59 = vld [vmem:[%s5822_s28 + $0x170] sm:$0xff] }
 0x347   : > { %v6470_v48 = vpop.f32.mrf.mxu2  ;;  %v3185_v16 = vpop.f32.mrf.mxu3 }
 0x348   : > { %v3641_v54 = vadd.f32 %v3185_v16, %v2684_v57  ;;  %v1797_v37 = vpop.f32.mrf.mxu0  ;;  %v6472_v47 = vpop.f32.mrf.mxu1 }
 0x349   : > { %v1798_v36 = vadd.f32 %v6379_v9, %v1797_v37 }
 0x34a   : > { %v3801_v13 = vadd.f32 %v6406_v31, %v3641_v54 }
 0x34b   : > { %2326 = vmatmul.f32.gmra.mxu1 %v1798_v36 }
 0x34c   : > { %3957 = vst [vmem:[%s6414_s18 + $0x30] sm:$0xff] %v3801_v13  ;;  %2889 = vmatmul.f32.gmra.mxu2 %v1798_v36  ;;  %3235 = vmatmul.f32.gmra.mxu3 %v1798_v36 }
 0x34f   : > { %v6479_v27 = vpop.f32.mrf.mxu2  ;;  %v3188_v0 = vpop.f32.mrf.mxu3 }
 0x350   : > { %v3642_v25 = vadd.f32 %v3188_v0, %v2687_v12  ;;  %v1800_v57 = vpop.f32.mrf.mxu0  ;;  %v6482_v16 = vpop.f32.mrf.mxu1 }
 0x351   : > { %v1801_v37 = vadd.f32 %v6379_v9, %v1800_v57 }
 0x352   : > { %v3802_v54 = vadd.f32 %v6406_v31, %v3642_v25 }
 0x353   : > { %5038 = vmatmul.msk.bf16.gmra.mxu0 %vm1284_vm1, %v5188_v59  ;;  %2329 = vmatmul.f32.gmra.mxu1 %v1801_v37  ;;  %v2693_v59 = vadd.f32 %v6069_v15, %v6272_v14  ;;  %v2696_v15 = vadd.f32 %v6076_v23, %v6278_v32 }
 0x354   : > { %3958 = vst [vmem:[%s6414_s18 + $0x38] sm:$0xff] %v3802_v54  ;;  %2892 = vmatmul.f32.gmra.mxu2 %v1801_v37  ;;  %3238 = vmatmul.f32.gmra.mxu3 %v1801_v37  ;;  %v5189_v37 = vld [vmem:[%s5822_s28 + $0x178] sm:$0xff] }
 0x357   : > { %v6490_v62 = vpop.f32.mrf.mxu2  ;;  %v3191_v36 = vpop.f32.mrf.mxu3 }
 0x358   : > { %v3643_v13 = vadd.f32 %v3191_v36, %v2690_v3  ;;  %v1802_v12 = vpop.f32.mrf.mxu0  ;;  %v6492_v0 = vpop.f32.mrf.mxu1 }
 0x359   : > { %v1803_v57 = vadd.f32 %v6379_v9, %v1802_v12 }
 0x35a   : > { %v3803_v25 = vadd.f32 %v6406_v31, %v3643_v13 }
 0x35b   : > { %2332 = vmatmul.f32.gmra.mxu1 %v1803_v57 }
 0x35c   : > { %3959 = vst [vmem:[%s6414_s18 + $0x40] sm:$0xff] %v3803_v25  ;;  %2895 = vmatmul.f32.gmra.mxu2 %v1803_v57  ;;  %3241 = vmatmul.f32.gmra.mxu3 %v1803_v57 }
 0x35f   : > { %v6499_v10 = vpop.f32.mrf.mxu2  ;;  %v3194_v49 = vpop.f32.mrf.mxu3 }
 0x360   : > { %v3644_v54 = vadd.f32 %v3194_v49, %v2693_v59  ;;  %v1805_v3 = vpop.f32.mrf.mxu0  ;;  %v6502_v36 = vpop.f32.mrf.mxu1 }
 0x361   : > { %v1806_v12 = vadd.f32 %v6379_v9, %v1805_v3 }
 0x362   : > { %v3804_v13 = vadd.f32 %v6406_v31, %v3644_v54 }
 0x363   : > { %5039 = vmatmul.msk.bf16.gmra.mxu0 %vm1284_vm1, %v5189_v37  ;;  %2335 = vmatmul.f32.gmra.mxu1 %v1806_v12  ;;  %v2699_v37 = vadd.f32 %v6081_v30, %v6284_v38  ;;  %v2702_v30 = vadd.f32 %v6088_v39, %v6290_v60 }
 0x364   : > { %3960 = vst [vmem:[%s6414_s18 + $0x48] sm:$0xff] %v3804_v13  ;;  %2898 = vmatmul.f32.gmra.mxu2 %v1806_v12  ;;  %3244 = vmatmul.f32.gmra.mxu3 %v1806_v12  ;;  %v5190_v12 = vld [vmem:[%s5822_s28 + $0x180] sm:$0xff] }
 0x367   : > { %v6510_v14 = vpop.f32.mrf.mxu2  ;;  %v3197_v57 = vpop.f32.mrf.mxu3 }
 0x368   : > { %v3645_v25 = vadd.f32 %v3197_v57, %v2696_v15  ;;  %v1807_v59 = vpop.f32.mrf.mxu0  ;;  %v6512_v49 = vpop.f32.mrf.mxu1 }
 0x369   : > { %v1808_v3 = vadd.f32 %v6379_v9, %v1807_v59 }
 0x36a   : > { %v3805_v54 = vadd.f32 %v6406_v31, %v3645_v25 }
 0x36b   : > { %2338 = vmatmul.f32.gmra.mxu1 %v1808_v3 }
 0x36c   : > { %3961 = vst [vmem:[%s6414_s18 + $0x50] sm:$0xff] %v3805_v54  ;;  %2901 = vmatmul.f32.gmra.mxu2 %v1808_v3  ;;  %3247 = vmatmul.f32.gmra.mxu3 %v1808_v3 }
 0x36f   : > { %v6519_v23 = vpop.f32.mrf.mxu2  ;;  %v3200_v32 = vpop.f32.mrf.mxu3 }
 0x370   : > { %v3646_v13 = vadd.f32 %v3200_v32, %v2699_v37  ;;  %v1810_v15 = vpop.f32.mrf.mxu0  ;;  %v6522_v57 = vpop.f32.mrf.mxu1 }
 0x371   : > { %v1811_v59 = vadd.f32 %v6379_v9, %v1810_v15 }
 0x372   : > { %v3806_v25 = vadd.f32 %v6406_v31, %v3646_v13 }
 0x373   : > { %5040 = vmatmul.msk.bf16.gmra.mxu0 %vm1284_vm1, %v5190_v12  ;;  %2341 = vmatmul.f32.gmra.mxu1 %v1811_v59  ;;  %v2705_v12 = vadd.f32 %v6093_v44, %v6296_v51  ;;  %v2708_v44 = vadd.f32 %v6098_v50, %v6302_v28 }
 0x374   : > { %3962 = vst [vmem:[%s6414_s18 + $0x58] sm:$0xff] %v3806_v25  ;;  %2904 = vmatmul.f32.gmra.mxu2 %v1811_v59  ;;  %3250 = vmatmul.f32.gmra.mxu3 %v1811_v59  ;;  %v5191_v59 = vld [vmem:[%s5822_s28 + $0x188] sm:$0xff] }
 0x377   : > { %v6530_v38 = vpop.f32.mrf.mxu2  ;;  %v3203_v3 = vpop.f32.mrf.mxu3 }
 0x378   : > { %v3647_v54 = vadd.f32 %v3203_v3, %v2702_v30  ;;  %v1812_v37 = vpop.f32.mrf.mxu0  ;;  %v6532_v32 = vpop.f32.mrf.mxu1 }
 0x379   : > { %v1813_v15 = vadd.f32 %v6379_v9, %v1812_v37 }
 0x37a   : > { %v3807_v13 = vadd.f32 %v6406_v31, %v3647_v54 }
 0x37b   : > { %2344 = vmatmul.f32.gmra.mxu1 %v1813_v15 }
 0x37c   : > { %3963 = vst [vmem:[%s6414_s18 + $0x60] sm:$0xff] %v3807_v13  ;;  %2907 = vmatmul.f32.gmra.mxu2 %v1813_v15  ;;  %3253 = vmatmul.f32.gmra.mxu3 %v1813_v15 }
 0x37f   : > { %v6539_v39 = vpop.f32.mrf.mxu2  ;;  %v3206_v60 = vpop.f32.mrf.mxu3 }
 0x380   : > { %v3648_v25 = vadd.f32 %v3206_v60, %v2705_v12  ;;  %v1815_v30 = vpop.f32.mrf.mxu0  ;;  %v6542_v3 = vpop.f32.mrf.mxu1 }
 0x381   : > { %v1816_v37 = vadd.f32 %v6379_v9, %v1815_v30 }
 0x382   : > { %v3808_v54 = vadd.f32 %v6406_v31, %v3648_v25 }
 0x383   : > { %5041 = vmatmul.msk.bf16.gmra.mxu0 %vm1284_vm1, %v5191_v59  ;;  %2347 = vmatmul.f32.gmra.mxu1 %v1816_v37  ;;  %v2711_v59 = vadd.f32 %v6103_v55, %v6308_v18  ;;  %v2714_v18 = vadd.f32 %v6110_v63, %v6314_v46 }
 0x384   : > { %3964 = vst [vmem:[%s6414_s18 + $0x68] sm:$0xff] %v3808_v54  ;;  %2910 = vmatmul.f32.gmra.mxu2 %v1816_v37  ;;  %3256 = vmatmul.f32.gmra.mxu3 %v1816_v37  ;;  %v5192_v37 = vld [vmem:[%s5822_s28 + $0x190] sm:$0xff] }
 0x387   : > { %v6550_v51 = vpop.f32.mrf.mxu2  ;;  %v3209_v15 = vpop.f32.mrf.mxu3 }
 0x388   : > { %v3649_v13 = vadd.f32 %v3209_v15, %v2708_v44  ;;  %v1817_v12 = vpop.f32.mrf.mxu0  ;;  %v6552_v60 = vpop.f32.mrf.mxu1 }
 0x389   : > { %v1818_v30 = vadd.f32 %v6379_v9, %v1817_v12 }
 0x38a   : > { %v3809_v25 = vadd.f32 %v6406_v31, %v3649_v13 }
 0x38b   : > { %2350 = vmatmul.f32.gmra.mxu1 %v1818_v30 }
 0x38c   : > { %3965 = vst [vmem:[%s6414_s18 + $0x70] sm:$0xff] %v3809_v25  ;;  %2913 = vmatmul.f32.gmra.mxu2 %v1818_v30  ;;  %3259 = vmatmul.f32.gmra.mxu3 %v1818_v30 }
 0x38f   : > { %v6559_v28 = vpop.f32.mrf.mxu2  ;;  %v3212_v50 = vpop.f32.mrf.mxu3 }
 0x390   : > { %v3650_v54 = vadd.f32 %v3212_v50, %v2711_v59  ;;  %v1820_v44 = vpop.f32.mrf.mxu0  ;;  %v6562_v15 = vpop.f32.mrf.mxu1 }
 0x391   : > { %v1821_v12 = vadd.f32 %v6379_v9, %v1820_v44 }
 0x392   : > { %v3810_v13 = vadd.f32 %v6406_v31, %v3650_v54 }
 0x393   : > { %5042 = vmatmul.msk.bf16.gmra.mxu0 %vm1284_vm1, %v5192_v37  ;;  %2353 = vmatmul.f32.gmra.mxu1 %v1821_v12  ;;  %v2717_v37 = vadd.f32 %v6115_v6, %v6320_v61  ;;  %v2720_v6 = vadd.f32 %v6122_v21, %v6328_v42 }
 0x394   : > { %3966 = vst [vmem:[%s6414_s18 + $0x78] sm:$0xff] %v3810_v13  ;;  %2916 = vmatmul.f32.gmra.mxu2 %v1821_v12  ;;  %3262 = vmatmul.f32.gmra.mxu3 %v1821_v12  ;;  %v5193_v12 = vld [vmem:[%s5822_s28 + $0x198] sm:$0xff] }
 0x397   : > { %v6570_v55 = vpop.f32.mrf.mxu2  ;;  %v3215_v30 = vpop.f32.mrf.mxu3 }
 0x398   : > { %v3651_v25 = vadd.f32 %v3215_v30, %v2714_v18  ;;  %v1822_v59 = vpop.f32.mrf.mxu0  ;;  %v6572_v50 = vpop.f32.mrf.mxu1 }
 0x399   : > { %v1823_v44 = vadd.f32 %v6379_v9, %v1822_v59 }
 0x39a   : > { %v3811_v54 = vadd.f32 %v6406_v31, %v3651_v25 }
 0x39b   : > { %2356 = vmatmul.f32.gmra.mxu1 %v1823_v44 }
 0x39c   : > { %3967 = vst [vmem:[%s6414_s18 + $0x80] sm:$0xff] %v3811_v54  ;;  %2919 = vmatmul.f32.gmra.mxu2 %v1823_v44  ;;  %3265 = vmatmul.f32.gmra.mxu3 %v1823_v44 }
 0x39f   : > { %v6579_v63 = vpop.f32.mrf.mxu2  ;;  %v3218_v46 = vpop.f32.mrf.mxu3 }
 0x3a0   : > { %v3652_v13 = vadd.f32 %v3218_v46, %v2717_v37  ;;  %v1825_v18 = vpop.f32.mrf.mxu0  ;;  %v6582_v30 = vpop.f32.mrf.mxu1 }
 0x3a1   : > { %v1826_v59 = vadd.f32 %v6379_v9, %v1825_v18 }
 0x3a2   : > { %v3812_v25 = vadd.f32 %v6406_v31, %v3652_v13 }
 0x3a3   : > { %5043 = vmatmul.msk.bf16.gmra.mxu0 %vm1284_vm1, %v5193_v12  ;;  %2359 = vmatmul.f32.gmra.mxu1 %v1826_v59  ;;  %v2723_v12 = vadd.f32 %v6125_v29, %v6336_v24  ;;  %v2726_v29 = vadd.f32 %v6132_v41, %v6344_v5 }
 0x3a4   : > { %3968 = vst [vmem:[%s6414_s18 + $0x88] sm:$0xff] %v3812_v25  ;;  %2922 = vmatmul.f32.gmra.mxu2 %v1826_v59  ;;  %3268 = vmatmul.f32.gmra.mxu3 %v1826_v59  ;;  %v5194_v59 = vld [vmem:[%s5822_s28 + $0x1a0] sm:$0xff] }
 0x3a7   : > { %v6590_v61 = vpop.f32.mrf.mxu2  ;;  %v3221_v44 = vpop.f32.mrf.mxu3 }
 0x3a8   : > { %v3653_v54 = vadd.f32 %v3221_v44, %v2720_v6  ;;  %v1827_v37 = vpop.f32.mrf.mxu0  ;;  %v6592_v46 = vpop.f32.mrf.mxu1 }
 0x3a9   : > { %v1828_v18 = vadd.f32 %v6379_v9, %v1827_v37 }
 0x3aa   : > { %v3813_v13 = vadd.f32 %v6406_v31, %v3653_v54 }
 0x3ab   : > { %2362 = vmatmul.f32.gmra.mxu1 %v1828_v18 }
 0x3ac   : > { %3969 = vst [vmem:[%s6414_s18 + $0x90] sm:$0xff] %v3813_v13  ;;  %2925 = vmatmul.f32.gmra.mxu2 %v1828_v18  ;;  %3271 = vmatmul.f32.gmra.mxu3 %v1828_v18 }
 0x3af   : > { %v6599_v21 = vpop.f32.mrf.mxu2  ;;  %v3224_v42 = vpop.f32.mrf.mxu3 }
 0x3b0   : > { %v3654_v25 = vadd.f32 %v3224_v42, %v2723_v12  ;;  %v1830_v6 = vpop.f32.mrf.mxu0  ;;  %v6602_v44 = vpop.f32.mrf.mxu1 }
 0x3b1   : > { %v1831_v37 = vadd.f32 %v6379_v9, %v1830_v6 }
 0x3b2   : > { %v3814_v54 = vadd.f32 %v6406_v31, %v3654_v25 }
 0x3b3   : > { %5044 = vmatmul.msk.bf16.gmra.mxu0 %vm1284_vm1, %v5194_v59  ;;  %2365 = vmatmul.f32.gmra.mxu1 %v1831_v37  ;;  %v2729_v59 = vadd.f32 %v6137_v52, %v6352_v53  ;;  %v2732_v52 = vadd.f32 %v6144_v1, %v6358_v17 }
 0x3b4   : > { %3970 = vst [vmem:[%s6414_s18 + $0x98] sm:$0xff] %v3814_v54  ;;  %2928 = vmatmul.f32.gmra.mxu2 %v1831_v37  ;;  %3274 = vmatmul.f32.gmra.mxu3 %v1831_v37  ;;  %v5195_v37 = vld [vmem:[%s5822_s28 + $0x1a8] sm:$0xff] }
 0x3b7   : > { %v6610_v24 = vpop.f32.mrf.mxu2  ;;  %v3227_v18 = vpop.f32.mrf.mxu3 }
 0x3b8   : > { %v3655_v13 = vadd.f32 %v3227_v18, %v2726_v29  ;;  %v1832_v12 = vpop.f32.mrf.mxu0  ;;  %v6612_v42 = vpop.f32.mrf.mxu1 }
 0x3b9   : > { %v1833_v6 = vadd.f32 %v6379_v9, %v1832_v12 }
 0x3ba   : > { %v3815_v25 = vadd.f32 %v6406_v31, %v3655_v13 }
 0x3bb   : > { %2368 = vmatmul.f32.gmra.mxu1 %v1833_v6 }
 0x3bc   : > { %3971 = vst [vmem:[%s6414_s18 + $0xa0] sm:$0xff] %v3815_v25  ;;  %2931 = vmatmul.f32.gmra.mxu2 %v1833_v6  ;;  %3277 = vmatmul.f32.gmra.mxu3 %v1833_v6 }
 0x3bf   : > { %v6619_v41 = vpop.f32.mrf.mxu2  ;;  %v3230_v5 = vpop.f32.mrf.mxu3 }
 0x3c0   : > { %v3656_v54 = vadd.f32 %v3230_v5, %v2729_v59  ;;  %v1835_v29 = vpop.f32.mrf.mxu0  ;;  %v6622_v18 = vpop.f32.mrf.mxu1 }
 0x3c1   : > { %v1836_v12 = vadd.f32 %v6379_v9, %v1835_v29 }
 0x3c2   : > { %v3816_v13 = vadd.f32 %v6406_v31, %v3656_v54 }
 0x3c3   : > { %5045 = vmatmul.msk.bf16.gmra.mxu0 %vm1284_vm1, %v5195_v37  ;;  %2371 = vmatmul.f32.gmra.mxu1 %v1836_v12  ;;  %v2735_v37 = vadd.f32 %v6151_v22, %v6366_v34  ;;  %v2738_v22 = vadd.f32 %v6159_v45, %v6374_v7 }
 0x3c4   : > { %3972 = vst [vmem:[%s6414_s18 + $0xa8] sm:$0xff] %v3816_v13  ;;  %2934 = vmatmul.f32.gmra.mxu2 %v1836_v12  ;;  %3280 = vmatmul.f32.gmra.mxu3 %v1836_v12  ;;  %v5196_v12 = vld [vmem:[%s5822_s28 + $0x1b0] sm:$0xff] }
 0x3c7   : > { %v6630_v53 = vpop.f32.mrf.mxu2  ;;  %v3233_v6 = vpop.f32.mrf.mxu3 }
 0x3c8   : > { %v3657_v25 = vadd.f32 %v3233_v6, %v2732_v52  ;;  %v1837_v59 = vpop.f32.mrf.mxu0  ;;  %v6632_v5 = vpop.f32.mrf.mxu1 }
 0x3c9   : > { %v1838_v29 = vadd.f32 %v6379_v9, %v1837_v59 }
 0x3ca   : > { %v3817_v54 = vadd.f32 %v6406_v31, %v3657_v25 }
 0x3cb   : > { %2374 = vmatmul.f32.gmra.mxu1 %v1838_v29 }
 0x3cc   : > { %3973 = vst [vmem:[%s6414_s18 + $0xb0] sm:$0xff] %v3817_v54  ;;  %2937 = vmatmul.f32.gmra.mxu2 %v1838_v29  ;;  %3283 = vmatmul.f32.gmra.mxu3 %v1838_v29 }
 0x3cf   : > { %v6639_v1 = vpop.f32.mrf.mxu2  ;;  %v3236_v17 = vpop.f32.mrf.mxu3 }
 0x3d0   : > { %v3658_v13 = vadd.f32 %v3236_v17, %v2735_v37  ;;  %v1840_v52 = vpop.f32.mrf.mxu0  ;;  %v6642_v6 = vpop.f32.mrf.mxu1 }
 0x3d1   : > { %v1841_v59 = vadd.f32 %v6379_v9, %v1840_v52 }
 0x3d2   : > { %v3818_v25 = vadd.f32 %v6406_v31, %v3658_v13 }
 0x3d3   : > { %5046 = vmatmul.msk.bf16.gmra.mxu0 %vm1284_vm1, %v5196_v12  ;;  %2377 = vmatmul.f32.gmra.mxu1 %v1841_v59  ;;  %v2741_v12 = vadd.f32 %v6172_v11, %v6387_v56  ;;  %v7896_v11 = vld [vmem:[#allocation32_spill] sm:$0xff] }
 0x3d4   : > { %3974 = vst [vmem:[%s6414_s18 + $0xb8] sm:$0xff] %v3818_v25  ;;  %2940 = vmatmul.f32.gmra.mxu2 %v1841_v59  ;;  %3286 = vmatmul.f32.gmra.mxu3 %v1841_v59  ;;  %v5197_v59 = vld [vmem:[%s5822_s28 + $0x1b8] sm:$0xff]  ;;  %v2744_v56 = vadd.f32 %v7896_v11, %v6395_v19 }
 0x3d7   : > { %v6650_v34 = vpop.f32.mrf.mxu2  ;;  %v3239_v29 = vpop.f32.mrf.mxu3 }
 0x3d8   : > { %7894 = vst [vmem:[#allocation68_spill] sm:$0xff] %v6650_v34  ;;  %v3659_v54 = vadd.f32 %v3239_v29, %v2738_v22  ;;  %v1842_v37 = vpop.f32.mrf.mxu0  ;;  %v6652_v17 = vpop.f32.mrf.mxu1 }
 0x3d9   : > { %v1843_v52 = vadd.f32 %v6379_v9, %v1842_v37 }
 0x3da   : > { %v3819_v13 = vadd.f32 %v6406_v31, %v3659_v54 }
 0x3db   : > { %2380 = vmatmul.f32.gmra.mxu1 %v1843_v52 }
 0x3dc   : > { %3975 = vst [vmem:[%s6414_s18 + $0xc0] sm:$0xff] %v3819_v13  ;;  %2943 = vmatmul.f32.gmra.mxu2 %v1843_v52  ;;  %3289 = vmatmul.f32.gmra.mxu3 %v1843_v52 }
 0x3df   : > { %v6659_v45 = vpop.f32.mrf.mxu2  ;;  %v3242_v7 = vpop.f32.mrf.mxu3 }
 0x3e0   : > { %7895 = vst [vmem:[#allocation69_spill] sm:$0xff] %v6659_v45  ;;  %v3660_v25 = vadd.f32 %v3242_v7, %v2741_v12  ;;  %v1845_v22 = vpop.f32.mrf.mxu0  ;;  %v6662_v29 = vpop.f32.mrf.mxu1 }
 0x3e1   : > { %v1846_v37 = vadd.f32 %v6379_v9, %v1845_v22 }
 0x3e2   : > { %v3820_v54 = vadd.f32 %v6406_v31, %v3660_v25 }
 0x3e3   : > { %5047 = vmatmul.msk.bf16.gmra.mxu0 %vm1284_vm1, %v5197_v59  ;;  %2383 = vmatmul.f32.gmra.mxu1 %v1846_v37  ;;  %v7898_v59 = vld [vmem:[#allocation67_spill] sm:$0xff] }
 0x3e4   : > { %3976 = vst [vmem:[%s6414_s18 + $0xc8] sm:$0xff] %v3820_v54  ;;  %2946 = vmatmul.f32.gmra.mxu2 %v1846_v37  ;;  %3292 = vmatmul.f32.gmra.mxu3 %v1846_v37  ;;  %v7899_v37 = vld [vmem:[#allocation33_spill] sm:$0xff] }
 0x3e5   : > { %v2747_v54 = vadd.f32 %v7899_v37, %v7898_v59 }
 0x3e7   : > { %v6670_v52 = vpop.f32.mrf.mxu2  ;;  %v3245_v13 = vpop.f32.mrf.mxu3 }
 0x3e8   : > { %7897 = vst [vmem:[#allocation32_spill] sm:$0xff] %v6670_v52  ;;  %v3661_v12 = vadd.f32 %v3245_v13, %v2744_v56  ;;  %v1847_v7 = vpop.f32.mrf.mxu0  ;;  %v6672_v45 = vpop.f32.mrf.mxu1  ;;  %v5198_v52 = vld [vmem:[%s5822_s28 + $0x1c0] sm:$0xff] }
 0x3e9   : > { %v1848_v22 = vadd.f32 %v6379_v9, %v1847_v7 }
 0x3ea   : > { %v3821_v25 = vadd.f32 %v6406_v31, %v3661_v12 }
 0x3eb   : > { %2386 = vmatmul.f32.gmra.mxu1 %v1848_v22 }
 0x3ec   : > { %3977 = vst [vmem:[%s6414_s18 + $0xd0] sm:$0xff] %v3821_v25  ;;  %2949 = vmatmul.f32.gmra.mxu2 %v1848_v22  ;;  %3295 = vmatmul.f32.gmra.mxu3 %v1848_v22  ;;  %v7901_v22 = vld [vmem:[#allocation34_spill] sm:$0xff] }
 0x3ed   : > { %v2750_v25 = vadd.f32 %v7901_v22, %v6422_v20  ;;  %v5199_v22 = vld [vmem:[%s5822_s28 + $0x1c8] sm:$0xff] }
 0x3ef   : > { %v6679_v19 = vpop.f32.mrf.mxu2  ;;  %v3248_v11 = vpop.f32.mrf.mxu3 }
 0x3f0   : > { %7900 = vst [vmem:[#allocation67_spill] sm:$0xff] %v6679_v19  ;;  %v3662_v56 = vadd.f32 %v3248_v11, %v2747_v54  ;;  %v1850_v13 = vpop.f32.mrf.mxu0  ;;  %v6682_v34 = vpop.f32.mrf.mxu1 }
 0x3f1   : > { %v1851_v7 = vadd.f32 %v6379_v9, %v1850_v13 }
 0x3f2   : > { %v3822_v12 = vadd.f32 %v6406_v31, %v3662_v56 }
 0x3f3   : > { %5048 = vmatmul.msk.bf16.gmra.mxu0 %vm1284_vm1, %v5198_v52  ;;  %2389 = vmatmul.f32.gmra.mxu1 %v1851_v7  ;;  %v7903_v52 = vld [vmem:[#allocation35_spill] sm:$0xff] }
 0x3f4   : > { %3978 = vst [vmem:[%s6414_s18 + $0xd8] sm:$0xff] %v3822_v12  ;;  %2952 = vmatmul.f32.gmra.mxu2 %v1851_v7  ;;  %3298 = vmatmul.f32.gmra.mxu3 %v1851_v7  ;;  %v2753_v7 = vadd.f32 %v7903_v52, %v6432_v2  ;;  %v7905_v2 = vld [vmem:[#allocation36_spill] sm:$0xff] }
 0x3f7   : > { %v6690_v59 = vpop.f32.mrf.mxu2  ;;  %v3251_v37 = vpop.f32.mrf.mxu3 }
 0x3f8   : > { %7902 = vst [vmem:[#allocation33_spill] sm:$0xff] %v6690_v59  ;;  %v3663_v54 = vadd.f32 %v3251_v37, %v2750_v25  ;;  %v1852_v11 = vpop.f32.mrf.mxu0  ;;  %v6692_v19 = vpop.f32.mrf.mxu1 }
 0x3f9   : > { %v1853_v13 = vadd.f32 %v6379_v9, %v1852_v11 }
 0x3fa   : > { %v3823_v56 = vadd.f32 %v6406_v31, %v3663_v54 }
 0x3fb   : > { %2392 = vmatmul.f32.gmra.mxu1 %v1853_v13 }
 0x3fc   : > { %3979 = vst [vmem:[%s6414_s18 + $0xe0] sm:$0xff] %v3823_v56  ;;  %2955 = vmatmul.f32.gmra.mxu2 %v1853_v13  ;;  %3301 = vmatmul.f32.gmra.mxu3 %v1853_v13  ;;  %v2756_v13 = vadd.f32 %v7905_v2, %v6442_v58  ;;  %v5200_v2 = vld [vmem:[%s5822_s28 + $0x1d0] sm:$0xff] }
 0x3ff   : > { %v6699_v20 = vpop.f32.mrf.mxu2  ;;  %v3254_v12 = vpop.f32.mrf.mxu3 }
 0x400   : > { %7904 = vst [vmem:[#allocation34_spill] sm:$0xff] %v6699_v20  ;;  %v3664_v25 = vadd.f32 %v3254_v12, %v2753_v7  ;;  %v1855_v37 = vpop.f32.mrf.mxu0  ;;  %v6702_v59 = vpop.f32.mrf.mxu1 }
 0x401   : > { %v1856_v11 = vadd.f32 %v6379_v9, %v1855_v37 }
 0x402   : > { %v3824_v54 = vadd.f32 %v6406_v31, %v3664_v25 }
 0x403   : > { %5049 = vmatmul.msk.bf16.gmra.mxu0 %vm1284_vm1, %v5199_v22  ;;  %2395 = vmatmul.f32.gmra.mxu1 %v1856_v11  ;;  %v7907_v22 = vld [vmem:[#allocation37_spill] sm:$0xff] }
 0x404   : > { %3980 = vst [vmem:[%s6414_s18 + $0xe8] sm:$0xff] %v3824_v54  ;;  %2958 = vmatmul.f32.gmra.mxu2 %v1856_v11  ;;  %3304 = vmatmul.f32.gmra.mxu3 %v1856_v11  ;;  %v2759_v11 = vadd.f32 %v7907_v22, %v6452_v8  ;;  %v7909_v8 = vld [vmem:[#allocation38_spill] sm:$0xff] }
 0x407   : > { %v6710_v56 = vpop.f32.mrf.mxu2  ;;  %v3257_v52 = vpop.f32.mrf.mxu3 }
 0x408   : > { %7906 = vst [vmem:[#allocation35_spill] sm:$0xff] %v6710_v56  ;;  %v3665_v7 = vadd.f32 %v3257_v52, %v2756_v13  ;;  %v1857_v12 = vpop.f32.mrf.mxu0  ;;  %v6712_v20 = vpop.f32.mrf.mxu1 }
 0x409   : > { %v1858_v37 = vadd.f32 %v6379_v9, %v1857_v12 }
 0x40a   : > { %v3825_v25 = vadd.f32 %v6406_v31, %v3665_v7 }
 0x40b   : > { %2398 = vmatmul.f32.gmra.mxu1 %v1858_v37 }
 0x40c   : > { %3981 = vst [vmem:[%s6414_s18 + $0xf0] sm:$0xff] %v3825_v25  ;;  %2961 = vmatmul.f32.gmra.mxu2 %v1858_v37  ;;  %3307 = vmatmul.f32.gmra.mxu3 %v1858_v37  ;;  %v2762_v37 = vadd.f32 %v7909_v8, %v6462_v35  ;;  %v5201_v8 = vld [vmem:[%s5822_s28 + $0x1d8] sm:$0xff] }
 0x40f   : > { %v6719_v58 = vpop.f32.mrf.mxu2  ;;  %v3260_v54 = vpop.f32.mrf.mxu3 }
 0x410   : > { %7908 = vst [vmem:[#allocation36_spill] sm:$0xff] %v6719_v58  ;;  %v3666_v13 = vadd.f32 %v3260_v54, %v2759_v11  ;;  %v1860_v52 = vpop.f32.mrf.mxu0  ;;  %v6722_v56 = vpop.f32.mrf.mxu1 }
 0x411   : > { %v1861_v12 = vadd.f32 %v6379_v9, %v1860_v52 }
 0x412   : > { %v3826_v7 = vadd.f32 %v6406_v31, %v3666_v13 }
 0x413   : > { %5050 = vmatmul.msk.bf16.gmra.mxu0 %vm1284_vm1, %v5200_v2  ;;  %2401 = vmatmul.f32.gmra.mxu1 %v1861_v12  ;;  %v7911_v2 = vld [vmem:[#allocation39_spill] sm:$0xff] }
 0x414   : > { %3982 = vst [vmem:[%s6414_s18 + $0xf8] sm:$0xff] %v3826_v7  ;;  %2964 = vmatmul.f32.gmra.mxu2 %v1861_v12  ;;  %3310 = vmatmul.f32.gmra.mxu3 %v1861_v12  ;;  %v2765_v12 = vadd.f32 %v7911_v2, %v6472_v47  ;;  %v7913_v47 = vld [vmem:[#allocation40_spill] sm:$0xff] }
 0x417   : > { %v6730_v25 = vpop.f32.mrf.mxu2  ;;  %v3263_v22 = vpop.f32.mrf.mxu3 }
 0x418   : > { %7910 = vst [vmem:[#allocation37_spill] sm:$0xff] %v6730_v25  ;;  %v3667_v11 = vadd.f32 %v3263_v22, %v2762_v37  ;;  %v1862_v54 = vpop.f32.mrf.mxu0  ;;  %v6732_v58 = vpop.f32.mrf.mxu1 }
 0x419   : > { %v1863_v52 = vadd.f32 %v6379_v9, %v1862_v54 }
 0x41a   : > { %v3827_v13 = vadd.f32 %v6406_v31, %v3667_v11 }
 0x41b   : > { %2404 = vmatmul.f32.gmra.mxu1 %v1863_v52 }
 0x41c   : > { %3983 = vst [vmem:[%s6414_s18 + $0x100] sm:$0xff] %v3827_v13  ;;  %2967 = vmatmul.f32.gmra.mxu2 %v1863_v52  ;;  %3313 = vmatmul.f32.gmra.mxu3 %v1863_v52  ;;  %v2768_v52 = vadd.f32 %v7913_v47, %v6482_v16  ;;  %v5202_v47 = vld [vmem:[%s5822_s28 + $0x1e0] sm:$0xff] }
 0x41f   : > { %v6739_v35 = vpop.f32.mrf.mxu2  ;;  %v3266_v7 = vpop.f32.mrf.mxu3 }
 0x420   : > { %7912 = vst [vmem:[#allocation38_spill] sm:$0xff] %v6739_v35  ;;  %v3668_v37 = vadd.f32 %v3266_v7, %v2765_v12  ;;  %v1865_v22 = vpop.f32.mrf.mxu0  ;;  %v6742_v25 = vpop.f32.mrf.mxu1 }
 0x421   : > { %v1866_v54 = vadd.f32 %v6379_v9, %v1865_v22 }
 0x422   : > { %v3828_v11 = vadd.f32 %v6406_v31, %v3668_v37 }
 0x423   : > { %5051 = vmatmul.msk.bf16.gmra.mxu0 %vm1284_vm1, %v5201_v8  ;;  %2407 = vmatmul.f32.gmra.mxu1 %v1866_v54  ;;  %v7915_v8 = vld [vmem:[#allocation41_spill] sm:$0xff] }
 0x424   : > { %3984 = vst [vmem:[%s6414_s18 + $0x108] sm:$0xff] %v3828_v11  ;;  %2970 = vmatmul.f32.gmra.mxu2 %v1866_v54  ;;  %3316 = vmatmul.f32.gmra.mxu3 %v1866_v54  ;;  %v2771_v54 = vadd.f32 %v7915_v8, %v6492_v0  ;;  %v7917_v0 = vld [vmem:[#allocation42_spill] sm:$0xff] }
 0x427   : > { %v6750_v13 = vpop.f32.mrf.mxu2  ;;  %v3269_v2 = vpop.f32.mrf.mxu3 }
 0x428   : > { %7914 = vst [vmem:[#allocation39_spill] sm:$0xff] %v6750_v13  ;;  %v3669_v12 = vadd.f32 %v3269_v2, %v2768_v52  ;;  %v1867_v7 = vpop.f32.mrf.mxu0  ;;  %v6752_v35 = vpop.f32.mrf.mxu1 }
 0x429   : > { %v1868_v22 = vadd.f32 %v6379_v9, %v1867_v7 }
 0x42a   : > { %v3829_v37 = vadd.f32 %v6406_v31, %v3669_v12 }
 0x42b   : > { %2410 = vmatmul.f32.gmra.mxu1 %v1868_v22 }
 0x42c   : > { %3985 = vst [vmem:[%s6414_s18 + $0x110] sm:$0xff] %v3829_v37  ;;  %2973 = vmatmul.f32.gmra.mxu2 %v1868_v22  ;;  %3319 = vmatmul.f32.gmra.mxu3 %v1868_v22  ;;  %v2774_v22 = vadd.f32 %v7917_v0, %v6502_v36  ;;  %v5203_v0 = vld [vmem:[%s5822_s28 + $0x1e8] sm:$0xff] }
 0x42f   : > { %v6759_v16 = vpop.f32.mrf.mxu2  ;;  %v3272_v11 = vpop.f32.mrf.mxu3 }
 0x430   : > { %7916 = vst [vmem:[#allocation40_spill] sm:$0xff] %v6759_v16  ;;  %v3670_v52 = vadd.f32 %v3272_v11, %v2771_v54  ;;  %v1870_v2 = vpop.f32.mrf.mxu0  ;;  %v6762_v13 = vpop.f32.mrf.mxu1 }
 0x431   : > { %v1871_v7 = vadd.f32 %v6379_v9, %v1870_v2 }
 0x432   : > { %v3830_v12 = vadd.f32 %v6406_v31, %v3670_v52 }
 0x433   : > { %5052 = vmatmul.msk.bf16.gmra.mxu0 %vm1284_vm1, %v5202_v47  ;;  %2413 = vmatmul.f32.gmra.mxu1 %v1871_v7  ;;  %v7919_v47 = vld [vmem:[#allocation43_spill] sm:$0xff] }
 0x434   : > { %3986 = vst [vmem:[%s6414_s18 + $0x118] sm:$0xff] %v3830_v12  ;;  %2976 = vmatmul.f32.gmra.mxu2 %v1871_v7  ;;  %3322 = vmatmul.f32.gmra.mxu3 %v1871_v7  ;;  %v2777_v7 = vadd.f32 %v7919_v47, %v6512_v49  ;;  %v7921_v49 = vld [vmem:[#allocation44_spill] sm:$0xff] }
 0x437   : > { %v6770_v37 = vpop.f32.mrf.mxu2  ;;  %v3275_v8 = vpop.f32.mrf.mxu3 }
 0x438   : > { %7918 = vst [vmem:[#allocation41_spill] sm:$0xff] %v6770_v37  ;;  %v3671_v54 = vadd.f32 %v3275_v8, %v2774_v22  ;;  %v1872_v11 = vpop.f32.mrf.mxu0  ;;  %v6772_v16 = vpop.f32.mrf.mxu1 }
 0x439   : > { %v1873_v2 = vadd.f32 %v6379_v9, %v1872_v11  ;;  %v6787_v9 = vld [vmem:[%s7816_s2] ss:$0 sm:$0xff] }
 0x43a   : > { %v3831_v52 = vadd.f32 %v6406_v31, %v3671_v54 }
 0x43b   : > { %2416 = vmatmul.f32.gmra.mxu1 %v1873_v2 }
 0x43c   : > { %3987 = vst [vmem:[%s6414_s18 + $0x120] sm:$0xff] %v3831_v52  ;;  %2979 = vmatmul.f32.gmra.mxu2 %v1873_v2  ;;  %3325 = vmatmul.f32.gmra.mxu3 %v1873_v2  ;;  %v2780_v2 = vadd.f32 %v7921_v49, %v6522_v57  ;;  %v5204_v49 = vld [vmem:[%s5822_s28 + $0x1f0] sm:$0xff] }
 0x43f   : > { %v6779_v36 = vpop.f32.mrf.mxu2  ;;  %v3278_v12 = vpop.f32.mrf.mxu3 }
 0x440   : > { %7920 = vst [vmem:[#allocation42_spill] sm:$0xff] %v6779_v36  ;;  %v3672_v22 = vadd.f32 %v3278_v12, %v2777_v7  ;;  %v1875_v8 = vpop.f32.mrf.mxu0  ;;  %v6782_v37 = vpop.f32.mrf.mxu1 }
 0x441   : > { %v1876_v54 = vadd.f32 %v6787_v9, %v1875_v8 }
 0x442   : > { %v3832_v11 = vadd.f32 %v6406_v31, %v3672_v22 }
 0x443   : > { %5053 = vmatmul.msk.bf16.gmra.mxu0 %vm1284_vm1, %v5203_v0  ;;  %2419 = vmatmul.f32.gmra.mxu1 %v1876_v54  ;;  %v7923_v0 = vld [vmem:[#allocation45_spill] sm:$0xff] }
 0x444   : > { %3988 = vst [vmem:[%s6414_s18 + $0x128] sm:$0xff] %v3832_v11  ;;  %2982 = vmatmul.f32.gmra.mxu2 %v1876_v54  ;;  %3328 = vmatmul.f32.gmra.mxu3 %v1876_v54  ;;  %v2783_v54 = vadd.f32 %v7923_v0, %v6532_v32  ;;  %v7925_v32 = vld [vmem:[#allocation46_spill] sm:$0xff] }
 0x447   : > { %v6795_v52 = vpop.f32.mrf.mxu2  ;;  %v3281_v47 = vpop.f32.mrf.mxu3 }
 0x448   : > { %7922 = vst [vmem:[#allocation43_spill] sm:$0xff] %v6795_v52  ;;  %v3673_v7 = vadd.f32 %v3281_v47, %v2780_v2  ;;  %v1877_v12 = vpop.f32.mrf.mxu0  ;;  %v6797_v36 = vpop.f32.mrf.mxu1 }
 0x449   : > { %v1878_v8 = vadd.f32 %v6787_v9, %v1877_v12 }
 0x44a   : > { %v3833_v22 = vadd.f32 %v6406_v31, %v3673_v7  ;;  %v6813_v31 = vld [vmem:[%s7818_s4] ss:$0 sm:$0xff] }
 0x44b   : > { %2422 = vmatmul.f32.gmra.mxu1 %v1878_v8 }
 0x44c   : > { %3989 = vst [vmem:[%s6414_s18 + $0x130] sm:$0xff] %v3833_v22  ;;  %2985 = vmatmul.f32.gmra.mxu2 %v1878_v8  ;;  %3331 = vmatmul.f32.gmra.mxu3 %v1878_v8  ;;  %v2786_v8 = vadd.f32 %v7925_v32, %v6542_v3  ;;  %v5205_v32 = vld [vmem:[%s5822_s28 + $0x1f8] sm:$0xff] }
 0x44f   : > { %v6804_v57 = vpop.f32.mrf.mxu2  ;;  %v3284_v11 = vpop.f32.mrf.mxu3 }
 0x450   : > { %7924 = vst [vmem:[#allocation44_spill] sm:$0xff] %v6804_v57  ;;  %v3674_v2 = vadd.f32 %v3284_v11, %v2783_v54  ;;  %v1880_v47 = vpop.f32.mrf.mxu0  ;;  %v6807_v52 = vpop.f32.mrf.mxu1 }
 0x451   : > { %v1881_v12 = vadd.f32 %v6787_v9, %v1880_v47 }
 0x452   : > { %v3834_v7 = vadd.f32 %v6813_v31, %v3674_v2 }
 0x453   : > { %5054 = vmatmul.msk.bf16.gmra.mxu0 %vm1284_vm1, %v5204_v49  ;;  %2425 = vmatmul.f32.gmra.mxu1 %v1881_v12  ;;  %v7927_v49 = vld [vmem:[#allocation47_spill] sm:$0xff] }
 0x454   : > { %3990 = vst [vmem:[%s6414_s18 + $0x138] sm:$0xff] %v3834_v7  ;;  %2988 = vmatmul.f32.gmra.mxu2 %v1881_v12  ;;  %3334 = vmatmul.f32.gmra.mxu3 %v1881_v12  ;;  %v2789_v12 = vadd.f32 %v7927_v49, %v6552_v60  ;;  %v7929_v60 = vld [vmem:[#allocation48_spill] sm:$0xff] }
 0x457   : > { %v6820_v22 = vpop.f32.mrf.mxu2  ;;  %v3287_v0 = vpop.f32.mrf.mxu3 }
 0x458   : > { %7926 = vst [vmem:[#allocation45_spill] sm:$0xff] %v6820_v22  ;;  %v3675_v54 = vadd.f32 %v3287_v0, %v2786_v8  ;;  %v1882_v11 = vpop.f32.mrf.mxu0  ;;  %v6822_v47 = vpop.f32.mrf.mxu1 }
 0x459   : > { %v1883_v57 = vadd.f32 %v6787_v9, %v1882_v11 }
 0x45a   : > { %v3835_v2 = vadd.f32 %v6813_v31, %v3675_v54 }
 0x45b   : > { %2428 = vmatmul.f32.gmra.mxu1 %v1883_v57 }
 0x45c   : > { %3991 = vst [vmem:[%s6414_s18 + $0x140] sm:$0xff] %v3835_v2  ;;  %2991 = vmatmul.f32.gmra.mxu2 %v1883_v57  ;;  %3337 = vmatmul.f32.gmra.mxu3 %v1883_v57  ;;  %v2792_v57 = vadd.f32 %v7929_v60, %v6562_v15  ;;  %v5206_v60 = vld [vmem:[%s5822_s28 + $0x200] sm:$0xff] }
 0x45f   : > { %v6829_v3 = vpop.f32.mrf.mxu2  ;;  %v3290_v7 = vpop.f32.mrf.mxu3 }
 0x460   : > { %7928 = vst [vmem:[#allocation46_spill] sm:$0xff] %v6829_v3  ;;  %v3676_v8 = vadd.f32 %v3290_v7, %v2789_v12  ;;  %v1885_v0 = vpop.f32.mrf.mxu0  ;;  %v6832_v22 = vpop.f32.mrf.mxu1 }
 0x461   : > { %v1886_v11 = vadd.f32 %v6787_v9, %v1885_v0 }
 0x462   : > { %v3836_v54 = vadd.f32 %v6813_v31, %v3676_v8 }
 0x463   : > { %5055 = vmatmul.msk.bf16.gmra.mxu0 %vm1284_vm1, %v5205_v32  ;;  %2431 = vmatmul.f32.gmra.mxu1 %v1886_v11  ;;  %v7931_v32 = vld [vmem:[#allocation50_spill] sm:$0xff] }
 0x464   : > { %3992 = vst [vmem:[%s6414_s18 + $0x148] sm:$0xff] %v3836_v54  ;;  %2994 = vmatmul.f32.gmra.mxu2 %v1886_v11  ;;  %3340 = vmatmul.f32.gmra.mxu3 %v1886_v11  ;;  %v2795_v11 = vadd.f32 %v7931_v32, %v6572_v50  ;;  %v7933_v50 = vld [vmem:[#allocation52_spill] sm:$0xff] }
 0x467   : > { %v6840_v2 = vpop.f32.mrf.mxu2  ;;  %v3293_v49 = vpop.f32.mrf.mxu3 }
 0x468   : > { %7930 = vst [vmem:[#allocation47_spill] sm:$0xff] %v6840_v2  ;;  %v3677_v12 = vadd.f32 %v3293_v49, %v2792_v57  ;;  %v1887_v7 = vpop.f32.mrf.mxu0  ;;  %v6842_v3 = vpop.f32.mrf.mxu1 }
 0x469   : > { %v1888_v0 = vadd.f32 %v6787_v9, %v1887_v7 }
 0x46a   : > { %v3837_v8 = vadd.f32 %v6813_v31, %v3677_v12 }
 0x46b   : > { %2434 = vmatmul.f32.gmra.mxu1 %v1888_v0 }
 0x46c   : > { %3993 = vst [vmem:[%s6414_s18 + $0x150] sm:$0xff] %v3837_v8  ;;  %2997 = vmatmul.f32.gmra.mxu2 %v1888_v0  ;;  %3343 = vmatmul.f32.gmra.mxu3 %v1888_v0  ;;  %v2798_v0 = vadd.f32 %v7933_v50, %v6582_v30  ;;  %v5207_v50 = vld [vmem:[%s5822_s28 + $0x208] sm:$0xff] }
 0x46f   : > { %v6849_v15 = vpop.f32.mrf.mxu2  ;;  %v3296_v54 = vpop.f32.mrf.mxu3 }
 0x470   : > { %7932 = vst [vmem:[#allocation48_spill] sm:$0xff] %v6849_v15  ;;  %v3678_v57 = vadd.f32 %v3296_v54, %v2795_v11  ;;  %v1890_v49 = vpop.f32.mrf.mxu0  ;;  %v6852_v2 = vpop.f32.mrf.mxu1 }
 0x471   : > { %v1891_v7 = vadd.f32 %v6787_v9, %v1890_v49 }
 0x472   : > { %v3838_v12 = vadd.f32 %v6813_v31, %v3678_v57 }
 0x473   : > { %5056 = vmatmul.msk.bf16.gmra.mxu0 %vm1284_vm1, %v5206_v60  ;;  %2437 = vmatmul.f32.gmra.mxu1 %v1891_v7  ;;  %v7935_v60 = vld [vmem:[#allocation54_spill] sm:$0xff] }
 0x474   : > { %3994 = vst [vmem:[%s6414_s18 + $0x158] sm:$0xff] %v3838_v12  ;;  %3000 = vmatmul.f32.gmra.mxu2 %v1891_v7  ;;  %3346 = vmatmul.f32.gmra.mxu3 %v1891_v7  ;;  %v2801_v7 = vadd.f32 %v7935_v60, %v6592_v46  ;;  %v7937_v46 = vld [vmem:[#allocation56_spill] sm:$0xff] }
 0x477   : > { %v6860_v8 = vpop.f32.mrf.mxu2  ;;  %v3299_v32 = vpop.f32.mrf.mxu3 }
 0x478   : > { %7934 = vst [vmem:[#allocation50_spill] sm:$0xff] %v6860_v8  ;;  %v3679_v11 = vadd.f32 %v3299_v32, %v2798_v0  ;;  %v1892_v54 = vpop.f32.mrf.mxu0  ;;  %v6862_v15 = vpop.f32.mrf.mxu1 }
 0x479   : > { %v1893_v49 = vadd.f32 %v6787_v9, %v1892_v54 }
 0x47a   : > { %v3839_v57 = vadd.f32 %v6813_v31, %v3679_v11 }
 0x47b   : > { %2440 = vmatmul.f32.gmra.mxu1 %v1893_v49 }
 0x47c   : > { %3995 = vst [vmem:[%s6414_s18 + $0x160] sm:$0xff] %v3839_v57  ;;  %3003 = vmatmul.f32.gmra.mxu2 %v1893_v49  ;;  %3349 = vmatmul.f32.gmra.mxu3 %v1893_v49  ;;  %v2804_v49 = vadd.f32 %v7937_v46, %v6602_v44  ;;  %v5208_v46 = vld [vmem:[%s5822_s28 + $0x210] sm:$0xff] }
 0x47f   : > { %v6869_v30 = vpop.f32.mrf.mxu2  ;;  %v3302_v12 = vpop.f32.mrf.mxu3 }
 0x480   : > { %7936 = vst [vmem:[#allocation52_spill] sm:$0xff] %v6869_v30  ;;  %v3680_v0 = vadd.f32 %v3302_v12, %v2801_v7  ;;  %v1895_v32 = vpop.f32.mrf.mxu0  ;;  %v6872_v8 = vpop.f32.mrf.mxu1 }
 0x481   : > { %v1896_v54 = vadd.f32 %v6787_v9, %v1895_v32 }
 0x482   : > { %v3840_v11 = vadd.f32 %v6813_v31, %v3680_v0 }
 0x483   : > { %5057 = vmatmul.msk.bf16.gmra.mxu0 %vm1284_vm1, %v5207_v50  ;;  %2443 = vmatmul.f32.gmra.mxu1 %v1896_v54  ;;  %v7939_v50 = vld [vmem:[#allocation57_spill] sm:$0xff] }
 0x484   : > { %3996 = vst [vmem:[%s6414_s18 + $0x168] sm:$0xff] %v3840_v11  ;;  %3006 = vmatmul.f32.gmra.mxu2 %v1896_v54  ;;  %3352 = vmatmul.f32.gmra.mxu3 %v1896_v54  ;;  %v2807_v54 = vadd.f32 %v7939_v50, %v6612_v42  ;;  %v7941_v42 = vld [vmem:[#allocation59_spill] sm:$0xff] }
 0x487   : > { %v6880_v57 = vpop.f32.mrf.mxu2  ;;  %v3305_v60 = vpop.f32.mrf.mxu3 }
 0x488   : > { %7938 = vst [vmem:[#allocation54_spill] sm:$0xff] %v6880_v57  ;;  %v3681_v7 = vadd.f32 %v3305_v60, %v2804_v49  ;;  %v1897_v12 = vpop.f32.mrf.mxu0  ;;  %v6882_v30 = vpop.f32.mrf.mxu1 }
 0x489   : > { %v1898_v32 = vadd.f32 %v6787_v9, %v1897_v12 }
 0x48a   : > { %v3841_v0 = vadd.f32 %v6813_v31, %v3681_v7 }
 0x48b   : > { %2446 = vmatmul.f32.gmra.mxu1 %v1898_v32 }
 0x48c   : > { %3997 = vst [vmem:[%s6414_s18 + $0x170] sm:$0xff] %v3841_v0  ;;  %3009 = vmatmul.f32.gmra.mxu2 %v1898_v32  ;;  %3355 = vmatmul.f32.gmra.mxu3 %v1898_v32  ;;  %v2810_v32 = vadd.f32 %v7941_v42, %v6622_v18  ;;  %v5209_v42 = vld [vmem:[%s5822_s28 + $0x218] sm:$0xff] }
 0x48f   : > { %v6889_v44 = vpop.f32.mrf.mxu2  ;;  %v3308_v11 = vpop.f32.mrf.mxu3 }
 0x490   : > { %7940 = vst [vmem:[#allocation56_spill] sm:$0xff] %v6889_v44  ;;  %v3682_v49 = vadd.f32 %v3308_v11, %v2807_v54  ;;  %v1900_v60 = vpop.f32.mrf.mxu0  ;;  %v6892_v57 = vpop.f32.mrf.mxu1 }
 0x491   : > { %v1901_v12 = vadd.f32 %v6787_v9, %v1900_v60 }
 0x492   : > { %v3842_v7 = vadd.f32 %v6813_v31, %v3682_v49 }
 0x493   : > { %5058 = vmatmul.msk.bf16.gmra.mxu0 %vm1284_vm1, %v5208_v46  ;;  %2449 = vmatmul.f32.gmra.mxu1 %v1901_v12  ;;  %v7943_v46 = vld [vmem:[#allocation61_spill] sm:$0xff] }
 0x494   : > { %3998 = vst [vmem:[%s6414_s18 + $0x178] sm:$0xff] %v3842_v7  ;;  %3012 = vmatmul.f32.gmra.mxu2 %v1901_v12  ;;  %3358 = vmatmul.f32.gmra.mxu3 %v1901_v12  ;;  %v2813_v12 = vadd.f32 %v7943_v46, %v6632_v5  ;;  %v7945_v5 = vld [vmem:[#allocation63_spill] sm:$0xff] }
 0x497   : > { %v6900_v0 = vpop.f32.mrf.mxu2  ;;  %v3311_v50 = vpop.f32.mrf.mxu3 }
 0x498   : > { %7942 = vst [vmem:[#allocation57_spill] sm:$0xff] %v6900_v0  ;;  %v3683_v54 = vadd.f32 %v3311_v50, %v2810_v32  ;;  %v1902_v11 = vpop.f32.mrf.mxu0  ;;  %v6902_v44 = vpop.f32.mrf.mxu1 }
 0x499   : > { %v1903_v60 = vadd.f32 %v6787_v9, %v1902_v11 }
 0x49a   : > { %v3843_v49 = vadd.f32 %v6813_v31, %v3683_v54 }
 0x49b   : > { %2452 = vmatmul.f32.gmra.mxu1 %v1903_v60 }
 0x49c   : > { %3999 = vst [vmem:[%s6414_s18 + $0x180] sm:$0xff] %v3843_v49  ;;  %3015 = vmatmul.f32.gmra.mxu2 %v1903_v60  ;;  %3361 = vmatmul.f32.gmra.mxu3 %v1903_v60  ;;  %v2816_v60 = vadd.f32 %v7945_v5, %v6642_v6 }
 0x49f   : > { %v6909_v18 = vpop.f32.mrf.mxu2  ;;  %v3314_v7 = vpop.f32.mrf.mxu3 }
 0x4a0   : > { %7944 = vst [vmem:[#allocation59_spill] sm:$0xff] %v6909_v18  ;;  %v3684_v32 = vadd.f32 %v3314_v7, %v2813_v12  ;;  %v1905_v50 = vpop.f32.mrf.mxu0  ;;  %v6912_v0 = vpop.f32.mrf.mxu1 }
 0x4a1   : > { %v1906_v11 = vadd.f32 %v6787_v9, %v1905_v50 }
 0x4a2   : > { %v3844_v54 = vadd.f32 %v6813_v31, %v3684_v32 }
 0x4a3   : > { %5059 = vmatmul.msk.bf16.gmra.mxu0 %vm1284_vm1, %v5209_v42  ;;  %2455 = vmatmul.f32.gmra.mxu1 %v1906_v11  ;;  %v7947_v42 = vld [vmem:[#allocation65_spill] sm:$0xff] }
 0x4a4   : > { %4000 = vst [vmem:[%s6414_s18 + $0x188] sm:$0xff] %v3844_v54  ;;  %3018 = vmatmul.f32.gmra.mxu2 %v1906_v11  ;;  %3364 = vmatmul.f32.gmra.mxu3 %v1906_v11  ;;  %v2819_v11 = vadd.f32 %v7947_v42, %v6652_v17  ;;  %v5210_v54 = vld [vmem:[%s5822_s28 + $0x220] sm:$0xff]  ;;  %v7948_v17 = vld [vmem:[#allocation66_spill] sm:$0xff] }
 0x4a7   : > { %v3317_v49 = vpop.f32.mrf.mxu3  ;;  %v6922_v18 = vpop.f32.mrf.mxu2 }
 0x4a8   : > { %v3685_v46 = vadd.f32 %v3317_v49, %v2816_v60  ;;  %v1907_v12 = vpop.f32.mrf.mxu0  ;;  %v6920_v7 = vpop.f32.mrf.mxu1  ;;  %7946 = vst [vmem:[#allocation61_spill] sm:$0xff] %v6922_v18 }
 0x4a9   : > { %v1908_v50 = vadd.f32 %v6787_v9, %v1907_v12 }
 0x4aa   : > { %v3845_v32 = vadd.f32 %v6813_v31, %v3685_v46 }
 0x4ab   : > { %2458 = vmatmul.f32.gmra.mxu1 %v1908_v50 }
 0x4ac   : > { %4001 = vst [vmem:[%s6414_s18 + $0x190] sm:$0xff] %v3845_v32  ;;  %3021 = vmatmul.f32.gmra.mxu2 %v1908_v50  ;;  %3367 = vmatmul.f32.gmra.mxu3 %v1908_v50  ;;  %v2822_v50 = vadd.f32 %v7948_v17, %v6662_v29 }
 0x4af   : > { %v3320_v6 = vpop.f32.mrf.mxu3  ;;  %v6934_v46 = vpop.f32.mrf.mxu2 }
 0x4b0   : > { %v3686_v5 = vadd.f32 %v3320_v6, %v2819_v11  ;;  %v1910_v60 = vpop.f32.mrf.mxu0  ;;  %v6930_v49 = vpop.f32.mrf.mxu1 }
 0x4b1   : > { %v1911_v18 = vadd.f32 %v6787_v9, %v1910_v60 }
 0x4b2   : > { %v3846_v12 = vadd.f32 %v6813_v31, %v3686_v5 }
 0x4b3   : > { %5060 = vmatmul.msk.bf16.gmra.mxu0 %vm1284_vm1, %v5210_v54  ;;  %2461 = vmatmul.f32.gmra.mxu1 %v1911_v18 }
 0x4b4   : > { %4002 = vst [vmem:[%s6414_s18 + $0x198] sm:$0xff] %v3846_v12  ;;  %3024 = vmatmul.f32.gmra.mxu2 %v1911_v18  ;;  %3370 = vmatmul.f32.gmra.mxu3 %v1911_v18  ;;  %v2825_v18 = vadd.f32 %v6419_v40, %v6672_v45  ;;  %v5211_v12 = vld [vmem:[%s5822_s28 + $0x228] sm:$0xff]  ;;  %v2828_v40 = vadd.f32 %v6430_v33, %v6682_v34  ;;  %v5212_v34 = vld [vmem:[%s5822_s28 + $0x230] sm:$0xff] }
 0x4b7   : > { %v3323_v32 = vpop.f32.mrf.mxu3  ;;  %v6945_v54 = vpop.f32.mrf.mxu2 }
 0x4b8   : > { %v3687_v42 = vadd.f32 %v3323_v32, %v2822_v50  ;;  %v1912_v11 = vpop.f32.mrf.mxu0  ;;  %v6940_v6 = vpop.f32.mrf.mxu1 }
 0x4b9   : > { %v1913_v60 = vadd.f32 %v6787_v9, %v1912_v11 }
 0x4ba   : > { %v3847_v5 = vadd.f32 %v6813_v31, %v3687_v42 }
 0x4bb   : > { %2464 = vmatmul.f32.gmra.mxu1 %v1913_v60 }
 0x4bc   : > { %4003 = vst [vmem:[%s6414_s18 + $0x1a0] sm:$0xff] %v3847_v5  ;;  %3027 = vmatmul.f32.gmra.mxu2 %v1913_v60  ;;  %3373 = vmatmul.f32.gmra.mxu3 %v1913_v60 }
 0x4bf   : > { %v3326_v29 = vpop.f32.mrf.mxu3  ;;  %v6958_v45 = vpop.f32.mrf.mxu2 }
 0x4c0   : > { %v3688_v17 = vadd.f32 %v3326_v29, %v2825_v18  ;;  %v1915_v50 = vpop.f32.mrf.mxu0  ;;  %v6950_v32 = vpop.f32.mrf.mxu1 }
 0x4c1   : > { %v1916_v11 = vadd.f32 %v6787_v9, %v1915_v50 }
 0x4c2   : > { %v3848_v42 = vadd.f32 %v6813_v31, %v3688_v17 }
 0x4c3   : > { %5061 = vmatmul.msk.bf16.gmra.mxu0 %vm1284_vm1, %v5211_v12  ;;  %2467 = vmatmul.f32.gmra.mxu1 %v1916_v11  ;;  %v2831_v12 = vadd.f32 %v6439_v26, %v6692_v19  ;;  %v2834_v26 = vadd.f32 %v6450_v4, %v6702_v59  ;;  %v5213_v59 = vld [vmem:[%s5822_s28 + $0x238] sm:$0xff] }
 0x4c4   : > { %4004 = vst [vmem:[%s6414_s18 + $0x1a8] sm:$0xff] %v3848_v42  ;;  %3030 = vmatmul.f32.gmra.mxu2 %v1916_v11  ;;  %3376 = vmatmul.f32.gmra.mxu3 %v1916_v11 }
 0x4c7   : > { %v3329_v60 = vpop.f32.mrf.mxu3 }
 0x4c8   : > { %v3689_v5 = vadd.f32 %v3329_v60, %v2828_v40  ;;  %v1917_v18 = vpop.f32.mrf.mxu0  ;;  %v6960_v29 = vpop.f32.mrf.mxu1 }
 0x4c9   : > { %v1918_v50 = vadd.f32 %v6787_v9, %v1917_v18  ;;  %v6970_v60 = vpop.f32.mrf.mxu2 }
 0x4ca   : > { %v3849_v17 = vadd.f32 %v6813_v31, %v3689_v5 }
 0x4cb   : > { %2470 = vmatmul.f32.gmra.mxu1 %v1918_v50 }
 0x4cc   : > { %4005 = vst [vmem:[%s6414_s18 + $0x1b0] sm:$0xff] %v3849_v17  ;;  %3033 = vmatmul.f32.gmra.mxu2 %v1918_v50  ;;  %3379 = vmatmul.f32.gmra.mxu3 %v1918_v50 }
 0x4cf   : > { %v3332_v33 = vpop.f32.mrf.mxu3 }
 0x4d0   : > { %v3690_v11 = vadd.f32 %v3332_v33, %v2831_v12  ;;  %v1920_v42 = vpop.f32.mrf.mxu0  ;;  %v6968_v40 = vpop.f32.mrf.mxu1 }
 0x4d1   : > { %v1921_v18 = vadd.f32 %v6787_v9, %v1920_v42 }
 0x4d2   : > { %v3850_v5 = vadd.f32 %v6813_v31, %v3690_v11  ;;  %v6982_v11 = vpop.f32.mrf.mxu2 }
 0x4d3   : > { %5062 = vmatmul.msk.bf16.gmra.mxu0 %vm1284_vm1, %v5212_v34  ;;  %2473 = vmatmul.f32.gmra.mxu1 %v1921_v18  ;;  %v2837_v34 = vadd.f32 %v6459_v43, %v6712_v20  ;;  %v2840_v43 = vadd.f32 %v6470_v48, %v6722_v56  ;;  %v5214_v56 = vld [vmem:[%s5822_s28 + $0x240] sm:$0xff] }
 0x4d4   : > { %4006 = vst [vmem:[%s6414_s18 + $0x1b8] sm:$0xff] %v3850_v5  ;;  %3036 = vmatmul.f32.gmra.mxu2 %v1921_v18  ;;  %3382 = vmatmul.f32.gmra.mxu3 %v1921_v18 }
 0x4d7   : > { %v3335_v19 = vpop.f32.mrf.mxu3 }
 0x4d8   : > { %v3691_v50 = vadd.f32 %v3335_v19, %v2834_v26  ;;  %v1922_v17 = vpop.f32.mrf.mxu0  ;;  %v6978_v12 = vpop.f32.mrf.mxu1 }
 0x4d9   : > { %v1923_v33 = vadd.f32 %v6787_v9, %v1922_v17 }
 0x4da   : > { %v3851_v42 = vadd.f32 %v6813_v31, %v3691_v50  ;;  %v6994_v17 = vpop.f32.mrf.mxu2 }
 0x4db   : > { %2476 = vmatmul.f32.gmra.mxu1 %v1923_v33 }
 0x4dc   : > { %4007 = vst [vmem:[%s6414_s18 + $0x1c0] sm:$0xff] %v3851_v42  ;;  %3039 = vmatmul.f32.gmra.mxu2 %v1923_v33  ;;  %3385 = vmatmul.f32.gmra.mxu3 %v1923_v33 }
 0x4df   : > { %v3338_v4 = vpop.f32.mrf.mxu3 }
 0x4e0   : > { %v3692_v18 = vadd.f32 %v3338_v4, %v2837_v34  ;;  %v1925_v5 = vpop.f32.mrf.mxu0  ;;  %v6988_v26 = vpop.f32.mrf.mxu1 }
 0x4e1   : > { %v1926_v19 = vadd.f32 %v6787_v9, %v1925_v5 }
 0x4e2   : > { %v3852_v50 = vadd.f32 %v6813_v31, %v3692_v18  ;;  %v7005_v5 = vpop.f32.mrf.mxu2 }
 0x4e3   : > { %5063 = vmatmul.msk.bf16.gmra.mxu0 %vm1284_vm1, %v5213_v59  ;;  %2479 = vmatmul.f32.gmra.mxu1 %v1926_v19  ;;  %v2843_v59 = vadd.f32 %v6479_v27, %v6732_v58  ;;  %v2846_v27 = vadd.f32 %v6490_v62, %v6742_v25  ;;  %v5215_v25 = vld [vmem:[%s5822_s28 + $0x248] sm:$0xff] }
 0x4e4   : > { %4008 = vst [vmem:[%s6414_s18 + $0x1c8] sm:$0xff] %v3852_v50  ;;  %3042 = vmatmul.f32.gmra.mxu2 %v1926_v19  ;;  %3388 = vmatmul.f32.gmra.mxu3 %v1926_v19 }
 0x4e7   : > { %v3341_v20 = vpop.f32.mrf.mxu3 }
 0x4e8   : > { %v3693_v33 = vadd.f32 %v3341_v20, %v2840_v43  ;;  %v1927_v42 = vpop.f32.mrf.mxu0  ;;  %v6998_v34 = vpop.f32.mrf.mxu1 }
 0x4e9   : > { %v1928_v4 = vadd.f32 %v6787_v9, %v1927_v42 }
 0x4ea   : > { %v3853_v18 = vadd.f32 %v6813_v31, %v3693_v33 }
 0x4eb   : > { %2482 = vmatmul.f32.gmra.mxu1 %v1928_v4 }
 0x4ec   : > { %4009 = vst [vmem:[%s6414_s18 + $0x1d0] sm:$0xff] %v3853_v18  ;;  %3045 = vmatmul.f32.gmra.mxu2 %v1928_v4  ;;  %3391 = vmatmul.f32.gmra.mxu3 %v1928_v4 }
 0x4ef   : > { %v3344_v48 = vpop.f32.mrf.mxu3 }
 0x4f0   : > { %v3694_v19 = vadd.f32 %v3344_v48, %v2843_v59  ;;  %v1930_v50 = vpop.f32.mrf.mxu0  ;;  %v7008_v43 = vpop.f32.mrf.mxu1 }
 0x4f1   : > { %v1931_v20 = vadd.f32 %v6787_v9, %v1930_v50  ;;  %v7018_v59 = vpop.f32.mrf.mxu2 }
 0x4f2   : > { %v3854_v33 = vadd.f32 %v6813_v31, %v3694_v19 }
 0x4f3   : > { %5064 = vmatmul.msk.bf16.gmra.mxu0 %vm1284_vm1, %v5214_v56  ;;  %2485 = vmatmul.f32.gmra.mxu1 %v1931_v20  ;;  %v2849_v56 = vadd.f32 %v6499_v10, %v6752_v35  ;;  %v2852_v10 = vadd.f32 %v6510_v14, %v6762_v13  ;;  %v5216_v13 = vld [vmem:[%s5822_s28 + $0x250] sm:$0xff] }
 0x4f4   : > { %4010 = vst [vmem:[%s6414_s18 + $0x1d8] sm:$0xff] %v3854_v33  ;;  %3048 = vmatmul.f32.gmra.mxu2 %v1931_v20  ;;  %3394 = vmatmul.f32.gmra.mxu3 %v1931_v20 }
 0x4f7   : > { %v3347_v58 = vpop.f32.mrf.mxu3 }
 0x4f8   : > { %v3695_v42 = vadd.f32 %v3347_v58, %v2846_v27  ;;  %v1932_v4 = vpop.f32.mrf.mxu0  ;;  %v7016_v18 = vpop.f32.mrf.mxu1 }
 0x4f9   : > { %v1933_v48 = vadd.f32 %v6787_v9, %v1932_v4 }
 0x4fa   : > { %v3855_v19 = vadd.f32 %v6813_v31, %v3695_v42  ;;  %v7030_v42 = vpop.f32.mrf.mxu2 }
 0x4fb   : > { %2488 = vmatmul.f32.gmra.mxu1 %v1933_v48 }
 0x4fc   : > { %4011 = vst [vmem:[%s6414_s18 + $0x1e0] sm:$0xff] %v3855_v19  ;;  %3051 = vmatmul.f32.gmra.mxu2 %v1933_v48  ;;  %3397 = vmatmul.f32.gmra.mxu3 %v1933_v48 }
 0x4ff   : > { %v3350_v62 = vpop.f32.mrf.mxu3 }
 0x500   : > { %v3696_v50 = vadd.f32 %v3350_v62, %v2849_v56  ;;  %v1935_v20 = vpop.f32.mrf.mxu0  ;;  %v7026_v33 = vpop.f32.mrf.mxu1 }
 0x501   : > { %v1936_v27 = vadd.f32 %v6787_v9, %v1935_v20 }
 0x502   : > { %v3856_v58 = vadd.f32 %v6813_v31, %v3696_v50  ;;  %v2855_v50 = vadd.f32 %v6519_v23, %v6772_v16  ;;  %v2858_v23 = vadd.f32 %v6530_v38, %v6782_v37  ;;  %v5217_v37 = vld [vmem:[%s5822_s28 + $0x258] sm:$0xff] }
 0x503   : > { %5065 = vmatmul.msk.bf16.gmra.mxu0 %vm1284_vm1, %v5215_v25  ;;  %2491 = vmatmul.f32.gmra.mxu1 %v1936_v27  ;;  %v7041_v25 = vpop.f32.mrf.mxu2 }
 0x504   : > { %4012 = vst [vmem:[%s6414_s18 + $0x1e8] sm:$0xff] %v3856_v58  ;;  %3054 = vmatmul.f32.gmra.mxu2 %v1936_v27  ;;  %3400 = vmatmul.f32.gmra.mxu3 %v1936_v27 }
 0x507   : > { %v3353_v35 = vpop.f32.mrf.mxu3 }
 0x508   : > { %v3697_v4 = vadd.f32 %v3353_v35, %v2852_v10  ;;  %v1937_v48 = vpop.f32.mrf.mxu0  ;;  %v7036_v19 = vpop.f32.mrf.mxu1 }
 0x509   : > { %v1938_v56 = vadd.f32 %v6787_v9, %v1937_v48 }
 0x50a   : > { %v3857_v62 = vadd.f32 %v6813_v31, %v3697_v4 }
 0x50b   : > { %2494 = vmatmul.f32.gmra.mxu1 %v1938_v56  ;;  %v7054_v16 = vpop.f32.mrf.mxu2 }
 0x50c   : > { %4013 = vst [vmem:[%s6414_s18 + $0x1f0] sm:$0xff] %v3857_v62  ;;  %3057 = vmatmul.f32.gmra.mxu2 %v1938_v56  ;;  %3403 = vmatmul.f32.gmra.mxu3 %v1938_v56 }
 0x50f   : > { %v3356_v14 = vpop.f32.mrf.mxu3 }
 0x510   : > { %v3698_v20 = vadd.f32 %v3356_v14, %v2855_v50  ;;  %v1940_v27 = vpop.f32.mrf.mxu0  ;;  %v7046_v58 = vpop.f32.mrf.mxu1 }
 0x511   : > { %v1941_v10 = vadd.f32 %v6787_v9, %v1940_v27 }
 0x512   : > { %v3858_v35 = vadd.f32 %v6813_v31, %v3698_v20 }
 0x513   : > { %5066 = vmatmul.msk.bf16.gmra.mxu0 %vm1284_vm1, %v5216_v13  ;;  %2497 = vmatmul.f32.gmra.mxu1 %v1941_v10  ;;  %v2861_v13 = vadd.f32 %v6539_v39, %v6797_v36  ;;  %v2864_v39 = vadd.f32 %v6550_v51, %v6807_v52  ;;  %v5218_v52 = vld [vmem:[%s5822_s28 + $0x260] sm:$0xff] }
 0x514   : > { %4014 = vst [vmem:[%s6414_s18 + $0x1f8] sm:$0xff] %v3858_v35  ;;  %3060 = vmatmul.f32.gmra.mxu2 %v1941_v10  ;;  %3406 = vmatmul.f32.gmra.mxu3 %v1941_v10  ;;  %v7066_v35 = vpop.f32.mrf.mxu2 }
 0x517   : > { %v3359_v4 = vpop.f32.mrf.mxu3 }
 0x518   : > { %v3699_v48 = vadd.f32 %v3359_v4, %v2858_v23  ;;  %v1942_v56 = vpop.f32.mrf.mxu0  ;;  %v7056_v62 = vpop.f32.mrf.mxu1 }
 0x519   : > { %v1943_v50 = vadd.f32 %v6787_v9, %v1942_v56 }
 0x51a   : > { %v3859_v14 = vadd.f32 %v6813_v31, %v3699_v48 }
 0x51b   : > { %2500 = vmatmul.f32.gmra.mxu1 %v1943_v50 }
 0x51c   : > { %4015 = vst [vmem:[%s6414_s18 + $0x200] sm:$0xff] %v3859_v14  ;;  %3063 = vmatmul.f32.gmra.mxu2 %v1943_v50  ;;  %3409 = vmatmul.f32.gmra.mxu3 %v1943_v50 }
 0x51f   : > { %v3362_v38 = vpop.f32.mrf.mxu3 }
 0x520   : > { %v3700_v20 = vadd.f32 %v3362_v38, %v2861_v13  ;;  %v1945_v27 = vpop.f32.mrf.mxu0  ;;  %v7064_v10 = vpop.f32.mrf.mxu1 }
 0x521   : > { %v1946_v23 = vadd.f32 %v6787_v9, %v1945_v27  ;;  %v7078_v38 = vpop.f32.mrf.mxu2 }
 0x522   : > { %v3860_v4 = vadd.f32 %v6813_v31, %v3700_v20 }
 0x523   : > { %5067 = vmatmul.msk.bf16.gmra.mxu0 %vm1284_vm1, %v5217_v37  ;;  %2503 = vmatmul.f32.gmra.mxu1 %v1946_v23  ;;  %v2867_v37 = vadd.f32 %v6559_v28, %v6822_v47  ;;  %v2870_v28 = vadd.f32 %v6570_v55, %v6832_v22  ;;  %v5219_v22 = vld [vmem:[%s5822_s28 + $0x268] sm:$0xff] }
 0x524   : > { %4016 = vst [vmem:[%s6414_s18 + $0x208] sm:$0xff] %v3860_v4  ;;  %3066 = vmatmul.f32.gmra.mxu2 %v1946_v23  ;;  %3412 = vmatmul.f32.gmra.mxu3 %v1946_v23 }
 0x527   : > { %v3365_v36 = vpop.f32.mrf.mxu3 }
 0x528   : > { %v3701_v48 = vadd.f32 %v3365_v36, %v2864_v39  ;;  %v1947_v56 = vpop.f32.mrf.mxu0  ;;  %v7074_v50 = vpop.f32.mrf.mxu1 }
 0x529   : > { %v1948_v14 = vadd.f32 %v6787_v9, %v1947_v56  ;;  %v7090_v36 = vpop.f32.mrf.mxu2 }
 0x52a   : > { %v3861_v13 = vadd.f32 %v6813_v31, %v3701_v48 }
 0x52b   : > { %2506 = vmatmul.f32.gmra.mxu1 %v1948_v14 }
 0x52c   : > { %4017 = vst [vmem:[%s6414_s18 + $0x210] sm:$0xff] %v3861_v13  ;;  %3069 = vmatmul.f32.gmra.mxu2 %v1948_v14  ;;  %3415 = vmatmul.f32.gmra.mxu3 %v1948_v14 }
 0x52f   : > { %v3368_v51 = vpop.f32.mrf.mxu3 }
 0x530   : > { %v3702_v20 = vadd.f32 %v3368_v51, %v2867_v37  ;;  %v1950_v27 = vpop.f32.mrf.mxu0  ;;  %v7084_v23 = vpop.f32.mrf.mxu1  ;;  %v2873_v51 = vadd.f32 %v6579_v63, %v6842_v3  ;;  %v2876_v63 = vadd.f32 %v6590_v61, %v6852_v2  ;;  %v5220_v2 = vld [vmem:[%s5822_s28 + $0x270] sm:$0xff] }
 0x531   : > { %v1951_v4 = vadd.f32 %v6787_v9, %v1950_v27 }
 0x532   : > { %v3862_v39 = vadd.f32 %v6813_v31, %v3702_v20 }
 0x533   : > { %5068 = vmatmul.msk.bf16.gmra.mxu0 %vm1284_vm1, %v5218_v52  ;;  %2509 = vmatmul.f32.gmra.mxu1 %v1951_v4  ;;  %v7101_v52 = vpop.f32.mrf.mxu2 }
 0x534   : > { %4018 = vst [vmem:[%s6414_s18 + $0x218] sm:$0xff] %v3862_v39  ;;  %3072 = vmatmul.f32.gmra.mxu2 %v1951_v4  ;;  %3418 = vmatmul.f32.gmra.mxu3 %v1951_v4 }
 0x537   : > { %v3371_v47 = vpop.f32.mrf.mxu3 }
 0x538   : > { %v3703_v48 = vadd.f32 %v3371_v47, %v2870_v28  ;;  %v1952_v56 = vpop.f32.mrf.mxu0  ;;  %v7094_v14 = vpop.f32.mrf.mxu1 }
 0x539   : > { %v1953_v13 = vadd.f32 %v6787_v9, %v1952_v56 }
 0x53a   : > { %v3863_v37 = vadd.f32 %v6813_v31, %v3703_v48 }
 0x53b   : > { %2512 = vmatmul.f32.gmra.mxu1 %v1953_v13 }
 0x53c   : > { %4019 = vst [vmem:[%s6414_s18 + $0x220] sm:$0xff] %v3863_v37  ;;  %3075 = vmatmul.f32.gmra.mxu2 %v1953_v13  ;;  %3421 = vmatmul.f32.gmra.mxu3 %v1953_v13  ;;  %v7115_v37 = vpop.f32.mrf.mxu2 }
 0x53f   : > { %v3374_v55 = vpop.f32.mrf.mxu3 }
 0x540   : > { %v3704_v20 = vadd.f32 %v3374_v55, %v2873_v51  ;;  %v1955_v27 = vpop.f32.mrf.mxu0  ;;  %v7104_v4 = vpop.f32.mrf.mxu1  ;;  %v2879_v55 = vadd.f32 %v6599_v21, %v6862_v15  ;;  %v2882_v21 = vadd.f32 %v6610_v24, %v6872_v8  ;;  %v5221_v8 = vld [vmem:[%s5822_s28 + $0x278] sm:$0xff] }
 0x541   : > { %v1956_v39 = vadd.f32 %v6787_v9, %v1955_v27 }
 0x542   : > { %v3864_v28 = vadd.f32 %v6813_v31, %v3704_v20 }
 0x543   : > { %5069 = vmatmul.msk.bf16.gmra.mxu0 %vm1284_vm1, %v5219_v22  ;;  %2515 = vmatmul.f32.gmra.mxu1 %v1956_v39 }
 0x544   : > { %4020 = vst [vmem:[%s6414_s18 + $0x228] sm:$0xff] %v3864_v28  ;;  %3078 = vmatmul.f32.gmra.mxu2 %v1956_v39  ;;  %3424 = vmatmul.f32.gmra.mxu3 %v1956_v39 }
 0x547   : > { %v3377_v3 = vpop.f32.mrf.mxu3 }
 0x548   : > { %v3705_v47 = vadd.f32 %v3377_v3, %v2876_v63  ;;  %v1957_v48 = vpop.f32.mrf.mxu0  ;;  %v7112_v56 = vpop.f32.mrf.mxu1 }
 0x549   : > { %v1958_v13 = vadd.f32 %v6787_v9, %v1957_v48  ;;  %v7127_v63 = vpop.f32.mrf.mxu2 }
 0x54a   : > { %v3865_v51 = vadd.f32 %v6813_v31, %v3705_v47 }
 0x54b   : > { %2518 = vmatmul.f32.gmra.mxu1 %v1958_v13 }
 0x54c   : > { %4021 = vst [vmem:[%s6414_s18 + $0x230] sm:$0xff] %v3865_v51  ;;  %3081 = vmatmul.f32.gmra.mxu2 %v1958_v13  ;;  %3427 = vmatmul.f32.gmra.mxu3 %v1958_v13 }
 0x54f   : > { %v3380_v61 = vpop.f32.mrf.mxu3 }
 0x550   : > { %v3706_v22 = vadd.f32 %v3380_v61, %v2879_v55  ;;  %v1960_v20 = vpop.f32.mrf.mxu0  ;;  %v7123_v39 = vpop.f32.mrf.mxu1  ;;  %v2885_v55 = vadd.f32 %v6619_v41, %v6882_v30  ;;  %v2888_v41 = vadd.f32 %v6630_v53, %v6892_v57  ;;  %v5222_v57 = vld [vmem:[%s5822_s28 + $0x280] sm:$0xff] }
 0x551   : > { %v1961_v27 = vadd.f32 %v6787_v9, %v1960_v20  ;;  %v7139_v61 = vpop.f32.mrf.mxu2 }
 0x552   : > { %v3866_v28 = vadd.f32 %v6813_v31, %v3706_v22 }
 0x553   : > { %5070 = vmatmul.msk.bf16.gmra.mxu0 %vm1284_vm1, %v5220_v2  ;;  %2521 = vmatmul.f32.gmra.mxu1 %v1961_v27 }
 0x554   : > { %4022 = vst [vmem:[%s6414_s18 + $0x238] sm:$0xff] %v3866_v28  ;;  %3084 = vmatmul.f32.gmra.mxu2 %v1961_v27  ;;  %3430 = vmatmul.f32.gmra.mxu3 %v1961_v27 }
 0x557   : > { %v3383_v15 = vpop.f32.mrf.mxu3 }
 0x558   : > { %v3707_v3 = vadd.f32 %v3383_v15, %v2882_v21  ;;  %v1962_v47 = vpop.f32.mrf.mxu0  ;;  %v7134_v51 = vpop.f32.mrf.mxu1 }
 0x559   : > { %v1963_v48 = vadd.f32 %v6787_v9, %v1962_v47  ;;  %v7150_v21 = vpop.f32.mrf.mxu2 }
 0x55a   : > { %v3867_v13 = vadd.f32 %v6813_v31, %v3707_v3 }
 0x55b   : > { %2524 = vmatmul.f32.gmra.mxu1 %v1963_v48 }
 0x55c   : > { %4023 = vst [vmem:[%s6414_s18 + $0x240] sm:$0xff] %v3867_v13  ;;  %3087 = vmatmul.f32.gmra.mxu2 %v1963_v48  ;;  %3433 = vmatmul.f32.gmra.mxu3 %v1963_v48  ;;  %v2891_v13 = vadd.f32 %v6639_v1, %v6902_v44  ;;  %v7949_v1 = vld [vmem:[#allocation68_spill] sm:$0xff] }
 0x55d   : > { %v2894_v44 = vadd.f32 %v7949_v1, %v6912_v0 }
 0x55f   : > { %v3386_v24 = vpop.f32.mrf.mxu3 }
 0x560   : > { %v3708_v2 = vadd.f32 %v3386_v24, %v2885_v55  ;;  %v1965_v22 = vpop.f32.mrf.mxu0  ;;  %v7146_v28 = vpop.f32.mrf.mxu1 }
 0x561   : > { %v1966_v20 = vadd.f32 %v6787_v9, %v1965_v22  ;;  %v7161_v22 = vpop.f32.mrf.mxu2 }
 0x562   : > { %v3868_v27 = vadd.f32 %v6813_v31, %v3708_v2 }
 0x563   : > { %5071 = vmatmul.msk.bf16.gmra.mxu0 %vm1284_vm1, %v5221_v8  ;;  %2527 = vmatmul.f32.gmra.mxu1 %v1966_v20 }
 0x564   : > { %4024 = vst [vmem:[%s6414_s18 + $0x248] sm:$0xff] %v3868_v27  ;;  %3090 = vmatmul.f32.gmra.mxu2 %v1966_v20  ;;  %3436 = vmatmul.f32.gmra.mxu3 %v1966_v20 }
 0x567   : > { %v3389_v30 = vpop.f32.mrf.mxu3 }
 0x568   : > { %v3709_v15 = vadd.f32 %v3389_v30, %v2888_v41  ;;  %v1967_v3 = vpop.f32.mrf.mxu0  ;;  %v7157_v55 = vpop.f32.mrf.mxu1 }
 0x569   : > { %v1968_v47 = vadd.f32 %v6787_v9, %v1967_v3 }
 0x56a   : > { %v3869_v48 = vadd.f32 %v6813_v31, %v3709_v15 }
 0x56b   : > { %2530 = vmatmul.f32.gmra.mxu1 %v1968_v47 }
 0x56c   : > { %4025 = vst [vmem:[%s6414_s18 + $0x250] sm:$0xff] %v3869_v48  ;;  %3093 = vmatmul.f32.gmra.mxu2 %v1968_v47  ;;  %3439 = vmatmul.f32.gmra.mxu3 %v1968_v47  ;;  %v7172_v48 = vpop.f32.mrf.mxu2 }
 0x56f   : > { %v3392_v53 = vpop.f32.mrf.mxu3 }
 0x570   : > { %v3710_v24 = vadd.f32 %v3392_v53, %v2891_v13  ;;  %v1970_v8 = vpop.f32.mrf.mxu0  ;;  %v7168_v15 = vpop.f32.mrf.mxu1  ;;  %v7950_v13 = vld [vmem:[#allocation69_spill] sm:$0xff] }
 0x571   : > { %v1971_v2 = vadd.f32 %v6787_v9, %v1970_v8  ;;  %v2897_v53 = vadd.f32 %v7950_v13, %v6920_v7  ;;  %v7951_v7 = vld [vmem:[#allocation32_spill] sm:$0xff] }
 0x572   : > { %v3870_v20 = vadd.f32 %v6813_v31, %v3710_v24 }
 0x573   : > { %5072 = vmatmul.msk.bf16.gmra.mxu0 %vm1284_vm1, %v5222_v57  ;;  %2533 = vmatmul.f32.gmra.mxu1 %v1971_v2  ;;  %v5223_v57 = vld [vmem:[%s5822_s28 + $0x288] sm:$0xff] }
 0x574   : > { %4026 = vst [vmem:[%s6414_s18 + $0x258] sm:$0xff] %v3870_v20  ;;  %3096 = vmatmul.f32.gmra.mxu2 %v1971_v2  ;;  %3442 = vmatmul.f32.gmra.mxu3 %v1971_v2 }
 0x577   : > { %v3395_v27 = vpop.f32.mrf.mxu3 }
 0x578   : > { %v3711_v41 = vadd.f32 %v3395_v27, %v2894_v44  ;;  %v1972_v30 = vpop.f32.mrf.mxu0  ;;  %v7185_v1 = vpop.f32.mrf.mxu1  ;;  %v2900_v44 = vadd.f32 %v7951_v7, %v6930_v49 }
 0x579   : > { %v1973_v3 = vadd.f32 %v6787_v9, %v1972_v30  ;;  %v7181_v9 = vld [vmem:[%s7816_s2] ss:$0 sm:$0xff]  ;;  %v7191_v27 = vpop.f32.mrf.mxu2 }
 0x57a   : > { %v3871_v47 = vadd.f32 %v6813_v31, %v3711_v41 }
 0x57b   : > { %2536 = vmatmul.f32.gmra.mxu1 %v1973_v3 }
 0x57c   : > { %4027 = vst [vmem:[%s6414_s18 + $0x260] sm:$0xff] %v3871_v47  ;;  %3099 = vmatmul.f32.gmra.mxu2 %v1973_v3  ;;  %3445 = vmatmul.f32.gmra.mxu3 %v1973_v3 }
 0x57f   : > { %v3398_v0 = vpop.f32.mrf.mxu3 }
 0x580   : > { %v3712_v24 = vadd.f32 %v3398_v0, %v2897_v53  ;;  %v1975_v8 = vpop.f32.mrf.mxu0  ;;  %v7196_v53 = vpop.f32.mrf.mxu1  ;;  %v7952_v0 = vld [vmem:[#allocation67_spill] sm:$0xff] }
 0x581   : > { %v1976_v2 = vadd.f32 %v7181_v9, %v1975_v8  ;;  %v7201_v8 = vpop.f32.mrf.mxu2 }
 0x582   : > { %v3872_v20 = vadd.f32 %v6813_v31, %v3712_v24  ;;  %v5224_v24 = vld [vmem:[%s5822_s28 + $0x290] sm:$0xff] }
 0x583   : > { %5073 = vmatmul.msk.bf16.gmra.mxu0 %vm1284_vm1, %v5223_v57  ;;  %2539 = vmatmul.f32.gmra.mxu1 %v1976_v2  ;;  %v2903_v57 = vadd.f32 %v7952_v0, %v6940_v6  ;;  %v7953_v6 = vld [vmem:[#allocation33_spill] sm:$0xff] }
 0x584   : > { %4028 = vst [vmem:[%s6414_s18 + $0x268] sm:$0xff] %v3872_v20  ;;  %3102 = vmatmul.f32.gmra.mxu2 %v1976_v2  ;;  %3448 = vmatmul.f32.gmra.mxu3 %v1976_v2 }
 0x587   : > { %v3401_v41 = vpop.f32.mrf.mxu3 }
 0x588   : > { %v3713_v30 = vadd.f32 %v3401_v41, %v2900_v44  ;;  %v1977_v3 = vpop.f32.mrf.mxu0  ;;  %v2906_v41 = vadd.f32 %v7953_v6, %v6950_v32 }
 0x589   : > { %v1978_v47 = vadd.f32 %v7181_v9, %v1977_v3 }
 0x58a   : > { %v3873_v13 = vadd.f32 %v6813_v31, %v3713_v30  ;;  %v7207_v31 = vld [vmem:[%s7818_s4] ss:$0 sm:$0xff]  ;;  %v7214_v30 = vpop.f32.mrf.mxu1 }
 0x58b   : > { %2542 = vmatmul.f32.gmra.mxu1 %v1978_v47 }
 0x58c   : > { %4029 = vst [vmem:[%s6414_s18 + $0x270] sm:$0xff] %v3873_v13  ;;  %3105 = vmatmul.f32.gmra.mxu2 %v1978_v47  ;;  %3451 = vmatmul.f32.gmra.mxu3 %v1978_v47 }
 0x58f   : > { %v3404_v49 = vpop.f32.mrf.mxu3 }
 0x590   : > { %v3714_v2 = vadd.f32 %v3404_v49, %v2903_v57  ;;  %v1980_v20 = vpop.f32.mrf.mxu0  ;;  %v7217_v57 = vpop.f32.mrf.mxu2 }
 0x591   : > { %v1981_v7 = vadd.f32 %v7181_v9, %v1980_v20  ;;  %v5225_v20 = vld [vmem:[%s5822_s28 + $0x298] sm:$0xff] }
 0x592   : > { %v3874_v44 = vadd.f32 %v7207_v31, %v3714_v2  ;;  %v7224_v6 = vpop.f32.mrf.mxu1 }
 0x593   : > { %5074 = vmatmul.msk.bf16.gmra.mxu0 %vm1284_vm1, %v5224_v24  ;;  %2545 = vmatmul.f32.gmra.mxu1 %v1981_v7  ;;  %v7954_v24 = vld [vmem:[#allocation34_spill] sm:$0xff] }
 0x594   : > { %4030 = vst [vmem:[%s6414_s18 + $0x278] sm:$0xff] %v3874_v44  ;;  %3108 = vmatmul.f32.gmra.mxu2 %v1981_v7  ;;  %3454 = vmatmul.f32.gmra.mxu3 %v1981_v7  ;;  %v2909_v2 = vadd.f32 %v7954_v24, %v6960_v29  ;;  %v7955_v29 = vld [vmem:[#allocation35_spill] sm:$0xff] }
 0x597   : > { %v3407_v3 = vpop.f32.mrf.mxu3 }
 0x598   : > { %v3715_v47 = vadd.f32 %v3407_v3, %v2906_v41  ;;  %v1982_v13 = vpop.f32.mrf.mxu0 }
 0x599   : > { %v1983_v0 = vadd.f32 %v7181_v9, %v1982_v13  ;;  %v2912_v13 = vadd.f32 %v7955_v29, %v6968_v40 }
 0x59a   : > { %v3875_v49 = vadd.f32 %v7207_v31, %v3715_v47  ;;  %v7229_v47 = vpop.f32.mrf.mxu2 }
 0x59b   : > { %2548 = vmatmul.f32.gmra.mxu1 %v1983_v0 }
 0x59c   : > { %4031 = vst [vmem:[%s6414_s18 + $0x280] sm:$0xff] %v3875_v49  ;;  %3111 = vmatmul.f32.gmra.mxu2 %v1983_v0  ;;  %3457 = vmatmul.f32.gmra.mxu3 %v1983_v0 }
 0x59f   : > { %v3410_v32 = vpop.f32.mrf.mxu3 }
 0x5a0   : > { %v3716_v7 = vadd.f32 %v3410_v32, %v2909_v2  ;;  %v1985_v44 = vpop.f32.mrf.mxu0 }
 0x5a1   : > { %v1986_v41 = vadd.f32 %v7181_v9, %v1985_v44 }
 0x5a2   : > { %v3876_v3 = vadd.f32 %v7207_v31, %v3716_v7  ;;  %v7236_v7 = vpop.f32.mrf.mxu1 }
 0x5a3   : > { %5075 = vmatmul.msk.bf16.gmra.mxu0 %vm1284_vm1, %v5225_v20  ;;  %2551 = vmatmul.f32.gmra.mxu1 %v1986_v41  ;;  %v7956_v20 = vld [vmem:[#allocation36_spill] sm:$0xff] }
 0x5a4   : > { %4032 = vst [vmem:[%s6414_s18 + $0x288] sm:$0xff] %v3876_v3  ;;  %3114 = vmatmul.f32.gmra.mxu2 %v1986_v41  ;;  %3460 = vmatmul.f32.gmra.mxu3 %v1986_v41  ;;  %v2915_v44 = vadd.f32 %v7956_v20, %v6978_v12  ;;  %v7241_v41 = vpop.f32.mrf.mxu2  ;;  %v5226_v3 = vld [vmem:[%s5822_s28 + $0x2a0] sm:$0xff]  ;;  %v7958_v12 = vld [vmem:[#allocation37_spill] sm:$0xff] }
 0x5a5   : > { %7957 = vst [vmem:[#allocation63_spill] sm:$0xff] %v7241_v41 }
 0x5a7   : > { %v3413_v0 = vpop.f32.mrf.mxu3 }
 0x5a8   : > { %v3717_v49 = vadd.f32 %v3413_v0, %v2912_v13  ;;  %v1987_v24 = vpop.f32.mrf.mxu0 }
 0x5a9   : > { %v1988_v2 = vadd.f32 %v7181_v9, %v1987_v24 }
 0x5aa   : > { %v3877_v32 = vadd.f32 %v7207_v31, %v3717_v49  ;;  %v7248_v24 = vpop.f32.mrf.mxu1 }
 0x5ab   : > { %2554 = vmatmul.f32.gmra.mxu1 %v1988_v2 }
 0x5ac   : > { %4033 = vst [vmem:[%s6414_s18 + $0x290] sm:$0xff] %v3877_v32  ;;  %3117 = vmatmul.f32.gmra.mxu2 %v1988_v2  ;;  %3463 = vmatmul.f32.gmra.mxu3 %v1988_v2  ;;  %v2918_v2 = vadd.f32 %v7958_v12, %v6988_v26  ;;  %v7252_v20 = vpop.f32.mrf.mxu2  ;;  %v5227_v12 = vld [vmem:[%s5822_s28 + $0x2a8] sm:$0xff] }
 0x5ad   : > { %7959 = vst [vmem:[#allocation65_spill] sm:$0xff] %v7252_v20 }
 0x5af   : > { %v3416_v40 = vpop.f32.mrf.mxu3 }
 0x5b0   : > { %v3718_v29 = vadd.f32 %v3416_v40, %v2915_v44  ;;  %v1990_v13 = vpop.f32.mrf.mxu0 }
 0x5b1   : > { %v1991_v0 = vadd.f32 %v7181_v9, %v1990_v13 }
 0x5b2   : > { %v3878_v49 = vadd.f32 %v7207_v31, %v3718_v29 }
 0x5b3   : > { %5076 = vmatmul.msk.bf16.gmra.mxu0 %vm1284_vm1, %v5226_v3  ;;  %2557 = vmatmul.f32.gmra.mxu1 %v1991_v0  ;;  %v7960_v3 = vld [vmem:[#allocation38_spill] sm:$0xff] }
 0x5b4   : > { %4034 = vst [vmem:[%s6414_s18 + $0x298] sm:$0xff] %v3878_v49  ;;  %3120 = vmatmul.f32.gmra.mxu2 %v1991_v0  ;;  %3466 = vmatmul.f32.gmra.mxu3 %v1991_v0  ;;  %v2921_v0 = vadd.f32 %v7960_v3, %v6998_v34  ;;  %v7259_v49 = vpop.f32.mrf.mxu1  ;;  %v7961_v34 = vld [vmem:[#allocation39_spill] sm:$0xff] }
 0x5b7   : > { %v3419_v32 = vpop.f32.mrf.mxu3 }
 0x5b8   : > { %v3719_v44 = vadd.f32 %v3419_v32, %v2918_v2  ;;  %v1992_v40 = vpop.f32.mrf.mxu0  ;;  %v7263_v32 = vpop.f32.mrf.mxu2 }
 0x5b9   : > { %v1993_v13 = vadd.f32 %v7181_v9, %v1992_v40  ;;  %v2924_v40 = vadd.f32 %v7961_v34, %v7008_v43 }
 0x5ba   : > { %v3879_v29 = vadd.f32 %v7207_v31, %v3719_v44 }
 0x5bb   : > { %2560 = vmatmul.f32.gmra.mxu1 %v1993_v13 }
 0x5bc   : > { %4035 = vst [vmem:[%s6414_s18 + $0x2a0] sm:$0xff] %v3879_v29  ;;  %3123 = vmatmul.f32.gmra.mxu2 %v1993_v13  ;;  %3469 = vmatmul.f32.gmra.mxu3 %v1993_v13 }
 0x5bf   : > { %v3422_v26 = vpop.f32.mrf.mxu3 }
 0x5c0   : > { %v3720_v41 = vadd.f32 %v3422_v26, %v2921_v0  ;;  %v1995_v20 = vpop.f32.mrf.mxu0  ;;  %v7270_v0 = vpop.f32.mrf.mxu1 }
 0x5c1   : > { %v1996_v2 = vadd.f32 %v7181_v9, %v1995_v20 }
 0x5c2   : > { %v3880_v44 = vadd.f32 %v7207_v31, %v3720_v41  ;;  %v7274_v41 = vpop.f32.mrf.mxu2 }
 0x5c3   : > { %5077 = vmatmul.msk.bf16.gmra.mxu0 %vm1284_vm1, %v5227_v12  ;;  %2563 = vmatmul.f32.gmra.mxu1 %v1996_v2  ;;  %7962 = vst [vmem:[#allocation66_spill] sm:$0xff] %v7274_v41  ;;  %v7963_v12 = vld [vmem:[#allocation40_spill] sm:$0xff] }
 0x5c4   : > { %4036 = vst [vmem:[%s6414_s18 + $0x2a8] sm:$0xff] %v3880_v44  ;;  %3126 = vmatmul.f32.gmra.mxu2 %v1996_v2  ;;  %3472 = vmatmul.f32.gmra.mxu3 %v1996_v2  ;;  %v2927_v2 = vadd.f32 %v7963_v12, %v7016_v18 }
 0x5c7   : > { %v3425_v13 = vpop.f32.mrf.mxu3 }
 0x5c8   : > { %v3721_v29 = vadd.f32 %v3425_v13, %v2924_v40  ;;  %v1997_v3 = vpop.f32.mrf.mxu0 }
 0x5c9   : > { %v1998_v20 = vadd.f32 %v7181_v9, %v1997_v3  ;;  %v7281_v3 = vpop.f32.mrf.mxu1 }
 0x5ca   : > { %v3881_v26 = vadd.f32 %v7207_v31, %v3721_v29  ;;  %v7964_v29 = vld [vmem:[#allocation41_spill] sm:$0xff] }
 0x5cb   : > { %2566 = vmatmul.f32.gmra.mxu1 %v1998_v20 }
 0x5cc   : > { %4037 = vst [vmem:[%s6414_s18 + $0x2b0] sm:$0xff] %v3881_v26  ;;  %3129 = vmatmul.f32.gmra.mxu2 %v1998_v20  ;;  %3475 = vmatmul.f32.gmra.mxu3 %v1998_v20  ;;  %v2930_v26 = vadd.f32 %v7964_v29, %v7026_v33 }
 0x5cf   : > { %v3428_v43 = vpop.f32.mrf.mxu3 }
 0x5d0   : > { %v3722_v44 = vadd.f32 %v3428_v43, %v2927_v2  ;;  %v2000_v34 = vpop.f32.mrf.mxu0 }
 0x5d1   : > { %v2001_v40 = vadd.f32 %v7181_v9, %v2000_v34  ;;  %v7289_v43 = vpop.f32.mrf.mxu1 }
 0x5d2   : > { %v3882_v13 = vadd.f32 %v7207_v31, %v3722_v44  ;;  %v7965_v44 = vld [vmem:[#allocation42_spill] sm:$0xff] }
 0x5d3   : > { %2569 = vmatmul.f32.gmra.mxu1 %v2001_v40  ;;  %v2933_v34 = vadd.f32 %v7965_v44, %v7036_v19 }
 0x5d4   : > { %4038 = vst [vmem:[%s6414_s18 + $0x2b8] sm:$0xff] %v3882_v13  ;;  %3478 = vmatmul.f32.gmra.mxu3 %v2001_v40 }
 0x5d7   : > { %v3431_v20 = vpop.f32.mrf.mxu3 }
 0x5d8   : > { %v3723_v41 = vadd.f32 %v3431_v20, %v2930_v26  ;;  %v2002_v18 = vpop.f32.mrf.mxu0 }
 0x5d9   : > { %v2003_v12 = vadd.f32 %v7181_v9, %v2002_v18  ;;  %v7298_v18 = vpop.f32.mrf.mxu1 }
 0x5da   : > { %v3883_v2 = vadd.f32 %v7207_v31, %v3723_v41  ;;  %v7966_v41 = vld [vmem:[#allocation43_spill] sm:$0xff] }
 0x5db   : > { %2572 = vmatmul.f32.gmra.mxu1 %v2003_v12  ;;  %v2936_v20 = vadd.f32 %v7966_v41, %v7046_v58 }
 0x5dc   : > { %4039 = vst [vmem:[%s6414_s18 + $0x2c0] sm:$0xff] %v3883_v2  ;;  %3481 = vmatmul.f32.gmra.mxu3 %v2003_v12 }
 0x5df   : > { %v3434_v40 = vpop.f32.mrf.mxu3 }
 0x5e0   : > { %v3724_v13 = vadd.f32 %v3434_v40, %v2933_v34  ;;  %v2005_v33 = vpop.f32.mrf.mxu0  ;;  %v7967_v40 = vld [vmem:[#allocation44_spill] sm:$0xff] }
 0x5e1   : > { %v2006_v29 = vadd.f32 %v7181_v9, %v2005_v33 }
 0x5e2   : > { %v3884_v26 = vadd.f32 %v7207_v31, %v3724_v13  ;;  %v2939_v13 = vadd.f32 %v7967_v40, %v7056_v62 }
 0x5e3   : > { %2575 = vmatmul.f32.gmra.mxu1 %v2006_v29 }
 0x5e4   : > { %4040 = vst [vmem:[%s6414_s18 + $0x2c8] sm:$0xff] %v3884_v26  ;;  %3484 = vmatmul.f32.gmra.mxu3 %v2006_v29  ;;  %v7305_v26 = vpop.f32.mrf.mxu1 }
 0x5e7   : > { %v3437_v12 = vpop.f32.mrf.mxu3 }
 0x5e8   : > { %v3725_v2 = vadd.f32 %v3437_v12, %v2936_v20  ;;  %v2007_v19 = vpop.f32.mrf.mxu0  ;;  %v7968_v12 = vld [vmem:[#allocation45_spill] sm:$0xff] }
 0x5e9   : > { %v2008_v44 = vadd.f32 %v7181_v9, %v2007_v19 }
 0x5ea   : > { %v3885_v34 = vadd.f32 %v7207_v31, %v3725_v2  ;;  %v2942_v2 = vadd.f32 %v7968_v12, %v7064_v10 }
 0x5eb   : > { %2578 = vmatmul.f32.gmra.mxu1 %v2008_v44 }
 0x5ec   : > { %4041 = vst [vmem:[%s6414_s18 + $0x2d0] sm:$0xff] %v3885_v34  ;;  %3487 = vmatmul.f32.gmra.mxu3 %v2008_v44 }
 0x5ef   : > { %v3440_v33 = vpop.f32.mrf.mxu3 }
 0x5f0   : > { %v3726_v29 = vadd.f32 %v3440_v33, %v2939_v13  ;;  %v2010_v58 = vpop.f32.mrf.mxu0  ;;  %v7314_v13 = vpop.f32.mrf.mxu1  ;;  %v7969_v33 = vld [vmem:[#allocation46_spill] sm:$0xff] }
 0x5f1   : > { %v2011_v41 = vadd.f32 %v7181_v9, %v2010_v58 }
 0x5f2   : > { %v3886_v20 = vadd.f32 %v7207_v31, %v3726_v29  ;;  %v2945_v29 = vadd.f32 %v7969_v33, %v7074_v50 }
 0x5f3   : > { %2581 = vmatmul.f32.gmra.mxu1 %v2011_v41 }
 0x5f4   : > { %4042 = vst [vmem:[%s6414_s18 + $0x2d8] sm:$0xff] %v3886_v20  ;;  %3490 = vmatmul.f32.gmra.mxu3 %v2011_v41 }
 0x5f7   : > { %v3443_v19 = vpop.f32.mrf.mxu3 }
 0x5f8   : > { %v3727_v44 = vadd.f32 %v3443_v19, %v2942_v2  ;;  %v2012_v62 = vpop.f32.mrf.mxu0  ;;  %v7322_v2 = vpop.f32.mrf.mxu1  ;;  %v7970_v19 = vld [vmem:[#allocation47_spill] sm:$0xff] }
 0x5f9   : > { %v2013_v34 = vadd.f32 %v7181_v9, %v2012_v62 }
 0x5fa   : > { %v3887_v40 = vadd.f32 %v7207_v31, %v3727_v44  ;;  %v2948_v44 = vadd.f32 %v7970_v19, %v7084_v23 }
 0x5fb   : > { %2584 = vmatmul.f32.gmra.mxu1 %v2013_v34 }
 0x5fc   : > { %4043 = vst [vmem:[%s6414_s18 + $0x2e0] sm:$0xff] %v3887_v40  ;;  %3493 = vmatmul.f32.gmra.mxu3 %v2013_v34 }
 0x5ff   : > { %v3446_v58 = vpop.f32.mrf.mxu3 }
 0x600   : > { %v3728_v41 = vadd.f32 %v3446_v58, %v2945_v29  ;;  %v2015_v10 = vpop.f32.mrf.mxu0  ;;  %v7971_v29 = vld [vmem:[#allocation48_spill] sm:$0xff] }
 0x601   : > { %v2016_v20 = vadd.f32 %v7181_v9, %v2015_v10  ;;  %v2951_v58 = vadd.f32 %v7971_v29, %v7094_v14 }
 0x602   : > { %v3888_v12 = vadd.f32 %v7207_v31, %v3728_v41  ;;  %v7331_v41 = vpop.f32.mrf.mxu1 }
 0x603   : > { %2587 = vmatmul.f32.gmra.mxu1 %v2016_v20 }
 0x604   : > { %4044 = vst [vmem:[%s6414_s18 + $0x2e8] sm:$0xff] %v3888_v12  ;;  %3496 = vmatmul.f32.gmra.mxu3 %v2016_v20 }
 0x607   : > { %v3449_v62 = vpop.f32.mrf.mxu3 }
 0x608   : > { %v3729_v34 = vadd.f32 %v3449_v62, %v2948_v44  ;;  %v2017_v50 = vpop.f32.mrf.mxu0  ;;  %v7972_v44 = vld [vmem:[#allocation50_spill] sm:$0xff] }
 0x609   : > { %v2018_v40 = vadd.f32 %v7181_v9, %v2017_v50  ;;  %v2954_v62 = vadd.f32 %v7972_v44, %v7104_v4 }
 0x60a   : > { %v3889_v33 = vadd.f32 %v7207_v31, %v3729_v34 }
 0x60b   : > { %2590 = vmatmul.f32.gmra.mxu1 %v2018_v40 }
 0x60c   : > { %4045 = vst [vmem:[%s6414_s18 + $0x2f0] sm:$0xff] %v3889_v33  ;;  %3499 = vmatmul.f32.gmra.mxu3 %v2018_v40  ;;  %v7338_v40 = vpop.f32.mrf.mxu1 }
 0x60f   : > { %v3452_v10 = vpop.f32.mrf.mxu3 }
 0x610   : > { %v3730_v20 = vadd.f32 %v3452_v10, %v2951_v58  ;;  %v2020_v23 = vpop.f32.mrf.mxu0  ;;  %v7973_v58 = vld [vmem:[#allocation52_spill] sm:$0xff] }
 0x611   : > { %v2021_v12 = vadd.f32 %v7181_v9, %v2020_v23  ;;  %v2957_v10 = vadd.f32 %v7973_v58, %v7112_v56 }
 0x612   : > { %v3890_v19 = vadd.f32 %v7207_v31, %v3730_v20 }
 0x613   : > { %2593 = vmatmul.f32.gmra.mxu1 %v2021_v12 }
 0x614   : > { %4046 = vst [vmem:[%s6414_s18 + $0x2f8] sm:$0xff] %v3890_v19  ;;  %3502 = vmatmul.f32.gmra.mxu3 %v2021_v12  ;;  %v7347_v44 = vpop.f32.mrf.mxu1 }
 0x617   : > { %v3455_v34 = vpop.f32.mrf.mxu3 }
 0x618   : > { %v3731_v50 = vadd.f32 %v3455_v34, %v2954_v62  ;;  %v2022_v14 = vpop.f32.mrf.mxu0  ;;  %v7974_v62 = vld [vmem:[#allocation54_spill] sm:$0xff] }
 0x619   : > { %v2023_v33 = vadd.f32 %v7181_v9, %v2022_v14  ;;  %v2960_v34 = vadd.f32 %v7974_v62, %v7123_v39  ;;  %v7976_v62 = vld [vmem:[#allocation57_spill] sm:$0xff] }
 0x61a   : > { %v3891_v29 = vadd.f32 %v7207_v31, %v3731_v50 }
 0x61b   : > { %2596 = vmatmul.f32.gmra.mxu1 %v2023_v33 }
 0x61c   : > { %4047 = vst [vmem:[%s6414_s18 + $0x300] sm:$0xff] %v3891_v29  ;;  %3505 = vmatmul.f32.gmra.mxu3 %v2023_v33  ;;  %v7355_v58 = vpop.f32.mrf.mxu1 }
 0x61f   : > { %v3458_v20 = vpop.f32.mrf.mxu3 }
 0x620   : > { %v3732_v23 = vadd.f32 %v3458_v20, %v2957_v10  ;;  %v2025_v4 = vpop.f32.mrf.mxu0  ;;  %v7975_v10 = vld [vmem:[#allocation56_spill] sm:$0xff] }
 0x621   : > { %v2026_v12 = vadd.f32 %v7181_v9, %v2025_v4  ;;  %v2963_v20 = vadd.f32 %v7975_v10, %v7134_v51  ;;  %v7977_v10 = vld [vmem:[#allocation59_spill] sm:$0xff] }
 0x622   : > { %v3892_v19 = vadd.f32 %v7207_v31, %v3732_v23 }
 0x623   : > { %2599 = vmatmul.f32.gmra.mxu1 %v2026_v12 }
 0x624   : > { %4048 = vst [vmem:[%s6414_s18 + $0x308] sm:$0xff] %v3892_v19  ;;  %3508 = vmatmul.f32.gmra.mxu3 %v2026_v12 }
 0x627   : > { %v3461_v50 = vpop.f32.mrf.mxu3 }
 0x628   : > { %v3733_v14 = vadd.f32 %v3461_v50, %v2960_v34  ;;  %v2027_v56 = vpop.f32.mrf.mxu0  ;;  %v2966_v34 = vadd.f32 %v7976_v62, %v7146_v28  ;;  %v7364_v50 = vpop.f32.mrf.mxu1  ;;  %v7978_v62 = vld [vmem:[#allocation61_spill] sm:$0xff] }
 0x629   : > { %v2028_v33 = vadd.f32 %v7181_v9, %v2027_v56 }
 0x62a   : > { %v3893_v29 = vadd.f32 %v7207_v31, %v3733_v14 }
 0x62b   : > { %2602 = vmatmul.f32.gmra.mxu1 %v2028_v33 }
 0x62c   : > { %4049 = vst [vmem:[%s6414_s18 + $0x310] sm:$0xff] %v3893_v29  ;;  %3511 = vmatmul.f32.gmra.mxu3 %v2028_v33 }
 0x62f   : > { %v3464_v23 = vpop.f32.mrf.mxu3 }
 0x630   : > { %v3734_v4 = vadd.f32 %v3464_v23, %v2963_v20  ;;  %v2030_v39 = vpop.f32.mrf.mxu0  ;;  %v2969_v20 = vadd.f32 %v7977_v10, %v7157_v55  ;;  %v2975_v10 = vadd.f32 %v6934_v46, %v7185_v1 }
 0x631   : > { %v2031_v12 = vadd.f32 %v7181_v9, %v2030_v39  ;;  %v7371_v39 = vpop.f32.mrf.mxu1 }
 0x632   : > { %v3894_v19 = vadd.f32 %v7207_v31, %v3734_v4 }
 0x633   : > { %2605 = vmatmul.f32.gmra.mxu1 %v2031_v12 }
 0x634   : > { %4050 = vst [vmem:[%s6414_s18 + $0x318] sm:$0xff] %v3894_v19  ;;  %3514 = vmatmul.f32.gmra.mxu3 %v2031_v12 }
 0x637   : > { %v3467_v14 = vpop.f32.mrf.mxu3 }
 0x638   : > { %v3735_v56 = vadd.f32 %v3467_v14, %v2966_v34  ;;  %v2032_v51 = vpop.f32.mrf.mxu0  ;;  %v2972_v34 = vadd.f32 %v7978_v62, %v7168_v15  ;;  %v7979_v15 = vld [vmem:[#allocation18_spill] sm:$0xff] }
 0x639   : > { %v2033_v33 = vadd.f32 %v7181_v9, %v2032_v51 }
 0x63a   : > { %v3895_v29 = vadd.f32 %v7207_v31, %v3735_v56 }
 0x63b   : > { %2608 = vmatmul.f32.gmra.mxu1 %v2033_v33 }
 0x63c   : > { %4051 = vst [vmem:[%s6414_s18 + $0x320] sm:$0xff] %v3895_v29  ;;  %3517 = vmatmul.f32.gmra.mxu3 %v2033_v33  ;;  %v7380_v29 = vpop.f32.mrf.mxu1 }
 0x63f   : > { %v3470_v23 = vpop.f32.mrf.mxu3 }
 0x640   : > { %v3736_v4 = vadd.f32 %v3470_v23, %v2969_v20  ;;  %v2035_v28 = vpop.f32.mrf.mxu0 }
 0x641   : > { %v2036_v12 = vadd.f32 %v7181_v9, %v2035_v28 }
 0x642   : > { %v3896_v19 = vadd.f32 %v7207_v31, %v3736_v4  ;;  %v2041_v4 = vadd.f32 %v7181_v9, %v7979_v15 }
 0x643   : > { %2611 = vmatmul.f32.gmra.mxu1 %v2036_v12 }
 0x644   : > { %4052 = vst [vmem:[%s6414_s18 + $0x328] sm:$0xff] %v3896_v19  ;;  %3520 = vmatmul.f32.gmra.mxu3 %v2036_v12  ;;  %v7389_v12 = vpop.f32.mrf.mxu1  ;;  %v2978_v19 = vadd.f32 %v6945_v54, %v7196_v53 }
 0x647   : > { %v3473_v14 = vpop.f32.mrf.mxu3 }
 0x648   : > { %v3737_v56 = vadd.f32 %v3473_v14, %v2972_v34  ;;  %v2037_v55 = vpop.f32.mrf.mxu0  ;;  %v7980_v14 = vld [vmem:[#allocation19_spill] sm:$0xff] }
 0x649   : > { %v2038_v51 = vadd.f32 %v7181_v9, %v2037_v55  ;;  %v2043_v46 = vadd.f32 %v7181_v9, %v7980_v14 }
 0x64a   : > { %v3897_v33 = vadd.f32 %v7207_v31, %v3737_v56  ;;  %v2981_v56 = vadd.f32 %v6958_v45, %v7214_v30  ;;  %v7982_v45 = vld [vmem:[#allocation21_spill] sm:$0xff] }
 0x64b   : > { %2614 = vmatmul.f32.gmra.mxu1 %v2038_v51  ;;  %v2048_v30 = vadd.f32 %v7181_v9, %v7982_v45 }
 0x64c   : > { %4053 = vst [vmem:[%s6414_s18 + $0x330] sm:$0xff] %v3897_v33  ;;  %3523 = vmatmul.f32.gmra.mxu3 %v2038_v51  ;;  %v7399_v55 = vpop.f32.mrf.mxu1 }
 0x64f   : > { %v3476_v20 = vpop.f32.mrf.mxu3 }
 0x650   : > { %v3738_v23 = vadd.f32 %v3476_v20, %v2975_v10  ;;  %v7981_v10 = vld [vmem:[#allocation20_spill] sm:$0xff]  ;;  %v2984_v20 = vadd.f32 %v6970_v60, %v7224_v6  ;;  %v7983_v60 = vld [vmem:[#allocation22_spill] sm:$0xff] }
 0x651   : > { %v2046_v54 = vadd.f32 %v7181_v9, %v7981_v10  ;;  %v2051_v6 = vadd.f32 %v7181_v9, %v7983_v60 }
 0x652   : > { %v3898_v28 = vadd.f32 %v7207_v31, %v3738_v23 }
 0x653   : > { %2617 = vmatmul.f32.gmra.mxu1 %v2041_v4 }
 0x654   : > { %4054 = vst [vmem:[%s6414_s18 + $0x338] sm:$0xff] %v3898_v28  ;;  %3526 = vmatmul.f32.gmra.mxu3 %v2041_v4  ;;  %v7409_v4 = vpop.f32.mrf.mxu1 }
 0x657   : > { %v3479_v62 = vpop.f32.mrf.mxu3 }
 0x658   : > { %v3739_v34 = vadd.f32 %v3479_v62, %v2978_v19  ;;  %v2987_v19 = vadd.f32 %v6982_v11, %v7236_v7 }
 0x65a   : > { %v3899_v1 = vadd.f32 %v7207_v31, %v3739_v34 }
 0x65b   : > { %2620 = vmatmul.f32.gmra.mxu1 %v2043_v46 }
 0x65c   : > { %4055 = vst [vmem:[%s6414_s18 + $0x340] sm:$0xff] %v3899_v1  ;;  %3529 = vmatmul.f32.gmra.mxu3 %v2043_v46  ;;  %v7418_v46 = vpop.f32.mrf.mxu1  ;;  %v2990_v1 = vadd.f32 %v6994_v17, %v7248_v24 }
 0x65f   : > { %v3482_v51 = vpop.f32.mrf.mxu3 }
 0x660   : > { %v3740_v33 = vadd.f32 %v3482_v51, %v2981_v56 }
 0x662   : > { %v3900_v53 = vadd.f32 %v7207_v31, %v3740_v33  ;;  %v7984_v33 = vld [vmem:[#allocation23_spill] sm:$0xff] }
 0x663   : > { %2623 = vmatmul.f32.gmra.mxu1 %v2046_v54  ;;  %v2053_v11 = vadd.f32 %v7181_v9, %v7984_v33 }
 0x664   : > { %4056 = vst [vmem:[%s6414_s18 + $0x348] sm:$0xff] %v3900_v53  ;;  %3532 = vmatmul.f32.gmra.mxu3 %v2046_v54  ;;  %v7427_v10 = vpop.f32.mrf.mxu1  ;;  %v2993_v54 = vadd.f32 %v7005_v5, %v7259_v49 }
 0x667   : > { %v3485_v23 = vpop.f32.mrf.mxu3 }
 0x668   : > { %v3741_v15 = vadd.f32 %v3485_v23, %v2984_v20  ;;  %v7985_v23 = vld [vmem:[#allocation24_spill] sm:$0xff] }
 0x669   : > { %v2056_v17 = vadd.f32 %v7181_v9, %v7985_v23  ;;  %v3008_v23 = vadd.f32 %v7066_v35, %v7305_v26  ;;  %v3014_v26 = vadd.f32 %v7090_v36, %v7322_v2  ;;  %v3020_v2 = vadd.f32 %v7115_v37, %v7338_v40 }
 0x66a   : > { %v3901_v28 = vadd.f32 %v7207_v31, %v3741_v15  ;;  %v2996_v15 = vadd.f32 %v7018_v59, %v7270_v0  ;;  %v7987_v59 = vld [vmem:[#allocation26_spill] sm:$0xff]  ;;  %v3026_v40 = vadd.f32 %v7139_v61, %v7355_v58  ;;  %v3032_v58 = vadd.f32 %v7161_v22, %v7371_v39 }
 0x66b   : > { %2626 = vmatmul.f32.gmra.mxu1 %v2048_v30  ;;  %v2061_v0 = vadd.f32 %v7181_v9, %v7987_v59  ;;  %v3038_v39 = vadd.f32 %v7191_v27, %v7389_v12 }
 0x66c   : > { %4057 = vst [vmem:[%s6414_s18 + $0x350] sm:$0xff] %v3901_v28  ;;  %3535 = vmatmul.f32.gmra.mxu3 %v2048_v30  ;;  %v7437_v45 = vpop.f32.mrf.mxu1 }
 0x66f   : > { %v3488_v62 = vpop.f32.mrf.mxu3 }
 0x670   : > { %v3742_v34 = vadd.f32 %v3488_v62, %v2987_v19  ;;  %v7986_v19 = vld [vmem:[#allocation25_spill] sm:$0xff]  ;;  %v2999_v62 = vadd.f32 %v7030_v42, %v7281_v3  ;;  %v7988_v42 = vld [vmem:[#allocation27_spill] sm:$0xff] }
 0x671   : > { %v2058_v5 = vadd.f32 %v7181_v9, %v7986_v19  ;;  %v2063_v3 = vadd.f32 %v7181_v9, %v7988_v42 }
 0x672   : > { %v3902_v14 = vadd.f32 %v7207_v31, %v3742_v34 }
 0x673   : > { %2629 = vmatmul.f32.gmra.mxu1 %v2051_v6 }
 0x674   : > { %4058 = vst [vmem:[%s6414_s18 + $0x358] sm:$0xff] %v3902_v14  ;;  %3538 = vmatmul.f32.gmra.mxu3 %v2051_v6  ;;  %v7447_v6 = vpop.f32.mrf.mxu1 }
 0x677   : > { %v3491_v56 = vpop.f32.mrf.mxu3 }
 0x678   : > { %v3743_v51 = vadd.f32 %v3491_v56, %v2990_v1  ;;  %v3002_v1 = vadd.f32 %v7041_v25, %v7289_v43 }
 0x67a   : > { %v3903_v7 = vadd.f32 %v7207_v31, %v3743_v51 }
 0x67b   : > { %2632 = vmatmul.f32.gmra.mxu1 %v2053_v11 }
 0x67c   : > { %4059 = vst [vmem:[%s6414_s18 + $0x360] sm:$0xff] %v3903_v7  ;;  %3541 = vmatmul.f32.gmra.mxu3 %v2053_v11  ;;  %v7456_v11 = vpop.f32.mrf.mxu1  ;;  %v3005_v7 = vadd.f32 %v7054_v16, %v7298_v18  ;;  %v3011_v18 = vadd.f32 %v7078_v38, %v7314_v13  ;;  %v3017_v13 = vadd.f32 %v7101_v52, %v7331_v41 }
 0x67d   : > { %v3023_v41 = vadd.f32 %v7127_v63, %v7347_v44  ;;  %v3029_v44 = vadd.f32 %v7150_v21, %v7364_v50  ;;  %v3035_v50 = vadd.f32 %v7172_v48, %v7380_v29  ;;  %v3041_v29 = vadd.f32 %v7201_v8, %v7399_v55 }
 0x67f   : > { %v3494_v53 = vpop.f32.mrf.mxu3 }
 0x680   : > { %v3744_v20 = vadd.f32 %v3494_v53, %v2993_v54 }
 0x682   : > { %v3904_v24 = vadd.f32 %v7207_v31, %v3744_v20  ;;  %v7989_v20 = vld [vmem:[#allocation28_spill] sm:$0xff] }
 0x683   : > { %2635 = vmatmul.f32.gmra.mxu1 %v2056_v17  ;;  %v2066_v25 = vadd.f32 %v7181_v9, %v7989_v20 }
 0x684   : > { %4060 = vst [vmem:[%s6414_s18 + $0x368] sm:$0xff] %v3904_v24  ;;  %3544 = vmatmul.f32.gmra.mxu3 %v2056_v17  ;;  %v2576_v12 = vpop.f32.mrf.mxu1 }
 0x687   : > { %v3497_v30 = vpop.f32.mrf.mxu3 }
 0x688   : > { %v3745_v28 = vadd.f32 %v3497_v30, %v2996_v15  ;;  %v7990_v15 = vld [vmem:[#allocation29_spill] sm:$0xff] }
 0x689   : > { %v2068_v30 = vadd.f32 %v7181_v9, %v7990_v15 }
 0x68a   : > { %v3905_v49 = vadd.f32 %v7207_v31, %v3745_v28 }
 0x68b   : > { %2638 = vmatmul.f32.gmra.mxu1 %v2058_v5 }
 0x68c   : > { %4061 = vst [vmem:[%s6414_s18 + $0x370] sm:$0xff] %v3905_v49  ;;  %3547 = vmatmul.f32.gmra.mxu3 %v2058_v5  ;;  %v7991_v5 = vld [vmem:[#allocation30_spill] sm:$0xff] }
 0x68d   : > { %v2071_v49 = vadd.f32 %v7181_v9, %v7991_v5 }
 0x68f   : > { %v3500_v34 = vpop.f32.mrf.mxu3 }
 0x690   : > { %v3746_v60 = vadd.f32 %v3500_v34, %v2999_v62 }
 0x692   : > { %v3906_v14 = vadd.f32 %v7207_v31, %v3746_v60  ;;  %v7992_v60 = vld [vmem:[#allocation31_spill] sm:$0xff] }
 0x693   : > { %2641 = vmatmul.f32.gmra.mxu1 %v2061_v0  ;;  %v2073_v59 = vadd.f32 %v7181_v9, %v7992_v60 }
 0x694   : > { %4062 = vst [vmem:[%s6414_s18 + $0x378] sm:$0xff] %v3906_v14  ;;  %3550 = vmatmul.f32.gmra.mxu3 %v2061_v0 }
 0x697   : > { %v3503_v56 = vpop.f32.mrf.mxu3 }
 0x698   : > { %v3747_v51 = vadd.f32 %v3503_v56, %v3002_v1  ;;  %v7993_v1 = vld [vmem:[#allocation4_spill] sm:$0xff] }
 0x699   : > { %v2076_v56 = vadd.f32 %v7181_v9, %v7993_v1 }
 0x69a   : > { %v3907_v33 = vadd.f32 %v7207_v31, %v3747_v51 }
 0x69b   : > { %2644 = vmatmul.f32.gmra.mxu1 %v2063_v3 }
 0x69c   : > { %4063 = vst [vmem:[%s6414_s18 + $0x380] sm:$0xff] %v3907_v33  ;;  %3553 = vmatmul.f32.gmra.mxu3 %v2063_v3  ;;  %v7994_v3 = vld [vmem:[#allocation5_spill] sm:$0xff] }
 0x69d   : > { %v2078_v33 = vadd.f32 %v7181_v9, %v7994_v3  ;;  %v3047_v3 = vadd.f32 %v7229_v47, %v7418_v46  ;;  %v8005_v47 = vld [vmem:[#allocation15_spill] sm:$0xff] }
 0x69e   : > { %v2103_v46 = vadd.f32 %v7181_v9, %v8005_v47 }
 0x69f   : > { %v3506_v54 = vpop.f32.mrf.mxu3 }
 0x6a0   : > { %v3748_v53 = vadd.f32 %v3506_v54, %v3005_v7 }
 0x6a2   : > { %v3908_v43 = vadd.f32 %v7207_v31, %v3748_v53  ;;  %v7995_v53 = vld [vmem:[#allocation6_spill] sm:$0xff] }
 0x6a3   : > { %v2081_v20 = vadd.f32 %v7181_v9, %v7995_v53  ;;  %v8004_v53 = vld [vmem:[#allocation63_spill] sm:$0xff] }
 0x6a4   : > { %4064 = vst [vmem:[%s6414_s18 + $0x388] sm:$0xff] %v3908_v43  ;;  %3556 = vmatmul.f32.gmra.mxu3 %v2066_v25 }
 0x6a7   : > { %v3509_v17 = vpop.f32.mrf.mxu3 }
 0x6a8   : > { %v3749_v24 = vadd.f32 %v3509_v17, %v3008_v23  ;;  %v7996_v23 = vld [vmem:[#allocation7_spill] sm:$0xff] }
 0x6a9   : > { %v2083_v17 = vadd.f32 %v7181_v9, %v7996_v23 }
 0x6aa   : > { %v3909_v16 = vadd.f32 %v7207_v31, %v3749_v24 }
 0x6ac   : > { %4065 = vst [vmem:[%s6414_s18 + $0x390] sm:$0xff] %v3909_v16  ;;  %3559 = vmatmul.f32.gmra.mxu3 %v2068_v30  ;;  %v7997_v30 = vld [vmem:[#allocation8_spill] sm:$0xff] }
 0x6ad   : > { %v2086_v16 = vadd.f32 %v7181_v9, %v7997_v30 }
 0x6af   : > { %v3512_v28 = vpop.f32.mrf.mxu3 }
 0x6b0   : > { %v3750_v19 = vadd.f32 %v3512_v28, %v3011_v18 }
 0x6b2   : > { %v3910_v35 = vadd.f32 %v7207_v31, %v3750_v19  ;;  %v7998_v19 = vld [vmem:[#allocation9_spill] sm:$0xff] }
 0x6b3   : > { %v2088_v5 = vadd.f32 %v7181_v9, %v7998_v19  ;;  %v8008_v19 = vld [vmem:[#allocation17_spill] sm:$0xff] }
 0x6b4   : > { %4066 = vst [vmem:[%s6414_s18 + $0x398] sm:$0xff] %v3910_v35  ;;  %3562 = vmatmul.f32.gmra.mxu3 %v2071_v49 }
 0x6b7   : > { %v3515_v62 = vpop.f32.mrf.mxu3 }
 0x6b8   : > { %v3751_v34 = vadd.f32 %v3515_v62, %v3014_v26  ;;  %v7999_v26 = vld [vmem:[#allocation10_spill] sm:$0xff] }
 0x6b9   : > { %v2091_v62 = vadd.f32 %v7181_v9, %v7999_v26 }
 0x6ba   : > { %v3911_v38 = vadd.f32 %v7207_v31, %v3751_v34 }
 0x6bc   : > { %4067 = vst [vmem:[%s6414_s18 + $0x3a0] sm:$0xff] %v3911_v38  ;;  %3565 = vmatmul.f32.gmra.mxu3 %v2073_v59  ;;  %v8000_v59 = vld [vmem:[#allocation11_spill] sm:$0xff] }
 0x6bd   : > { %v2093_v38 = vadd.f32 %v7181_v9, %v8000_v59 }
 0x6bf   : > { %v3518_v0 = vpop.f32.mrf.mxu3 }
 0x6c0   : > { %v3752_v14 = vadd.f32 %v3518_v0, %v3017_v13 }
 0x6c2   : > { %v3912_v36 = vadd.f32 %v7207_v31, %v3752_v14  ;;  %v8001_v14 = vld [vmem:[#allocation12_spill] sm:$0xff] }
 0x6c3   : > { %v2096_v1 = vadd.f32 %v7181_v9, %v8001_v14 }
 0x6c4   : > { %4068 = vst [vmem:[%s6414_s18 + $0x3a8] sm:$0xff] %v3912_v36  ;;  %3568 = vmatmul.f32.gmra.mxu3 %v2076_v56  ;;  %v3044_v56 = vadd.f32 %v7217_v57, %v7409_v4  ;;  %v3061_v36 = vpop.f32.mrf.mxu2 }
 0x6c7   : > { %v3521_v51 = vpop.f32.mrf.mxu3 }
 0x6c8   : > { %v3753_v42 = vadd.f32 %v3521_v51, %v3020_v2 }
 0x6ca   : > { %v3913_v52 = vadd.f32 %v7207_v31, %v3753_v42  ;;  %v8002_v42 = vld [vmem:[#allocation13_spill] sm:$0xff] }
 0x6cb   : > { %v2098_v8 = vadd.f32 %v7181_v9, %v8002_v42 }
 0x6cc   : > { %4069 = vst [vmem:[%s6414_s18 + $0x3b0] sm:$0xff] %v3913_v52  ;;  %3571 = vmatmul.f32.gmra.mxu3 %v2078_v33  ;;  %v2579_v33 = vpop.f32.mrf.mxu1 }
 0x6cf   : > { %v3524_v7 = vpop.f32.mrf.mxu3 }
 0x6d0   : > { %v3754_v54 = vadd.f32 %v3524_v7, %v3023_v41  ;;  %v3064_v7 = vpop.f32.mrf.mxu2 }
 0x6d2   : > { %v3914_v37 = vadd.f32 %v7207_v31, %v3754_v54  ;;  %v8003_v54 = vld [vmem:[#allocation14_spill] sm:$0xff] }
 0x6d3   : > { %v2101_v57 = vadd.f32 %v7181_v9, %v8003_v54 }
 0x6d4   : > { %4070 = vst [vmem:[%s6414_s18 + $0x3b8] sm:$0xff] %v3914_v37  ;;  %3574 = vmatmul.f32.gmra.mxu3 %v2081_v20  ;;  %v3050_v20 = vadd.f32 %v8004_v53, %v7427_v10  ;;  %v7589_v53 = vld [vmem:[%s7818_s4] ss:$0 sm:$0xff] }
 0x6d7   : > { %v3527_v25 = vpop.f32.mrf.mxu3 }
 0x6d8   : > { %v3755_v43 = vadd.f32 %v3527_v25, %v3026_v40  ;;  %v2582_v25 = vpop.f32.mrf.mxu1  ;;  %v3067_v23 = vpop.f32.mrf.mxu2 }
 0x6da   : > { %v3915_v63 = vadd.f32 %v7207_v31, %v3755_v43 }
 0x6dc   : > { %4071 = vst [vmem:[%s6414_s18 + $0x3c0] sm:$0xff] %v3915_v63  ;;  %3577 = vmatmul.f32.gmra.mxu3 %v2083_v17  ;;  %v8006_v17 = vld [vmem:[#allocation65_spill] sm:$0xff] }
 0x6dd   : > { %v3053_v63 = vadd.f32 %v8006_v17, %v7437_v45  ;;  %v2108_v45 = vadd.f32 %v7181_v9, %v8008_v19  ;;  %v8017_v19 = vld [vmem:[#allocation64_spill] sm:$0xff] }
 0x6df   : > { %v3530_v24 = vpop.f32.mrf.mxu3 }
 0x6e0   : > { %v3756_v15 = vadd.f32 %v3530_v24, %v3029_v44 }
 0x6e2   : > { %v3916_v61 = vadd.f32 %v7207_v31, %v3756_v15  ;;  %v8007_v15 = vld [vmem:[#allocation16_spill] sm:$0xff] }
 0x6e3   : > { %v2106_v10 = vadd.f32 %v7181_v9, %v8007_v15 }
 0x6e4   : > { %4072 = vst [vmem:[%s6414_s18 + $0x3c8] sm:$0xff] %v3916_v61  ;;  %3580 = vmatmul.f32.gmra.mxu3 %v2086_v16  ;;  %v2585_v16 = vpop.f32.mrf.mxu1  ;;  %v3070_v61 = vpop.f32.mrf.mxu2 }
 0x6e7   : > { %v3533_v18 = vpop.f32.mrf.mxu3 }
 0x6e8   : > { %v3757_v28 = vadd.f32 %v3533_v18, %v3032_v58  ;;  %v3056_v58 = vadd.f32 %v7263_v32, %v7447_v6 }
 0x6ea   : > { %v3917_v21 = vadd.f32 %v7207_v31, %v3757_v28 }
 0x6ec   : > { %4073 = vst [vmem:[%s6414_s18 + $0x3d0] sm:$0xff] %v3917_v21  ;;  %3583 = vmatmul.f32.gmra.mxu3 %v2088_v5  ;;  %v2588_v21 = vpop.f32.mrf.mxu1 }
 0x6ef   : > { %v3536_v49 = vpop.f32.mrf.mxu3 }
 0x6f0   : > { %v3758_v35 = vadd.f32 %v3536_v49, %v3035_v50  ;;  %v8009_v50 = vld [vmem:[#allocation66_spill] sm:$0xff] }
 0x6f1   : > { %v3059_v49 = vadd.f32 %v8009_v50, %v7456_v11  ;;  %v5421_v11 = vld [vmem:[%s7816_s2] ss:$0 sm:$0xff] }
 0x6f2   : > { %v3918_v22 = vadd.f32 %v7207_v31, %v3758_v35  ;;  %v3073_v35 = vpop.f32.mrf.mxu2 }
 0x6f4   : > { %4074 = vst [vmem:[%s6414_s18 + $0x3d8] sm:$0xff] %v3918_v22  ;;  %3586 = vmatmul.f32.gmra.mxu3 %v2091_v62  ;;  %v8010_v22 = vld [vmem:[#allocation49_spill] sm:$0xff] }
 0x6f5   : > { %v2111_v32 = vadd.f32 %v7181_v9, %v8010_v22  ;;  %v3065_v9 = vadd.f32 %v3064_v7, %v2579_v33 }
 0x6f7   : > { %v3539_v34 = vpop.f32.mrf.mxu3 }
 0x6f8   : > { %v3759_v60 = vadd.f32 %v3539_v34, %v3038_v39  ;;  %v3062_v39 = vadd.f32 %v3061_v36, %v2576_v12  ;;  %v2591_v34 = vpop.f32.mrf.mxu1 }
 0x6fa   : > { %v3919_v48 = vadd.f32 %v7207_v31, %v3759_v60 }
 0x6fc   : > { %4075 = vst [vmem:[%s6414_s18 + $0x3e0] sm:$0xff] %v3919_v48  ;;  %3589 = vmatmul.f32.gmra.mxu3 %v2093_v38  ;;  %v3076_v38 = vpop.f32.mrf.mxu2  ;;  %v8011_v48 = vld [vmem:[#allocation51_spill] sm:$0xff] }
 0x6fd   : > { %v3077_v17 = vadd.f32 %v3076_v38, %v2591_v34 }
 0x6ff   : > { %v3542_v13 = vpop.f32.mrf.mxu3 }
 0x700   : > { %v3760_v0 = vadd.f32 %v3542_v13, %v3041_v29  ;;  %v2113_v29 = vadd.f32 %v5421_v11, %v8011_v48 }
 0x702   : > { %v3920_v27 = vadd.f32 %v7207_v31, %v3760_v0 }
 0x704   : > { %4076 = vst [vmem:[%s6414_s18 + $0x3e8] sm:$0xff] %v3920_v27  ;;  %3592 = vmatmul.f32.gmra.mxu3 %v2096_v1  ;;  %v2594_v1 = vpop.f32.mrf.mxu1  ;;  %v8012_v27 = vld [vmem:[#allocation53_spill] sm:$0xff]  ;;  %v3079_v36 = vpop.f32.mrf.mxu2 }
 0x705   : > { %v2116_v12 = vadd.f32 %v5421_v11, %v8012_v27 }
 0x707   : > { %v3545_v2 = vpop.f32.mrf.mxu3 }
 0x708   : > { %v3761_v51 = vadd.f32 %v3545_v2, %v3044_v56  ;;  %v3068_v2 = vadd.f32 %v3067_v23, %v2582_v25 }
 0x70a   : > { %v3921_v55 = vadd.f32 %v7207_v31, %v3761_v51 }
 0x70c   : > { %4077 = vst [vmem:[%s6414_s18 + $0x3f0] sm:$0xff] %v3921_v55  ;;  %3595 = vmatmul.f32.gmra.mxu3 %v2098_v8  ;;  %v8013_v8 = vld [vmem:[#allocation55_spill] sm:$0xff]  ;;  %v3082_v33 = vpop.f32.mrf.mxu2 }
 0x70d   : > { %v2118_v55 = vadd.f32 %v5421_v11, %v8013_v8 }
 0x70f   : > { %v3548_v52 = vpop.f32.mrf.mxu3 }
 0x710   : > { %v3762_v41 = vadd.f32 %v3548_v52, %v3047_v3  ;;  %v2597_v52 = vpop.f32.mrf.mxu1 }
 0x711   : > { %v3083_v50 = vadd.f32 %v3082_v33, %v2597_v52 }
 0x712   : > { %v3922_v4 = vadd.f32 %v7207_v31, %v3762_v41  ;;  %v3071_v41 = vadd.f32 %v3070_v61, %v2585_v16  ;;  %v3080_v61 = vadd.f32 %v3079_v36, %v2594_v1 }
 0x714   : > { %4078 = vst [vmem:[%s6414_s18 + $0x3f8] sm:$0xff] %v3922_v4  ;;  %3598 = vmatmul.f32.gmra.mxu3 %v2101_v57  ;;  %v8014_v57 = vld [vmem:[#allocation58_spill] sm:$0xff] }
 0x715   : > { %v2121_v4 = vadd.f32 %v5421_v11, %v8014_v57 }
 0x717   : > { %v3551_v37 = vpop.f32.mrf.mxu3 }
 0x718   : > { %v3763_v40 = vadd.f32 %v3551_v37, %v3050_v20  ;;  %v3074_v37 = vadd.f32 %v3073_v35, %v2588_v21 }
 0x71a   : > { %v3923_v43 = vadd.f32 %v7207_v31, %v3763_v40  ;;  %v3085_v40 = vpop.f32.mrf.mxu2 }
 0x71c   : > { %4079 = vst [vmem:[%s6414_s18 + $0x400] sm:$0xff] %v3923_v43  ;;  %3601 = vmatmul.f32.gmra.mxu3 %v2103_v46  ;;  %v8015_v46 = vld [vmem:[#allocation60_spill] sm:$0xff] }
 0x71d   : > { %v2123_v43 = vadd.f32 %v5421_v11, %v8015_v46 }
 0x71f   : > { %v3554_v44 = vpop.f32.mrf.mxu3 }
 0x720   : > { %v3764_v24 = vadd.f32 %v3554_v44, %v3053_v63 }
 0x722   : > { %v3924_v30 = vadd.f32 %v7207_v31, %v3764_v24  ;;  %v3088_v15 = vpop.f32.mrf.mxu2 }
 0x724   : > { %4080 = vst [vmem:[%s6414_s18 + $0x408] sm:$0xff] %v3924_v30  ;;  %3604 = vmatmul.f32.gmra.mxu3 %v2106_v10  ;;  %v8016_v10 = vld [vmem:[#allocation62_spill] sm:$0xff] }
 0x725   : > { %v2126_v30 = vadd.f32 %v5421_v11, %v8016_v10 }
 0x727   : > { %v3557_v18 = vpop.f32.mrf.mxu3 }
 0x728   : > { %v3765_v28 = vadd.f32 %v3557_v18, %v3056_v58 }
 0x72a   : > { %v3925_v5 = vadd.f32 %v7207_v31, %v3765_v28  ;;  %v3091_v21 = vpop.f32.mrf.mxu2 }
 0x72c   : > { %4081 = vst [vmem:[%s6414_s18 + $0x410] sm:$0xff] %v3925_v5  ;;  %3607 = vmatmul.f32.gmra.mxu3 %v2108_v45  ;;  %v2128_v45 = vadd.f32 %v5421_v11, %v8017_v19 }
 0x72f   : > { %v3560_v26 = vpop.f32.mrf.mxu3 }
 0x730   : > { %v3766_v62 = vadd.f32 %v3560_v26, %v3059_v49 }
 0x732   : > { %v3926_v6 = vadd.f32 %v7207_v31, %v3766_v62  ;;  %v3094_v22 = vpop.f32.mrf.mxu2 }
 0x734   : > { %4082 = vst [vmem:[%s6414_s18 + $0x418] sm:$0xff] %v3926_v6  ;;  %3610 = vmatmul.f32.gmra.mxu3 %v2111_v32 }
 0x737   : > { %v3563_v60 = vpop.f32.mrf.mxu3 }
 0x738   : > { %v3767_v59 = vadd.f32 %v3563_v60, %v3062_v39 }
 0x73a   : > { %v3927_v13 = vadd.f32 %v7207_v31, %v3767_v59  ;;  %v3097_v38 = vpop.f32.mrf.mxu2 }
 0x73c   : > { %4083 = vst [vmem:[%s6414_s18 + $0x420] sm:$0xff] %v3927_v13  ;;  %3613 = vmatmul.f32.gmra.mxu3 %v2113_v29 }
 0x73f   : > { %v3566_v0 = vpop.f32.mrf.mxu3 }
 0x740   : > { %v3768_v14 = vadd.f32 %v3566_v0, %v3065_v9 }
 0x742   : > { %v3928_v56 = vadd.f32 %v7207_v31, %v3768_v14  ;;  %v3100_v1 = vpop.f32.mrf.mxu2 }
 0x744   : > { %4084 = vst [vmem:[%s6414_s18 + $0x428] sm:$0xff] %v3928_v56  ;;  %3616 = vmatmul.f32.gmra.mxu3 %v2116_v12 }
 0x747   : > { %v3569_v51 = vpop.f32.mrf.mxu3 }
 0x748   : > { %v3769_v42 = vadd.f32 %v3569_v51, %v3068_v2 }
 0x74a   : > { %v3929_v3 = vadd.f32 %v7207_v31, %v3769_v42  ;;  %v2600_v31 = vpop.f32.mrf.mxu1  ;;  %v3103_v42 = vpop.f32.mrf.mxu2 }
 0x74b   : > { %v3086_v32 = vadd.f32 %v3085_v40, %v2600_v31 }
 0x74c   : > { %4085 = vst [vmem:[%s6414_s18 + $0x430] sm:$0xff] %v3929_v3  ;;  %3619 = vmatmul.f32.gmra.mxu3 %v2118_v55 }
 0x74f   : > { %v3572_v7 = vpop.f32.mrf.mxu3 }
 0x750   : > { %v3770_v54 = vadd.f32 %v3572_v7, %v3071_v41 }
 0x752   : > { %v3930_v20 = vadd.f32 %v7589_v53, %v3770_v54  ;;  %v2603_v63 = vpop.f32.mrf.mxu1  ;;  %v3106_v41 = vpop.f32.mrf.mxu2 }
 0x753   : > { %v3089_v59 = vadd.f32 %v3088_v15, %v2603_v63 }
 0x754   : > { %4086 = vst [vmem:[%s6414_s18 + $0x438] sm:$0xff] %v3930_v20  ;;  %3622 = vmatmul.f32.gmra.mxu3 %v2121_v4 }
 0x757   : > { %v3575_v25 = vpop.f32.mrf.mxu3 }
 0x758   : > { %v3771_v47 = vadd.f32 %v3575_v25, %v3074_v37 }
 0x75a   : > { %v3931_v23 = vadd.f32 %v7589_v53, %v3771_v47  ;;  %v2606_v28 = vpop.f32.mrf.mxu1  ;;  %v3109_v37 = vpop.f32.mrf.mxu2 }
 0x75b   : > { %v3092_v13 = vadd.f32 %v3091_v21, %v2606_v28 }
 0x75c   : > { %4087 = vst [vmem:[%s6414_s18 + $0x440] sm:$0xff] %v3931_v23  ;;  %3625 = vmatmul.f32.gmra.mxu3 %v2123_v43 }
 0x75f   : > { %v3578_v44 = vpop.f32.mrf.mxu3 }
 0x760   : > { %v3772_v24 = vadd.f32 %v3578_v44, %v3077_v17 }
 0x762   : > { %v3932_v16 = vadd.f32 %v7589_v53, %v3772_v24  ;;  %v2609_v62 = vpop.f32.mrf.mxu1  ;;  %v3112_v63 = vpop.f32.mrf.mxu2 }
 0x763   : > { %v3095_v12 = vadd.f32 %v3094_v22, %v2609_v62 }
 0x764   : > { %4088 = vst [vmem:[%s6414_s18 + $0x448] sm:$0xff] %v3932_v16  ;;  %3628 = vmatmul.f32.gmra.mxu3 %v2126_v30 }
 0x767   : > { %v3581_v58 = vpop.f32.mrf.mxu3 }
 0x768   : > { %v3773_v18 = vadd.f32 %v3581_v58, %v3080_v61 }
 0x76a   : > { %v3933_v5 = vadd.f32 %v7589_v53, %v3773_v18  ;;  %v2612_v60 = vpop.f32.mrf.mxu1  ;;  %v3115_v61 = vpop.f32.mrf.mxu2 }
 0x76b   : > { %v3098_v8 = vadd.f32 %v3097_v38, %v2612_v60 }
 0x76c   : > { %4089 = vst [vmem:[%s6414_s18 + $0x450] sm:$0xff] %v3933_v5  ;;  %3631 = vmatmul.f32.gmra.mxu3 %v2128_v45 }
 0x76f   : > { %v3584_v49 = vpop.f32.mrf.mxu3 }
 0x770   : > { %v3774_v35 = vadd.f32 %v3584_v49, %v3083_v50 }
 0x772   : > { %v3934_v26 = vadd.f32 %v7589_v53, %v3774_v35  ;;  %v2615_v9 = vpop.f32.mrf.mxu1  ;;  %v3118_v5 = vpop.f32.mrf.mxu2 }
 0x773   : > { %v3101_v7 = vadd.f32 %v3100_v1, %v2615_v9 }
 0x774   : > { %4090 = vst [vmem:[%s6414_s18 + $0x458] sm:$0xff] %v3934_v26 }
 0x777   : > { %v3587_v6 = vpop.f32.mrf.mxu3 }
 0x778   : > { %v3775_v39 = vadd.f32 %v3587_v6, %v3086_v32 }
 0x77a   : > { %v3935_v34 = vadd.f32 %v7589_v53, %v3775_v39  ;;  %v2618_v2 = vpop.f32.mrf.mxu1  ;;  %v3121_v22 = vpop.f32.mrf.mxu2 }
 0x77b   : > { %v3104_v31 = vadd.f32 %v3103_v42, %v2618_v2 }
 0x77c   : > { %4091 = vst [vmem:[%s6414_s18 + $0x460] sm:$0xff] %v3935_v34 }
 0x77f   : > { %v3590_v11 = vpop.f32.mrf.mxu3 }
 0x780   : > { %v3776_v48 = vadd.f32 %v3590_v11, %v3089_v59 }
 0x782   : > { %v3936_v29 = vadd.f32 %v7589_v53, %v3776_v48  ;;  %v2621_v33 = vpop.f32.mrf.mxu1  ;;  %v3124_v11 = vpop.f32.mrf.mxu2 }
 0x783   : > { %v3107_v46 = vadd.f32 %v3106_v41, %v2621_v33 }
 0x784   : > { %4092 = vst [vmem:[%s6414_s18 + $0x468] sm:$0xff] %v3936_v29 }
 0x787   : > { %v3593_v0 = vpop.f32.mrf.mxu3 }
 0x788   : > { %v3777_v14 = vadd.f32 %v3593_v0, %v3092_v13 }
 0x78a   : > { %v3937_v27 = vadd.f32 %v7589_v53, %v3777_v14  ;;  %v2624_v20 = vpop.f32.mrf.mxu1  ;;  %v3127_v1 = vpop.f32.mrf.mxu2 }
 0x78b   : > { %v3110_v24 = vadd.f32 %v3109_v37, %v2624_v20 }
 0x78c   : > { %4093 = vst [vmem:[%s6414_s18 + $0x470] sm:$0xff] %v3937_v27 }
 0x78f   : > { %v3596_v56 = vpop.f32.mrf.mxu3 }
 0x790   : > { %v3778_v36 = vadd.f32 %v3596_v56, %v3095_v12 }
 0x792   : > { %v3938_v51 = vadd.f32 %v7589_v53, %v3778_v36  ;;  %v2627_v43 = vpop.f32.mrf.mxu1 }
 0x793   : > { %v3113_v58 = vadd.f32 %v3112_v63, %v2627_v43 }
 0x794   : > { %4094 = vst [vmem:[%s6414_s18 + $0x478] sm:$0xff] %v3938_v51  ;;  %v3130_v51 = vpop.f32.mrf.mxu2 }
 0x797   : > { %v3599_v55 = vpop.f32.mrf.mxu3 }
 0x798   : > { %v3779_v3 = vadd.f32 %v3599_v55, %v3098_v8 }
 0x79a   : > { %v3939_v52 = vadd.f32 %v7589_v53, %v3779_v3  ;;  %v2630_v30 = vpop.f32.mrf.mxu1 }
 0x79b   : > { %v3116_v21 = vadd.f32 %v3115_v61, %v2630_v30 }
 0x79c   : > { %4095 = vst [vmem:[%s6414_s18 + $0x480] sm:$0xff] %v3939_v52 }
 0x79f   : > { %v3602_v54 = vpop.f32.mrf.mxu3 }
 0x7a0   : > { %v3780_v57 = vadd.f32 %v3602_v54, %v3101_v7 }
 0x7a2   : > { %v3940_v4 = vadd.f32 %v7589_v53, %v3780_v57  ;;  %v2633_v45 = vpop.f32.mrf.mxu1 }
 0x7a3   : > { %v3119_v62 = vadd.f32 %v3118_v5, %v2633_v45 }
 0x7a4   : > { %4096 = vst [vmem:[%s6414_s18 + $0x488] sm:$0xff] %v3940_v4 }
 0x7a7   : > { %v3605_v40 = vpop.f32.mrf.mxu3 }
 0x7a8   : > { %v3781_v25 = vadd.f32 %v3605_v40, %v3104_v31 }
 0x7aa   : > { %v3941_v47 = vadd.f32 %v7589_v53, %v3781_v25  ;;  %v2636_v26 = vpop.f32.mrf.mxu1 }
 0x7ab   : > { %v3122_v34 = vadd.f32 %v3121_v22, %v2636_v26 }
 0x7ac   : > { %4097 = vst [vmem:[%s6414_s18 + $0x490] sm:$0xff] %v3941_v47 }
 0x7af   : > { %v3608_v23 = vpop.f32.mrf.mxu3 }
 0x7b0   : > { %v3782_v17 = vadd.f32 %v3608_v23, %v3107_v46 }
 0x7b2   : > { %v3942_v44 = vadd.f32 %v7589_v53, %v3782_v17  ;;  %v2639_v60 = vpop.f32.mrf.mxu1 }
 0x7b3   : > { %v3125_v29 = vadd.f32 %v3124_v11, %v2639_v60 }
 0x7b4   : > { %4098 = vst [vmem:[%s6414_s18 + $0x498] sm:$0xff] %v3942_v44 }
 0x7b7   : > { %v3611_v15 = vpop.f32.mrf.mxu3 }
 0x7b8   : > { %v3783_v10 = vadd.f32 %v3611_v15, %v3110_v24 }
 0x7ba   : > { %v3943_v16 = vadd.f32 %v7589_v53, %v3783_v10  ;;  %v2642_v0 = vpop.f32.mrf.mxu1 }
 0x7bb   : > { %v3128_v27 = vadd.f32 %v3127_v1, %v2642_v0 }
 0x7bc   : > { %4099 = vst [vmem:[%s6414_s18 + $0x4a0] sm:$0xff] %v3943_v16 }
 0x7bf   : > { %v3614_v18 = vpop.f32.mrf.mxu3 }
 0x7c0   : > { %v3784_v28 = vadd.f32 %v3614_v18, %v3113_v58 }
 0x7c2   : > { %v3944_v19 = vadd.f32 %v7589_v53, %v3784_v28  ;;  %v2645_v2 = vpop.f32.mrf.mxu1 }
 0x7c3   : > { %v3131_v42 = vadd.f32 %v3130_v51, %v2645_v2 }
 0x7c4   : > { %4100 = vst [vmem:[%s6414_s18 + $0x4a8] sm:$0xff] %v3944_v19 }
 0x7c7   : > { %v3617_v50 = vpop.f32.mrf.mxu3 }
 0x7c8   : > { %v3785_v49 = vadd.f32 %v3617_v50, %v3116_v21 }
 0x7ca   : > { %v3945_v35 = vadd.f32 %v7589_v53, %v3785_v49 }
 0x7cc   : > { %4101 = vst [vmem:[%s6414_s18 + $0x4b0] sm:$0xff] %v3945_v35 }
 0x7cf   : > { %v3620_v32 = vpop.f32.mrf.mxu3 }
 0x7d0   : > { %v3786_v6 = vadd.f32 %v3620_v32, %v3119_v62 }
 0x7d2   : > { %v3946_v39 = vadd.f32 %v7589_v53, %v3786_v6 }
 0x7d4   : > { %4102 = vst [vmem:[%s6414_s18 + $0x4b8] sm:$0xff] %v3946_v39 }
 0x7d7   : > { %v3623_v59 = vpop.f32.mrf.mxu3 }
 0x7d8   : > { %v3787_v38 = vadd.f32 %v3623_v59, %v3122_v34 }
 0x7da   : > { %v3947_v48 = vadd.f32 %v7589_v53, %v3787_v38 }
 0x7dc   : > { %4103 = vst [vmem:[%s6414_s18 + $0x4c0] sm:$0xff] %v3947_v48 }
 0x7df   : > { %v3626_v13 = vpop.f32.mrf.mxu3 }
 0x7e0   : > { %v3788_v9 = vadd.f32 %v3626_v13, %v3125_v29 }
 0x7e2   : > { %v3948_v14 = vadd.f32 %v7589_v53, %v3788_v9 }
 0x7e4   : > { %4104 = vst [vmem:[%s6414_s18 + $0x4c8] sm:$0xff] %v3948_v14 }
 0x7e7   : > { %v3629_v12 = vpop.f32.mrf.mxu3 }
 0x7e8   : > { %v3789_v56 = vadd.f32 %v3629_v12, %v3128_v27 }
 0x7ea   : > { %v3949_v36 = vadd.f32 %v7589_v53, %v3789_v56 }
 0x7ec   : > { %4105 = vst [vmem:[%s6414_s18 + $0x4d0] sm:$0xff] %v3949_v36 }
 0x7ef   : > { %v3632_v8 = vpop.f32.mrf.mxu3 }
 0x7f0   : > { %v3790_v55 = vadd.f32 %v3632_v8, %v3131_v42  ;;  %4113 = sbr.rel (!%p5642_p5) target bundleno = 2121 (0x849), region = 106 }
 0x7f2   : > { %v3950_v3 = vadd.f32 %v7589_v53, %v3790_v55 }
 0x7f4   : > { %4106 = vst [vmem:[%s6414_s18 + $0x4d8] sm:$0xff] %v3950_v3 }
 0x7f5   : > { %s8036_s23 = smov (!%p4116_p4, %s4115_s23), 26 }
 0x7f6   : > { %s4118_s29 = smul.u32 48, %s8036_s23 }
 0x7f8   : > { %p5130_p6 = scmp.eq.s32.totalorder %s4118_s29, 0 }
 0x7f9   : > { %5423 = sdivrem.u32 (!%p5130_p6), %s8036_s23, 6 }
 0x7fa   : > { %4124 = sbr.rel (%p5130_p6) target bundleno = 2121 (0x849), region = 110 }
 0x802   : > { %s7649_s26 = spop.drf %5423 }
 0x803   : > { %s5425_s16 = spop.drf %5423  ;;  %p5131_p5 = scmp.le.s32.totalorder %s7649_s26, 0 }
 0x804   : > { %s8018_s21 = smov (!%p5131_p5), %s7643_s27  ;;  %s8019_s6 = smov (!%p5131_p5), %s6414_s18 }
 0x805   : > { %4507 = sbr.rel (%p5131_p5) target bundleno = 2095 (0x82f), region = 229  ;;  %s7658_s7 = smov (!%p5131_p5), 0  }
 0x806   : > { %s7660_s8 = smov (!%p5131_p5), 0  }
 0x80a LB: >> { %v4269_v53 = vld [vmem:[%s5555_s6] sm:$0xff]  ;;  %v4271_v52 = vld [vmem:[%s5555_s6 + $0x8] sm:$0xff]  ;;  %v4273_v33 = vld [vmem:[%s5555_s6 + $0x10] sm:$0xff]  ;;  %s4341_s10 = sadd.s32 1, %s5559_s7  ;;  %s4263_s8 = sadd.s32 1, %s5563_s8   ;;  %s5563_s8 = sphi %s7660_s8, %s4263_s8   ;;  %s5559_s7 = sphi %s7658_s7, %s8022_s7   ;;  %s5555_s6 = sphi %s8019_s6, %s8021_s6   ;;  %s5551_s21 = sphi %s8018_s21, %s8020_s21  }
 0x80b   : >> { %4270 = vst [vmem:[%s5551_s21] sm:$0xff] %v4269_v53  ;;  %v4275_v41 = vld [vmem:[%s5555_s6 + $0x18] sm:$0xff]  ;;  %p4342_p7 = scmp.ge.s32.totalorder %s4341_s10, %s7649_s26  ;;  %v4277_v7 = vld [vmem:[%s5555_s6 + $0x20] sm:$0xff]  ;;  %v4279_v54 = vld [vmem:[%s5555_s6 + $0x28] sm:$0xff]  ;;  %p4262_p8 = scmp.ge.s32.totalorder %s4263_s8, %s7649_s26 }
 0x80c   : >> { %4272 = vst [vmem:[%s5551_s21 + $0x8] sm:$0xff] %v4271_v52  ;;  %v4281_v57 = vld [vmem:[%s5555_s6 + $0xd0] sm:$0xff]  ;;  %v4283_v4 = vld [vmem:[%s5555_s6 + $0xd8] sm:$0xff]  ;;  %v4285_v20 = vld [vmem:[%s5555_s6 + $0xe0] sm:$0xff] }
 0x80d   : >> { %4274 = vst [vmem:[%s5551_s21 + $0x10] sm:$0xff] %v4273_v33  ;;  %s8038_s10 = smov (%p4342_p7, %s4341_s10), 0  ;;  %v4287_v31 = vld [vmem:[%s5555_s6 + $0xe8] sm:$0xff]  ;;  %v4289_v37 = vld [vmem:[%s5555_s6 + $0xf0] sm:$0xff]  ;;  %v4291_v40 = vld [vmem:[%s5555_s6 + $0xf8] sm:$0xff] }
 0x80e   : >> { %4276 = vst [vmem:[%s5551_s21 + $0x18] sm:$0xff] %v4275_v41  ;;  %s4344_s13 = smul.u32 48, %s8038_s10  ;;  %v4293_v25 = vld [vmem:[%s5555_s6 + $0x1a0] sm:$0xff]  ;;  %v4295_v47 = vld [vmem:[%s5555_s6 + $0x1a8] sm:$0xff]  ;;  %v4297_v46 = vld [vmem:[%s5555_s6 + $0x1b0] sm:$0xff]  ;;  %s8022_s7 = smov %s8038_s10 }
 0x80f   : >> { %4278 = vst [vmem:[%s5551_s21 + $0x20] sm:$0xff] %v4277_v7  ;;  %v4299_v43 = vld [vmem:[%s5555_s6 + $0x1b8] sm:$0xff]  ;;  %v4301_v23 = vld [vmem:[%s5555_s6 + $0x1c0] sm:$0xff]  ;;  %v4303_v17 = vld [vmem:[%s5555_s6 + $0x1c8] sm:$0xff] }
 0x810   : >> { %4280 = vst [vmem:[%s5551_s21 + $0x28] sm:$0xff] %v4279_v54  ;;  %s7694_s14 = scalar_lea.vmem %s6414_s18, %s4344_s13 [#allocation3]   ;;  %s7697_s30 = scalar_lea.vmem %s7643_s27, %s4344_s13   ;;  %v4305_v63 = vld [vmem:[%s5555_s6 + $0x270] sm:$0xff]  ;;  %v4307_v44 = vld [vmem:[%s5555_s6 + $0x278] sm:$0xff]  ;;  %v4309_v24 = vld [vmem:[%s5555_s6 + $0x280] sm:$0xff] }
 0x811   : >> { %4282 = vst [vmem:[%s5551_s21 + $0x188] sm:$0xff] %v4281_v57  ;;  %v4311_v15 = vld [vmem:[%s5555_s6 + $0x288] sm:$0xff]  ;;  %v4313_v10 = vld [vmem:[%s5555_s6 + $0x290] sm:$0xff]  ;;  %v4315_v30 = vld [vmem:[%s5555_s6 + $0x298] sm:$0xff] }
 0x812   : >> { %4284 = vst [vmem:[%s5551_s21 + $0x190] sm:$0xff] %v4283_v4  ;;  %v4317_v16 = vld [vmem:[%s5555_s6 + $0x340] sm:$0xff]  ;;  %v4319_v61 = vld [vmem:[%s5555_s6 + $0x348] sm:$0xff]  ;;  %v4321_v58 = vld [vmem:[%s5555_s6 + $0x350] sm:$0xff] }
 0x813   : >> { %4286 = vst [vmem:[%s5551_s21 + $0x198] sm:$0xff] %v4285_v20  ;;  %v4323_v18 = vld [vmem:[%s5555_s6 + $0x358] sm:$0xff]  ;;  %v4325_v28 = vld [vmem:[%s5555_s6 + $0x360] sm:$0xff]  ;;  %v4327_v19 = vld [vmem:[%s5555_s6 + $0x368] sm:$0xff] }
 0x814   : >> { %4288 = vst [vmem:[%s5551_s21 + $0x1a0] sm:$0xff] %v4287_v31  ;;  %v4329_v45 = vld [vmem:[%s5555_s6 + $0x410] sm:$0xff]  ;;  %v4331_v5 = vld [vmem:[%s5555_s6 + $0x418] sm:$0xff]  ;;  %v4333_v21 = vld [vmem:[%s5555_s6 + $0x420] sm:$0xff] }
 0x815   : >> { %4290 = vst [vmem:[%s5551_s21 + $0x1a8] sm:$0xff] %v4289_v37  ;;  %v4335_v50 = vld [vmem:[%s5555_s6 + $0x428] sm:$0xff]  ;;  %v4337_v49 = vld [vmem:[%s5555_s6 + $0x430] sm:$0xff]  ;;  %v4339_v35 = vld [vmem:[%s5555_s6 + $0x438] sm:$0xff]  ;;  %s8021_s6 = smov %s7694_s14 }
 0x816   : >> { %4292 = vst [vmem:[%s5551_s21 + $0x1b0] sm:$0xff] %v4291_v40 }
 0x817   : >> { %4294 = vst [vmem:[%s5551_s21 + $0x310] sm:$0xff] %v4293_v25 }
 0x818   : >> { %4296 = vst [vmem:[%s5551_s21 + $0x318] sm:$0xff] %v4295_v47 }
 0x819   : >> { %4298 = vst [vmem:[%s5551_s21 + $0x320] sm:$0xff] %v4297_v46 }
 0x81a   : >> { %4300 = vst [vmem:[%s5551_s21 + $0x328] sm:$0xff] %v4299_v43 }
 0x81b   : >> { %4302 = vst [vmem:[%s5551_s21 + $0x330] sm:$0xff] %v4301_v23 }
 0x81c   : >> { %4304 = vst [vmem:[%s5551_s21 + $0x338] sm:$0xff] %v4303_v17 }
 0x81d   : >> { %4306 = vst [vmem:[%s5551_s21 + $0x498] sm:$0xff] %v4305_v63 }
 0x81e   : >> { %4308 = vst [vmem:[%s5551_s21 + $0x4a0] sm:$0xff] %v4307_v44 }
 0x81f   : >> { %4310 = vst [vmem:[%s5551_s21 + $0x4a8] sm:$0xff] %v4309_v24 }
 0x820   : >> { %4312 = vst [vmem:[%s5551_s21 + $0x4b0] sm:$0xff] %v4311_v15 }
 0x821   : >> { %4314 = vst [vmem:[%s5551_s21 + $0x4b8] sm:$0xff] %v4313_v10 }
 0x822   : >> { %4316 = vst [vmem:[%s5551_s21 + $0x4c0] sm:$0xff] %v4315_v30 }
 0x823   : >> { %4318 = vst [vmem:[%s5551_s21 + $0x620] sm:$0xff] %v4317_v16 }
 0x824   : >> { %4320 = vst [vmem:[%s5551_s21 + $0x628] sm:$0xff] %v4319_v61 }
 0x825   : >> { %4322 = vst [vmem:[%s5551_s21 + $0x630] sm:$0xff] %v4321_v58 }
 0x826   : >> { %4324 = vst [vmem:[%s5551_s21 + $0x638] sm:$0xff] %v4323_v18 }
 0x827   : >> { %4326 = vst [vmem:[%s5551_s21 + $0x640] sm:$0xff] %v4325_v28 }
 0x828   : >> { %4328 = vst [vmem:[%s5551_s21 + $0x648] sm:$0xff] %v4327_v19 }
 0x829   : >> { %4330 = vst [vmem:[%s5551_s21 + $0x7a8] sm:$0xff] %v4329_v45 }
 0x82a   : >> { %4332 = vst [vmem:[%s5551_s21 + $0x7b0] sm:$0xff] %v4331_v5  ;;  %4265 = sbr.rel (!%p4262_p8) target bundleno = 2058 (0x80a), region = 235 }
 0x82b   : >> { %4334 = vst [vmem:[%s5551_s21 + $0x7b8] sm:$0xff] %v4333_v21 }
 0x82c   : >> { %4336 = vst [vmem:[%s5551_s21 + $0x7c0] sm:$0xff] %v4335_v50 }
 0x82d   : >> { %4338 = vst [vmem:[%s5551_s21 + $0x7c8] sm:$0xff] %v4337_v49 }
 0x82e   : >> { %4340 = vst [vmem:[%s5551_s21 + $0x7d0] sm:$0xff] %v4339_v35  ;;  %s8020_s21 = smov %s7697_s30 }
 0x82f PF: > { %5426 = sdivrem.u32 %s8036_s23, 6 }
 0x830   : > { %s5132_s28 = smul.u32 48, %s7649_s26 }
 0x832   : > { %s7770_s9 = scalar_lea.vmem %s6414_s18, %s5132_s28 [#allocation3]   ;;  %s7773_s11 = scalar_lea.vmem %s7643_s27, %s5132_s28  }
 0x838   : > { %s5427_s12 = spop.drf %5426 }
 0x839   : > { %s7775_s15 = spop.drf %5426 }
 0x83a   : > { %p5134_p9 = scmp.le.s32.totalorder %s7775_s15, 0 }
 0x83b   : > { %s8023_s17 = smov (!%p5134_p9), %s7773_s11  ;;  %s8024_s20 = smov (!%p5134_p9), %s7770_s9 }
 0x83c   : > { %4521 = sbr.rel (%p5134_p9) target bundleno = 2121 (0x849), region = 240  ;;  %s7784_s24 = smov (!%p5134_p9), 0  }
 0x83d   : > { %s7786_s23 = smov (!%p5134_p9), 0  }
 0x841 LB: >> { %v4364_v26 = vld [vmem:[%s5571_s20] sm:$0xff]  ;;  %v4366_v62 = vld [vmem:[%s5571_s20 + $0xd0] sm:$0xff]  ;;  %s4376_s18 = sadd.s32 1, %s5575_s24  ;;  %s4358_s23 = sadd.s32 1, %s5579_s23   ;;  %s5579_s23 = sphi %s7786_s23, %s4358_s23   ;;  %s5575_s24 = sphi %s7784_s24, %s8025_s24   ;;  %s5571_s20 = sphi %s8024_s20, %s4381_s20   ;;  %s5567_s17 = sphi %s8023_s17, %s4382_s17  }
 0x842   : >> { %v4368_v22 = vld [vmem:[%s5571_s20 + $0x1a0] sm:$0xff]  ;;  %4365 = vst [vmem:[%s5567_s17] sm:$0xff] %v4364_v26  ;;  %v4370_v32 = vld [vmem:[%s5571_s20 + $0x270] sm:$0xff]  ;;  %p4377_p10 = scmp.ge.s32.totalorder %s4376_s18, %s7775_s15  ;;  %p4357_p11 = scmp.ge.s32.totalorder %s4358_s23, %s7775_s15 }
 0x843   : >> { %4367 = vst [vmem:[%s5567_s17 + $0x188] sm:$0xff] %v4366_v62  ;;  %v4372_v6 = vld [vmem:[%s5571_s20 + $0x340] sm:$0xff]  ;;  %v4374_v39 = vld [vmem:[%s5571_s20 + $0x410] sm:$0xff] }
 0x844   : >> { %4369 = vst [vmem:[%s5567_s17 + $0x310] sm:$0xff] %v4368_v22  ;;  %s8040_s18 = smov (%p4377_p10, %s4376_s18), 0  ;;  %4360 = sbr.rel (!%p4357_p11) target bundleno = 2113 (0x841), region = 246 }
 0x845   : >> { %4371 = vst [vmem:[%s5567_s17 + $0x498] sm:$0xff] %v4370_v32  ;;  %s5135_s27 = sshll.u32 %s8040_s18, 3  ;;  %s8025_s24 = smov %s8040_s18 }
 0x846   : >> { %4373 = vst [vmem:[%s5567_s17 + $0x620] sm:$0xff] %v4372_v6  ;;  %s4381_s20 = scalar_lea.vmem %s7770_s9, %s5135_s27 [#allocation3]  }
 0x847   : >> { %4375 = vst [vmem:[%s5567_s17 + $0x7a8] sm:$0xff] %v4374_v39  ;;  %s4382_s17 = scalar_lea.vmem %s7773_s11, %s5135_s27  }
 0x849 PF: > { %p12_p12 = scmp.ge.s32.totalorder %s5630_s22, 4   ;;  %s8026_s18 = smov %s5511_s19 }
 0x84a   : > { %s8027_s19 = smov %s5640_s25  ;;  %s8028_s20 = smov %s5630_s22 }
 0x84b   :  { %14 = sbr.rel (!%p12_p12) target bundleno = 2 (0x2), region = 257 }

</bundles_post_ra>
